<compile_context>
chip_gen: v5e
topology: v5e:2x2
jax: 0.10.0
libtpu: 0.0.40
codegen_flags: <defaults>
</compile_context>

<pallas_src>
import jax
import jax.numpy as jnp
from jax.experimental import pallas as pl
from jax.experimental.pallas import tpu as pltpu


def _cdiv(a, b):
    return -(-a // b)


def _tile_vmem_bytes(shape, itemsize):
    """Rough VMEM footprint of one tile, honoring (8, 128) layout padding."""
    if len(shape) == 0:
        return itemsize
    if len(shape) == 1:
        return _cdiv(shape[0], 128) * 128 * itemsize
    lead = 1
    for d in shape[:-2]:
        lead *= d
    sub = _cdiv(shape[-2], 8) * 8
    lane = _cdiv(shape[-1], 128) * 128
    return lead * sub * lane * itemsize


def _make_conv_bn_relu_kernel(kh, kw, stride, TH, Wo, Cin, KC, TCO):
    """Kernel over one (image, spatial tile, Cout tile)."""

    def kernel(x_ref, w_ref, shift_ref, o_ref, slab_ref):
        # x_ref:     (1, Hp, Wp, Cin) bf16  -- whole padded NHWC image (resident)
        # w_ref:     (KC, TCO) bf16         -- BN-scale-folded, im2col-ordered weights
        # shift_ref: (1, TCO) f32           -- BN shift (beta - mean*scale)
        # o_ref:     (1, TH*Wo, TCO)        -- one spatial x Cout tile of the output
        # slab_ref:  (TH*Wo, KC) bf16       -- persistent im2col slab (VMEM scratch)
        sp = pl.program_id(1)
        co = pl.program_id(2)

        # Build the im2col slab once per (image, spatial tile); reuse across Cout tiles.
        @pl.when(co == 0)
        def _build_slab():
            row0 = sp * (TH * stride)
            for ky in range(kh):                        # unrolled: kh*kw shifted reads
                for kx in range(kw):
                    if stride == 1:
                        sl = x_ref[0, pl.ds(row0 + ky, TH), pl.ds(kx, Wo), :]
                    else:
                        # TODO(synk): strided VMEM reads may lower to relayouts;
                        # only stride == 1 is exercised in this script.
                        sl = x_ref[0, pl.ds(row0 + ky, TH, stride),
                                   pl.ds(kx, Wo, stride), :]
                    t = ky * kw + kx
                    slab_ref[:, t * Cin:(t + 1) * Cin] = sl.reshape(TH * Wo, Cin)

        # One MXU matmul with K = kh*kw*Cin; no accumulator round trips.
        y = jnp.dot(slab_ref[...], w_ref[...], preferred_element_type=jnp.float32)
        y = y + shift_ref[...]                          # f32 epilogue (v5e-safe)
        o_ref[...] = jnp.maximum(y, 0.0)[None].astype(o_ref.dtype)

    return kernel


def basic_conv2d_nhwc(x_nhwc, weight, gamma, beta, running_mean, running_var,
                      *, stride=1, padding=0, eps=1e-3,
                      out_dtype=None, compute_dtype=jnp.bfloat16,
                      spatial_tile_pixels=2048):
    """x_nhwc: (N, H, W, Cin); weight: (Cout, Cin, kh, kw). Returns (N, Ho, Wo, Cout)."""
    N, H, W, Cin = x_nhwc.shape
    Cout, Cin_w, kh, kw = weight.shape
    assert Cin_w == Cin
    if out_dtype is None:
        out_dtype = x_nhwc.dtype
    Ho = (H + 2 * padding - kh) // stride + 1
    Wo = (W + 2 * padding - kw) // stride + 1
    KC = kh * kw * Cin

    # Cout tile: 256 fills the 256-wide MXU on v6e/v7x; 128 matches v5e / small Cout.
    TCO = 256 if Cout >= 256 else 128
    Cout_p = _cdiv(Cout, TCO) * TCO
    # TODO(synk): small-Cout branches (32/48/80/96) still pad to 128 lanes; a masked
    # tail store (or an HoWo-on-lanes orientation) would recover that waste.

    # Spatial tiling: TH output rows per grid step.  Keeps out-tile + im2col slab
    # footprint shape-independent (v7x 64 MiB VMEM headroom) and populates the grid.
    max_pix = max(Wo, (8 << 20) // max(1, KC * 2))          # cap slab at ~8 MiB
    target_pix = max(Wo, min(spatial_tile_pixels, max_pix))
    TH = max(1, min(Ho, target_pix // Wo))
    while TH < Ho and (TH * Wo) % 8 != 0:                   # sublane-friendly tile
        TH += 1
    if (TH * Wo) % 8 != 0:
        TH = Ho                                             # single full-extent tile
    n_sp = _cdiv(Ho, TH)
    Ho_p = n_sp * TH

    # Fold eval-mode BN into a per-output-channel scale (into weights) + shift.
    scale = (gamma / jnp.sqrt(running_var + eps)).astype(jnp.float32)   # (Cout,)
    shift = (beta - running_mean * scale).astype(jnp.float32)           # (Cout,)

    # OIHW -> (kh*kw*Cin, Cout), im2col-ordered, BN scale folded, Cout lane-padded.
    w = jnp.transpose(weight, (2, 3, 1, 0)).reshape(KC, Cout)
    w = w.astype(jnp.float32) * scale[None, :]
    if Cout_p != Cout:
        w = jnp.pad(w, ((0, 0), (0, Cout_p - Cout)))
        shift = jnp.pad(shift, (0, Cout_p - Cout))
    w = w.astype(compute_dtype)
    shift2 = shift.reshape(1, Cout_p)

    # Spatial zero-pad (also covers the padded-Ho tail tile), compute-dtype operands.
    Hp = max((Ho_p - 1) * stride + kh, H + 2 * padding)
    Wp = max((Wo - 1) * stride + kw, W + 2 * padding)
    xp = jnp.pad(x_nhwc, ((0, 0), (padding, Hp - H - padding),
                          (padding, Wp - W - padding), (0, 0)))
    xp = xp.astype(compute_dtype)
    # TODO(synk): with Cin << 128 on the lane axis the resident image is lane-padded
    # in VMEM (~128/Cin inflation); packing W*Cin into lanes would tighten this.

    grid = (N, n_sp, Cout_p // TCO)
    kernel = _make_conv_bn_relu_kernel(kh, kw, stride, TH, Wo, Cin, KC, TCO)

    # Explicit VMEM budget: double-buffered in/out tiles + persistent slab + headroom.
    cbytes = jnp.dtype(compute_dtype).itemsize
    obytes = jnp.dtype(out_dtype).itemsize
    budget = (2 * _tile_vmem_bytes((1, Hp, Wp, Cin), cbytes)
              + 2 * _tile_vmem_bytes((KC, TCO), cbytes)
              + 2 * _tile_vmem_bytes((1, TCO), 4)
              + 2 * _tile_vmem_bytes((1, TH * Wo, TCO), obytes)
              + _tile_vmem_bytes((TH * Wo, KC), cbytes)
              + (4 << 20))
    vmem_limit = int(min(max(budget, 16 << 20), 64 << 20))

    out = pl.pallas_call(
        kernel,
        out_shape=jax.ShapeDtypeStruct((N, Ho_p * Wo, Cout_p), out_dtype),
        grid_spec=pltpu.PrefetchScalarGridSpec(
            num_scalar_prefetch=0,
            grid=grid,
            in_specs=[
                # Whole padded image; index constant along sp & co -> stays resident.
                pl.BlockSpec((1, Hp, Wp, Cin), lambda n, sp, co: (n, 0, 0, 0)),
                pl.BlockSpec((KC, TCO), lambda n, sp, co: (0, co)),
                pl.BlockSpec((1, TCO), lambda n, sp, co: (0, co)),
            ],
            out_specs=pl.BlockSpec((1, TH * Wo, TCO), lambda n, sp, co: (n, sp, co)),
            scratch_shapes=[pltpu.VMEM((TH * Wo, KC), compute_dtype)],
        ),
        compiler_params=pltpu.CompilerParams(
            dimension_semantics=("parallel", "parallel", "arbitrary"),
            vmem_limit_bytes=vmem_limit),
    )(xp, w, shift2)

    return out[:, :Ho * Wo, :Cout].reshape(N, Ho, Wo, Cout)


def basic_conv2d(x, weight, gamma, beta, running_mean, running_var,
                 *, stride=1, padding=0, eps=1e-3, out_dtype=None):
    """PyTorch-facing NCHW interface.  For NHWC pipelines call basic_conv2d_nhwc
    directly and skip both boundary transposes."""
    x_nhwc = jnp.transpose(x, (0, 2, 3, 1))
    y = basic_conv2d_nhwc(x_nhwc, weight, gamma, beta, running_mean, running_var,
                          stride=stride, padding=padding, eps=eps,
                          out_dtype=out_dtype)
    return jnp.transpose(y, (0, 3, 1, 2))


if __name__ == "__main__":
    # Small BasicConv2d config: in_planes=4, out_planes=8, kernel_size=3,
    # stride=1, padding=1 on a (2, 4, 16, 16) NCHW input.
    N, Cin, H, W = 2, 4, 16, 16
    Cout, ksz, stride, padding = 8, 3, 1, 1
    eps = 1e-3

    key = jax.random.PRNGKey(0)
    kx, kw_, kg, kb, km, kv = jax.random.split(key, 6)
    x = jax.random.normal(kx, (N, Cin, H, W), dtype=jnp.float32)
    weight = 0.1 * jax.random.normal(kw_, (Cout, Cin, ksz, ksz), dtype=jnp.float32)
    gamma = 1.0 + 0.1 * jax.random.normal(kg, (Cout,), dtype=jnp.float32)
    beta = 0.1 * jax.random.normal(kb, (Cout,), dtype=jnp.float32)
    running_mean = 0.1 * jax.random.normal(km, (Cout,), dtype=jnp.float32)
    running_var = jax.random.uniform(kv, (Cout,), dtype=jnp.float32,
                                     minval=0.5, maxval=1.5)

    out = basic_conv2d(x, weight, gamma, beta, running_mean, running_var,
                       stride=stride, padding=padding, eps=eps)
    out = jax.block_until_ready(out)

    # Pure-JAX f32 reference (conv -> eval-mode BN -> ReLU).
    ref = jax.lax.conv_general_dilated(
        x, weight, window_strides=(stride, stride),
        padding=[(padding, padding), (padding, padding)],
        dimension_numbers=("NCHW", "OIHW", "NCHW"))
    ref = (ref - running_mean[None, :, None, None]) * \
          (gamma / jnp.sqrt(running_var + eps))[None, :, None, None] + \
          beta[None, :, None, None]
    ref = jnp.maximum(ref, 0.0)

    assert out.shape == (N, Cout, H, W)
    # bf16 matmul operands -> loosened tolerance vs the f32 reference.
    assert jnp.allclose(out, ref, rtol=3e-2, atol=3e-2), "mismatch vs reference"
    print("KERNEL_OK")
</pallas_src>

<mosaic_0001>
module attributes {stable_mosaic.version = 11 : i64} {
  func.func @kernel(%arg0: i32, %arg1: i32, %arg2: i32, %arg3: memref<1x18x18x4xbf16, #tpu.memory_space<vmem>>, %arg4: memref<36x128xbf16, #tpu.memory_space<vmem>>, %arg5: memref<1x128xf32, #tpu.memory_space<vmem>>, %arg6: memref<1x256x128xf32, #tpu.memory_space<vmem>>, %arg7: memref<256x36xbf16, #tpu.memory_space<vmem>>) attributes {dimension_semantics = [#tpu.dimension_semantics<parallel>, #tpu.dimension_semantics<parallel>, #tpu.dimension_semantics<arbitrary>], iteration_bounds = array<i64: 2, 1, 1>, scalar_prefetch = 0 : i64, scratch_operands = 1 : i64, tpu.core_type = #tpu.core_type<tc>, window_params = [{transform_indices = @transform_0, window_bounds = array<i64: 1, 18, 18, 4>}, {transform_indices = @transform_1, window_bounds = array<i64: 36, 128>}, {transform_indices = @transform_2, window_bounds = array<i64: 1, 128>}, {transform_indices = @transform_3, window_bounds = array<i64: 1, 256, 128>}]} {
    %c0_i32 = arith.constant 0 : i32
    %0 = arith.cmpi eq, %arg2, %c0_i32 : i32
    %1 = arith.extui %0 : i1 to i32
    %c0_i32_0 = arith.constant 0 : i32
    %2 = arith.cmpi ne, %1, %c0_i32_0 : i32
    scf.if %2 {
      %c16_i32 = arith.constant 16 : i32
      %13 = arith.muli %arg1, %c16_i32 : i32
      %c0_i32_10 = arith.constant 0 : i32
      %14 = arith.addi %13, %c0_i32_10 : i32
      %c0_11 = arith.constant 0 : index
      %15 = arith.index_cast %14 : i32 to index
      %c0_12 = arith.constant 0 : index
      %c0_13 = arith.constant 0 : index
      %16 = vector.load %arg3[%c0_11, %15, %c0_12, %c0_13] : memref<1x18x18x4xbf16, #tpu.memory_space<vmem>>, vector<1x16x16x4xbf16>
      %17 = vector.shape_cast %16 : vector<1x16x16x4xbf16> to vector<16x16x4xbf16>
      %18 = vector.shape_cast %17 : vector<16x16x4xbf16> to vector<256x4xbf16>
      %c0_14 = arith.constant 0 : index
      %c0_15 = arith.constant 0 : index
      %19 = vector.load %arg7[%c0_14, %c0_15] : memref<256x36xbf16, #tpu.memory_space<vmem>>, vector<256x4xbf16>
      tpu.vector_store %arg7[%c0_14, %c0_15], %18 {strides = array<i32>} : memref<256x36xbf16, #tpu.memory_space<vmem>>, vector<256x4xbf16>,
      %c0_i32_16 = arith.constant 0 : i32
      %20 = arith.addi %13, %c0_i32_16 : i32
      %c0_17 = arith.constant 0 : index
      %21 = arith.index_cast %20 : i32 to index
      %c1 = arith.constant 1 : index
      %c0_18 = arith.constant 0 : index
      %22 = vector.load %arg3[%c0_17, %21, %c1, %c0_18] : memref<1x18x18x4xbf16, #tpu.memory_space<vmem>>, vector<1x16x16x4xbf16>
      %23 = vector.shape_cast %22 : vector<1x16x16x4xbf16> to vector<16x16x4xbf16>
      %24 = vector.shape_cast %23 : vector<16x16x4xbf16> to vector<256x4xbf16>
      %c0_19 = arith.constant 0 : index
      %c4 = arith.constant 4 : index
      %25 = vector.load %arg7[%c0_19, %c4] : memref<256x36xbf16, #tpu.memory_space<vmem>>, vector<256x4xbf16>
      tpu.vector_store %arg7[%c0_19, %c4], %24 {strides = array<i32>} : memref<256x36xbf16, #tpu.memory_space<vmem>>, vector<256x4xbf16>,
      %c0_i32_20 = arith.constant 0 : i32
      %26 = arith.addi %13, %c0_i32_20 : i32
      %c0_21 = arith.constant 0 : index
      %27 = arith.index_cast %26 : i32 to index
      %c2 = arith.constant 2 : index
      %c0_22 = arith.constant 0 : index
      %28 = vector.load %arg3[%c0_21, %27, %c2, %c0_22] : memref<1x18x18x4xbf16, #tpu.memory_space<vmem>>, vector<1x16x16x4xbf16>
      %29 = vector.shape_cast %28 : vector<1x16x16x4xbf16> to vector<16x16x4xbf16>
      %30 = vector.shape_cast %29 : vector<16x16x4xbf16> to vector<256x4xbf16>
      %c0_23 = arith.constant 0 : index
      %c8 = arith.constant 8 : index
      %31 = vector.load %arg7[%c0_23, %c8] : memref<256x36xbf16, #tpu.memory_space<vmem>>, vector<256x4xbf16>
      tpu.vector_store %arg7[%c0_23, %c8], %30 {strides = array<i32>} : memref<256x36xbf16, #tpu.memory_space<vmem>>, vector<256x4xbf16>,
      %c1_i32 = arith.constant 1 : i32
      %32 = arith.addi %13, %c1_i32 : i32
      %c0_24 = arith.constant 0 : index
      %33 = arith.index_cast %32 : i32 to index
      %c0_25 = arith.constant 0 : index
      %c0_26 = arith.constant 0 : index
      %34 = vector.load %arg3[%c0_24, %33, %c0_25, %c0_26] : memref<1x18x18x4xbf16, #tpu.memory_space<vmem>>, vector<1x16x16x4xbf16>
      %35 = vector.shape_cast %34 : vector<1x16x16x4xbf16> to vector<16x16x4xbf16>
      %36 = vector.shape_cast %35 : vector<16x16x4xbf16> to vector<256x4xbf16>
      %c0_27 = arith.constant 0 : index
      %c12 = arith.constant 12 : index
      %37 = vector.load %arg7[%c0_27, %c12] : memref<256x36xbf16, #tpu.memory_space<vmem>>, vector<256x4xbf16>
      tpu.vector_store %arg7[%c0_27, %c12], %36 {strides = array<i32>} : memref<256x36xbf16, #tpu.memory_space<vmem>>, vector<256x4xbf16>,
      %c1_i32_28 = arith.constant 1 : i32
      %38 = arith.addi %13, %c1_i32_28 : i32
      %c0_29 = arith.constant 0 : index
      %39 = arith.index_cast %38 : i32 to index
      %c1_30 = arith.constant 1 : index
      %c0_31 = arith.constant 0 : index
      %40 = vector.load %arg3[%c0_29, %39, %c1_30, %c0_31] : memref<1x18x18x4xbf16, #tpu.memory_space<vmem>>, vector<1x16x16x4xbf16>
      %41 = vector.shape_cast %40 : vector<1x16x16x4xbf16> to vector<16x16x4xbf16>
      %42 = vector.shape_cast %41 : vector<16x16x4xbf16> to vector<256x4xbf16>
      %c0_32 = arith.constant 0 : index
      %c16 = arith.constant 16 : index
      %43 = vector.load %arg7[%c0_32, %c16] : memref<256x36xbf16, #tpu.memory_space<vmem>>, vector<256x4xbf16>
      tpu.vector_store %arg7[%c0_32, %c16], %42 {strides = array<i32>} : memref<256x36xbf16, #tpu.memory_space<vmem>>, vector<256x4xbf16>,
      %c1_i32_33 = arith.constant 1 : i32
      %44 = arith.addi %13, %c1_i32_33 : i32
      %c0_34 = arith.constant 0 : index
      %45 = arith.index_cast %44 : i32 to index
      %c2_35 = arith.constant 2 : index
      %c0_36 = arith.constant 0 : index
      %46 = vector.load %arg3[%c0_34, %45, %c2_35, %c0_36] : memref<1x18x18x4xbf16, #tpu.memory_space<vmem>>, vector<1x16x16x4xbf16>
      %47 = vector.shape_cast %46 : vector<1x16x16x4xbf16> to vector<16x16x4xbf16>
      %48 = vector.shape_cast %47 : vector<16x16x4xbf16> to vector<256x4xbf16>
      %c0_37 = arith.constant 0 : index
      %c20 = arith.constant 20 : index
      %49 = vector.load %arg7[%c0_37, %c20] : memref<256x36xbf16, #tpu.memory_space<vmem>>, vector<256x4xbf16>
      tpu.vector_store %arg7[%c0_37, %c20], %48 {strides = array<i32>} : memref<256x36xbf16, #tpu.memory_space<vmem>>, vector<256x4xbf16>,
      %c2_i32 = arith.constant 2 : i32
      %50 = arith.addi %13, %c2_i32 : i32
      %c0_38 = arith.constant 0 : index
      %51 = arith.index_cast %50 : i32 to index
      %c0_39 = arith.constant 0 : index
      %c0_40 = arith.constant 0 : index
      %52 = vector.load %arg3[%c0_38, %51, %c0_39, %c0_40] : memref<1x18x18x4xbf16, #tpu.memory_space<vmem>>, vector<1x16x16x4xbf16>
      %53 = vector.shape_cast %52 : vector<1x16x16x4xbf16> to vector<16x16x4xbf16>
      %54 = vector.shape_cast %53 : vector<16x16x4xbf16> to vector<256x4xbf16>
      %c0_41 = arith.constant 0 : index
      %c24 = arith.constant 24 : index
      %55 = vector.load %arg7[%c0_41, %c24] : memref<256x36xbf16, #tpu.memory_space<vmem>>, vector<256x4xbf16>
      tpu.vector_store %arg7[%c0_41, %c24], %54 {strides = array<i32>} : memref<256x36xbf16, #tpu.memory_space<vmem>>, vector<256x4xbf16>,
      %c2_i32_42 = arith.constant 2 : i32
      %56 = arith.addi %13, %c2_i32_42 : i32
      %c0_43 = arith.constant 0 : index
      %57 = arith.index_cast %56 : i32 to index
      %c1_44 = arith.constant 1 : index
      %c0_45 = arith.constant 0 : index
      %58 = vector.load %arg3[%c0_43, %57, %c1_44, %c0_45] : memref<1x18x18x4xbf16, #tpu.memory_space<vmem>>, vector<1x16x16x4xbf16>
      %59 = vector.shape_cast %58 : vector<1x16x16x4xbf16> to vector<16x16x4xbf16>
      %60 = vector.shape_cast %59 : vector<16x16x4xbf16> to vector<256x4xbf16>
      %c0_46 = arith.constant 0 : index
      %c28 = arith.constant 28 : index
      %61 = vector.load %arg7[%c0_46, %c28] : memref<256x36xbf16, #tpu.memory_space<vmem>>, vector<256x4xbf16>
      tpu.vector_store %arg7[%c0_46, %c28], %60 {strides = array<i32>} : memref<256x36xbf16, #tpu.memory_space<vmem>>, vector<256x4xbf16>,
      %c2_i32_47 = arith.constant 2 : i32
      %62 = arith.addi %13, %c2_i32_47 : i32
      %c0_48 = arith.constant 0 : index
      %63 = arith.index_cast %62 : i32 to index
      %c2_49 = arith.constant 2 : index
      %c0_50 = arith.constant 0 : index
      %64 = vector.load %arg3[%c0_48, %63, %c2_49, %c0_50] : memref<1x18x18x4xbf16, #tpu.memory_space<vmem>>, vector<1x16x16x4xbf16>
      %65 = vector.shape_cast %64 : vector<1x16x16x4xbf16> to vector<16x16x4xbf16>
      %66 = vector.shape_cast %65 : vector<16x16x4xbf16> to vector<256x4xbf16>
      %c0_51 = arith.constant 0 : index
      %c32 = arith.constant 32 : index
      %67 = vector.load %arg7[%c0_51, %c32] : memref<256x36xbf16, #tpu.memory_space<vmem>>, vector<256x4xbf16>
      tpu.vector_store %arg7[%c0_51, %c32], %66 {strides = array<i32>} : memref<256x36xbf16, #tpu.memory_space<vmem>>, vector<256x4xbf16>,
    } else {
    }
    %c0 = arith.constant 0 : index
    %c0_1 = arith.constant 0 : index
    %3 = vector.load %arg7[%c0, %c0_1] : memref<256x36xbf16, #tpu.memory_space<vmem>>, vector<256x36xbf16>
    %c0_2 = arith.constant 0 : index
    %c0_3 = arith.constant 0 : index
    %4 = vector.load %arg4[%c0_2, %c0_3] : memref<36x128xbf16, #tpu.memory_space<vmem>>, vector<36x128xbf16>
    %cst = arith.constant dense<0.000000e+00> : vector<256x128xf32>
    %5 = tpu.matmul %3, %4, %cst {dimension_numbers = #tpu.dot_dimension_numbers<[1], [0], [0], [1], [0, 0, 1, 1], [], []>} : vector<256x36xbf16>, vector<36x128xbf16>, vector<256x128xf32> -> vector<256x128xf32>
    %c0_4 = arith.constant 0 : index
    %c0_5 = arith.constant 0 : index
    %6 = vector.load %arg5[%c0_4, %c0_5] : memref<1x128xf32, #tpu.memory_space<vmem>>, vector<1x128xf32>
    %7 = vector.broadcast %6 : vector<1x128xf32> to vector<256x128xf32>
    %8 = arith.addf %5, %7 : vector<256x128xf32>
    %cst_6 = arith.constant 0.000000e+00 : f32
    %9 = vector.broadcast %cst_6 : f32 to vector<256x128xf32>
    %10 = arith.maximumf %8, %9 : vector<256x128xf32>
    %11 = vector.shape_cast %10 : vector<256x128xf32> to vector<1x256x128xf32>
    %c0_7 = arith.constant 0 : index
    %c0_8 = arith.constant 0 : index
    %c0_9 = arith.constant 0 : index
    %12 = vector.load %arg6[%c0_7, %c0_8, %c0_9] : memref<1x256x128xf32, #tpu.memory_space<vmem>>, vector<1x256x128xf32>
    tpu.vector_store %arg6[%c0_7, %c0_8, %c0_9], %11 {strides = array<i32>} : memref<1x256x128xf32, #tpu.memory_space<vmem>>, vector<1x256x128xf32>,
    return
  }
  func.func @transform_0(%arg0: i32, %arg1: i32, %arg2: i32) -> (i32, i32, i32, i32) {
    %c0_i32 = arith.constant 0 : i32
    %c0_i32_0 = arith.constant 0 : i32
    %c0_i32_1 = arith.constant 0 : i32
    %c0_i32_2 = arith.constant 0 : i32
    return %arg0, %c0_i32, %c0_i32_0, %c0_i32_1 : i32, i32, i32, i32
  }
  func.func @transform_1(%arg0: i32, %arg1: i32, %arg2: i32) -> (i32, i32) {
    %c0_i32 = arith.constant 0 : i32
    %c0_i32_0 = arith.constant 0 : i32
    return %c0_i32, %arg2 : i32, i32
  }
  func.func @transform_2(%arg0: i32, %arg1: i32, %arg2: i32) -> (i32, i32) {
    %c0_i32 = arith.constant 0 : i32
    %c0_i32_0 = arith.constant 0 : i32
    return %c0_i32, %arg2 : i32, i32
  }
  func.func @transform_3(%arg0: i32, %arg1: i32, %arg2: i32) -> (i32, i32, i32) {
    %c0_i32 = arith.constant 0 : i32
    return %arg0, %arg1, %arg2 : i32, i32, i32
  }
}

</mosaic_0001>

<bundles_post_ra>
// kernel: tpu_custom_call.1
= control target key start
LH: loop header
LB: loop body
LE: loop exit
PB: predicated region body
PF: predicated region fallthrough
CT: control target
= control target key end

     0   :  { %8 = vsyncpa [#allocation4], 0  ;;  %s6071_s0 = inlined_call_operand.vmem [shape: bf16[2,18,18,4], index: 0, kind: input, shape index: {}]   ;;  %s6072_s1 = inlined_call_operand.vmem [shape: bf16[36,128], index: 1, kind: input, shape index: {}]   ;;  %s6073_s2 = inlined_call_operand.vmem [shape: f32[1,128], index: 2, kind: input, shape index: {}]   ;;  %s6074_s3 = inlined_call_operand.hbm [shape: f32[2,256,128], index: 3, kind: output, shape index: {}]  }
   0x1   :  { %10 = vsyncpa [#allocation4 + $0x1], 0  ;;  %s4476_s12 = smov 0   ;;  %s4478_s13 = smov 0  }
   0x2   :  { %s4480_s14 = smov 0   ;;  %s4482_s15 = smov 0  }
   0x3   :  { %s4484_s16 = smov 0   ;;  %s4486_s17 = smov 0  }
   0x4 LB: > { %s3867_s18 = sadd.s32 4294967295, %s4445_s17   ;;  %s3868_s19 = sadd.s32 4294967294, %s4445_s17   ;;  %s4445_s17 = sphi %s4486_s17, %s16_s17   ;;  %s4441_s16 = sphi %s4484_s16, %s6085_s16   ;;  %s4437_s15 = sphi %s4482_s15, %s6084_s15   ;;  %s4433_s14 = sphi %s4480_s14, %s6083_s14   ;;  %s4429_s13 = sphi %s4478_s13, %s6082_s13   ;;  %s4425_s12 = sphi %s4476_s12, %s6081_s12  }
   0x5   : > { %s35_s20 = sadd.s32 1, %s4441_s16  ;;  %s124_s21 = sadd.s32 1, %s4433_s14 }
   0x6   : > { %p37_p0 = scmp.ge.s32.totalorder %s35_s20, 2  ;;  %p134_p1 = scmp.ne.s32.totalorder %s4433_s14, %s4429_s13 }
   0x7   : > { %p135_p2 = scmp.eq.s32.totalorder %s3867_s18, 1  ;;  %p140_p3 = scmp.ne.s32.totalorder %s4429_s13, %s4425_s12 }
   0x8   : > { %s6087_s20 = smov (%p37_p0, %s35_s20), 0  ;;  %p141_p5 = scmp.eq.s32.totalorder %s3868_s19, 1 }
   0x9   : > { %p4516_p4 = por %p135_p2, %p134_p1  ;;  %s117_s23 = ssub.s32 %s4441_s16, %s6087_s20 }
   0xa   : > { %p3873_p6 = scmp.ge.s32.totalorder %s4445_s17, 1  ;;  %p122_p7 = scmp.eq.s32.totalorder %s117_s23, 0 }
   0xb   : > { %p4523_p8 = por %p141_p5, %p140_p3  ;;  %p180_p9 = scmp.lt.s32.totalorder %s4445_s17, 3 }
   0xc   : > { %s4529_s25 = scalar_select %p122_p7, %s4433_s14, %s124_s21  }
   0xd   : > { %p181_p10 = pnand %p3873_p6, %p180_p9 }
   0xe   : > { %p211_p11 = scmp.lt.s32.totalorder (!%p181_p10), %s4437_s15, 1  ;;  %s4447_s4 = smov (!%p181_p10), 4  }
   0xf   : > { %184 = sbr.rel (%p181_p10) target bundleno = 981 (0x3d5), region = 32  ;;  %s4448_s5 = smov (!%p181_p10), 8  }
  0x10   : > { %s4449_s6 = smov (!%p181_p10), 12   ;;  %s4450_s7 = smov (!%p181_p10), 16  }
  0x11   : > { %s4451_s8 = smov (!%p181_p10), 20   ;;  %s4452_s9 = smov (!%p181_p10), 24  }
  0x12   : > { %s4453_s10 = smov (!%p181_p10), 28   ;;  %s4454_s11 = smov (!%p181_p10), 32  }
  0x13   : > { %s208_s28 = sand.u32 (!%p181_p10), 1, %s4429_s13  }
  0x14   : > { %s212_s26 = scalar_select %p211_p11, %s4437_s15, 1  ;;  %vm346_vm0 = vsmask.f32 3328  ;;  %vm347_vm1 = vsmask.f32 7440  ;;  %vm958_vm3 = vcmask 1042432  }
  0x15   : > { %vm4547_vm2 = vmor %vm346_vm0, %vm347_vm1  ;;  %vm959_vm4 = vcmask 1046532   ;;  %vm265_vm5 = vcmask 27648   ;;  %vm829_vm7 = vcmask 60448   ;;  %vm1169_vm8 = vcmask 93248  }
  0x16   : > { %s4301_s27 = smul.u32 216, %s212_s26  ;;  %vm4722_vm6 = vmor %vm958_vm3, %vm959_vm4  ;;  %vm1366_vm9 = vcmask 126048   ;;  %vm1927_vm10 = vcmask 158848   ;;  %vm2264_vm11 = vcmask 191648   ;;  %vm2461_vm12 = vcmask 224448  }
  0x17   : > { %vm3577_vm13 = vcmask 1041408   ;;  %vm3022_vm14 = vcmask 257248   ;;  %vm3359_vm15 = vcmask 290048   ;;  %vm3528_vm0 = vcmask 293888  }
  0x18   : > { %s4536_s30 = scalar_lea.vmem %s6071_s0, %s4301_s27  ;;  %s4387_s27 = scalar_lea.hbm %s6074_s3, 512 }
  0x19   : > { %v301_v0 = vld [vmem:[%s4536_s30 + $0xc] sm:$0xf]  ;;  %v302_v1 = vld [vmem:[%s4536_s30 + $0x10] sm:$0xf]  ;;  %v298_v2 = vld [vmem:[%s4536_s30] sm:$0xf] }
  0x1a   : > { %v374_v3 = vshrl.u32 %v301_v0, 16  ;;  %v377_v4 = vshll.u32 %v301_v0, 16  ;;  %v383_v5 = vshll.u32 %v302_v1, 16  ;;  %v387_v6 = vshrl.u32 %v302_v1, 16  ;;  %v299_v7 = vld [vmem:[%s4536_s30 + $0x4] sm:$0xf] }
  0x1b   : > { %v350_v8 = vshrl.u32 %v298_v2, 16  ;;  %v353_v9 = vshll.u32 %v298_v2, 16  ;;  %v359_v10 = vshll.u32 %v299_v7, 16  ;;  %v363_v11 = vshrl.u32 %v299_v7, 16  ;;  %v303_v12 = vld [vmem:[%s4536_s30 + $0x14] sm:$0x1] }
  0x1c   : > { %v376_v13 = vrot.slane %v374_v3, 4  ;;  %v379_v14 = vrot.slane %v377_v4, 5  ;;  %v385_v15 = vrot.slane %v383_v5, 5  ;;  %v389_v16 = vrot.slane %v387_v6, 4  ;;  %v300_v17 = vld [vmem:[%s4536_s30 + $0x8] sm:$0x1] }
  0x1d   : > { %v352_v18 = vrot.slane %v350_v8, 4  ;;  %v355_v19 = vrot.slane %v353_v9, 5  ;;  %v365_v20 = vrot.slane %v363_v11, 4  ;;  %v308_v21 = vld [vmem:[%s4536_s30 + $0x28] sm:$0xf]  ;;  %v393_v24 = vshll.u32 %v303_v12, 16 }
  0x1e   : > { %v380_v22 = vor.u32 %v379_v14, %v376_v13  ;;  %v390_v23 = vor.u32 %v389_v16, %v385_v15  ;;  %v361_v27 = vrot.slane %v359_v10, 5  ;;  %v431_v28 = vshll.u32 %v308_v21, 16  ;;  %v307_v30 = vld [vmem:[%s4536_s30 + $0x24] sm:$0xf]  ;;  %v304_v35 = vld [vmem:[%s4536_s30 + $0x18] sm:$0xf] }
  0x1f   : > { %v356_v26 = vor.u32 %v355_v19, %v352_v18  ;;  %v435_v29 = vshrl.u32 %v308_v21, 16  ;;  %v369_v32 = vshll.u32 %v300_v17, 16  ;;  %v395_v38 = vrot.slane %v393_v24, 5  ;;  %v305_v40 = vld [vmem:[%s4536_s30 + $0x1c] sm:$0xf] }
  0x20   : > { %v381_v31 = vrot.slane %v380_v22, 4  ;;  %v366_v34 = vor.u32 %v365_v20, %v361_v27  ;;  %v391_v37 = vrot.slane %v390_v23, 4  ;;  %v422_v39 = vshrl.u32 %v307_v30, 16  ;;  %v309_v42 = vld [vmem:[%s4536_s30 + $0x2c] sm:$0x1] }
  0x21   : > { %v357_v33 = vrot.slane %v356_v26, 4  ;;  %v4560_v43 = vrot.slane %v431_v28, 5  ;;  %v437_v44 = vrot.slane %v435_v29, 4  ;;  %v425_v45 = vshll.u32 %v307_v30, 16  ;;  %v313_v50 = vld [vmem:[%s4536_s30 + $0x3c] sm:$0xf] }
  0x22   : > { %v386_v36 = vsel %vm4547_vm2, %v381_v31, %v385_v15  ;;  %v371_v46 = vrot.slane %v369_v32, 5  ;;  %v424_v47 = vrot.slane %v422_v39, 4  ;;  %v398_v48 = vshrl.u32 %v304_v35, 16  ;;  %v311_v58 = vld [vmem:[%s4536_s30 + $0x34] sm:$0xf] }
  0x23   : > { %737 = vrot.lane.b32.xlu1 %v386_v36, %s4447_s4  ;;  %v362_v41 = vsel %vm4547_vm2, %v357_v33, %v361_v27  ;;  %v401_v49 = vshll.u32 %v304_v35, 16  ;;  %v367_v51 = vrot.slane %v366_v34, 4  ;;  %v427_v52 = vrot.slane %v425_v45, 5  ;;  %v306_v6 = vld [vmem:[%s4536_s30 + $0x20] sm:$0x1] }
  0x24   : > { %733 = vrot.lane.b32.xlu0 %v362_v41, %s4447_s4  ;;  %v407_v53 = vshll.u32 %v305_v40, 16  ;;  %v411_v54 = vshrl.u32 %v305_v40, 16  ;;  %v441_v55 = vshll.u32 %v309_v42, 16  ;;  %v400_v56 = vrot.slane %v398_v48, 4  ;;  %v314_v15 = vld [vmem:[%s4536_s30 + $0x40] sm:$0xf] }
  0x25   : > { %v403_v57 = vrot.slane %v401_v49, 5  ;;  %v438_v59 = vor.u32 %v437_v44, %v4560_v43  ;;  %v470_v61 = vshrl.u32 %v313_v50, 16  ;;  %v473_v62 = vshll.u32 %v313_v50, 16  ;;  %v312_v16 = vld [vmem:[%s4536_s30 + $0x38] sm:$0x1] }
  0x26   : > { %v413_v60 = vrot.slane %v411_v54, 4  ;;  %v396_v63 = vsel %vm4547_vm2, %v391_v37, %v395_v38  ;;  %v428_v0 = vor.u32 %v427_v52, %v424_v47  ;;  %v409_v2 = vrot.slane %v407_v53, 5  ;;  %v317_v20 = vld [vmem:[%s4536_s30 + $0x4c] sm:$0xf]  ;;  %v310_v21 = vld [vmem:[%s4536_s30 + $0x30] sm:$0xf] }
  0x27   : > { %v404_v1 = vor.u32 %v403_v57, %v400_v56  ;;  %v372_v3 = vsel %vm4547_vm2, %v367_v51, %v371_v46  ;;  %v455_v4 = vshll.u32 %v311_v58, 16  ;;  %v459_v5 = vshrl.u32 %v311_v58, 16  ;;  %v316_v24 = vld [vmem:[%s4536_s30 + $0x48] sm:$0xf]  ;;  %v322_v47 = vld [vmem:[%s4536_s30 + $0x60] sm:$0xf] }
  0x28   : > { %v443_v7 = vrot.slane %v441_v55, 5  ;;  %v439_v9 = vrot.slane %v438_v59, 4  ;;  %v472_v10 = vrot.slane %v470_v61, 4  ;;  %v475_v11 = vrot.slane %v473_v62, 5  ;;  %v318_v49 = vld [vmem:[%s4536_s30 + $0x50] sm:$0x1] }
  0x29   : > { %v405_v8 = vrot.slane %v404_v1, 4  ;;  %v414_v12 = vor.u32 %v413_v60, %v409_v2  ;;  %v429_v13 = vrot.slane %v428_v0, 4  ;;  %v417_v17 = vshll.u32 %v306_v6, 16  ;;  %v320_v53 = vld [vmem:[%s4536_s30 + $0x58] sm:$0xf] }
  0x2a   : > { %v4578_v18 = vrot.slane %v455_v4, 5  ;;  %v461_v19 = vrot.slane %v459_v5, 4  ;;  %v444_v26 = vsel %vm4547_vm2, %v439_v9, %v443_v7  ;;  %v476_v27 = vor.u32 %v475_v11, %v472_v10  ;;  %v315_v58 = vld [vmem:[%s4536_s30 + $0x44] sm:$0x1]  ;;  %v326_v11 = vld [vmem:[%s4536_s30 + $0x70] sm:$0xf] }
  0x2b   : > { %739 = vrot.lane.b32.xlu1 %v396_v63, %s4447_s4  ;;  %v410_v14 = vsel %vm4547_vm2, %v405_v8, %v409_v2  ;;  %v415_v22 = vrot.slane %v414_v12, 4  ;;  %v419_v23 = vrot.slane %v417_v17, 5  ;;  %v479_v28 = vshll.u32 %v314_v15, 16  ;;  %v319_v2 = vld [vmem:[%s4536_s30 + $0x54] sm:$0xf] }
  0x2c   : > { %735 = vrot.lane.b32.xlu0 %v372_v3, %s4447_s4  ;;  %741 = vrot.lane.b32.xlu2 %v410_v14, %s4447_s4  ;;  %v465_v29 = vshll.u32 %v312_v16, 16  ;;  %v434_v30 = vsel %vm4547_vm2, %v429_v13, %v4560_v43  ;;  %v503_v31 = vshll.u32 %v317_v20, 16  ;;  %v507_v32 = vshrl.u32 %v317_v20, 16  ;;  %v323_v6 = vld [vmem:[%s4536_s30 + $0x64] sm:$0xf] }
  0x2d   : > { %v446_v33 = vshrl.u32 %v310_v21, 16  ;;  %v462_v34 = vor.u32 %v461_v19, %v4578_v18  ;;  %v494_v35 = vshrl.u32 %v316_v24, 16  ;;  %v497_v36 = vshll.u32 %v316_v24, 16  ;;  %v325_v20 = vld [vmem:[%s4536_s30 + $0x6c] sm:$0xf] }
  0x2e   : > { %v449_v37 = vshll.u32 %v310_v21, 16  ;;  %v483_v38 = vshrl.u32 %v314_v15, 16  ;;  %v420_v39 = vsel %vm4547_vm2, %v415_v22, %v419_v23  ;;  %v481_v41 = vrot.slane %v479_v28, 5  ;;  %v321_v15 = vld [vmem:[%s4536_s30 + $0x5c] sm:$0x1] }
  0x2f   : > { %v448_v40 = vrot.slane %v446_v33, 4  ;;  %v477_v43 = vrot.slane %v476_v27, 4  ;;  %v467_v44 = vrot.slane %v465_v29, 5  ;;  %v4593_v45 = vrot.slane %v503_v31, 5 }
  0x30   : > { %v451_v42 = vrot.slane %v449_v37, 5  ;;  %v509_v46 = vrot.slane %v507_v32, 4  ;;  %v463_v48 = vrot.slane %v462_v34, 4  ;;  %v496_v50 = vrot.slane %v494_v35, 4 }
  0x31   : > { %v499_v51 = vrot.slane %v497_v36, 5  ;;  %v485_v54 = vrot.slane %v483_v38, 4  ;;  %v542_v56 = vshrl.u32 %v322_v47, 16  ;;  %v545_v57 = vshll.u32 %v322_v47, 16  ;;  %v329_v47 = vld [vmem:[%s4536_s30 + $0x7c] sm:$0xf] }
  0x32   : > { %v452_v52 = vor.u32 %v451_v42, %v448_v40  ;;  %v482_v59 = vsel %vm4547_vm2, %v477_v43, %v481_v41  ;;  %v510_v60 = vor.u32 %v509_v46, %v4593_v45  ;;  %v513_v61 = vshll.u32 %v318_v49, 16  ;;  %v331_v42 = vld [vmem:[%s4536_s30 + $0x84] sm:$0xf]  ;;  %v324_v49 = vld [vmem:[%s4536_s30 + $0x68] sm:$0x1] }
  0x33   : > { %747 = vrot.lane.b32.xlu1 %v444_v26, %s4447_s4  ;;  %v468_v62 = vsel %vm4547_vm2, %v463_v48, %v467_v44  ;;  %v500_v63 = vor.u32 %v499_v51, %v496_v50  ;;  %v527_v0 = vshll.u32 %v320_v53, 16  ;;  %v531_v1 = vshrl.u32 %v320_v53, 16 }
  0x34   : > { %745 = vrot.lane.b32.xlu0 %v434_v30, %s4447_s4  ;;  %743 = vrot.lane.b32.xlu2 %v420_v39, %s4447_s4  ;;  %v453_v55 = vrot.slane %v452_v52, 4  ;;  %v486_v4 = vor.u32 %v485_v54, %v481_v41  ;;  %v489_v5 = vshll.u32 %v315_v58, 16  ;;  %v544_v7 = vrot.slane %v542_v56, 4  ;;  %v327_v41 = vld [vmem:[%s4536_s30 + $0x74] sm:$0x1] }
  0x35   : > { %v547_v8 = vrot.slane %v545_v57, 5  ;;  %v511_v9 = vrot.slane %v510_v60, 4  ;;  %v515_v10 = vrot.slane %v513_v61, 5  ;;  %v518_v12 = vshrl.u32 %v319_v2, 16  ;;  %v328_v54 = vld [vmem:[%s4536_s30 + $0x78] sm:$0xf] }
  0x36   : > { %v458_v3 = vsel %vm4547_vm2, %v453_v55, %v4578_v18  ;;  %v521_v13 = vshll.u32 %v319_v2, 16  ;;  %v501_v14 = vrot.slane %v500_v63, 4  ;;  %v4615_v16 = vrot.slane %v527_v0, 5 }
  0x37   : > { %v533_v17 = vrot.slane %v531_v1, 4  ;;  %v487_v18 = vrot.slane %v486_v4, 4  ;;  %v491_v19 = vrot.slane %v489_v5, 5  ;;  %v520_v21 = vrot.slane %v518_v12, 4  ;;  %v332_v4 = vld [vmem:[%s4536_s30 + $0x88] sm:$0xf] }
  0x38   : > { %v523_v22 = vrot.slane %v521_v13, 5  ;;  %v548_v23 = vor.u32 %v547_v8, %v544_v7  ;;  %v551_v24 = vshll.u32 %v323_v6, 16  ;;  %v575_v26 = vshll.u32 %v326_v11, 16 }
  0x39   : > { %v579_v27 = vshrl.u32 %v326_v11, 16  ;;  %v516_v28 = vsel %vm4547_vm2, %v511_v9, %v515_v10  ;;  %v537_v29 = vshll.u32 %v321_v15, 16  ;;  %v506_v30 = vsel %vm4547_vm2, %v501_v14, %v4593_v45  ;;  %v335_v9 = vld [vmem:[%s4536_s30 + $0x94] sm:$0xf]  ;;  %v330_v11 = vld [vmem:[%s4536_s30 + $0x80] sm:$0x1] }
  0x3a   : > { %v534_v31 = vor.u32 %v533_v17, %v4615_v16  ;;  %v566_v32 = vshrl.u32 %v325_v20, 16  ;;  %v569_v33 = vshll.u32 %v325_v20, 16  ;;  %v555_v34 = vshrl.u32 %v323_v6, 16  ;;  %v334_v14 = vld [vmem:[%s4536_s30 + $0x90] sm:$0xf] }
  0x3b   : > { %753 = vrot.lane.b32.xlu1 %v482_v59, %s4447_s4  ;;  %v492_v35 = vsel %vm4547_vm2, %v487_v18, %v491_v19  ;;  %v524_v36 = vor.u32 %v523_v22, %v520_v21  ;;  %v549_v37 = vrot.slane %v548_v23, 4  ;;  %v553_v38 = vrot.slane %v551_v24, 5 }
  0x3c   : > { %751 = vrot.lane.b32.xlu0 %v468_v62, %s4447_s4  ;;  %749 = vrot.lane.b32.xlu2 %v458_v3, %s4447_s4  ;;  %v4627_v39 = vrot.slane %v575_v26, 5  ;;  %v581_v40 = vrot.slane %v579_v27, 4  ;;  %v535_v43 = vrot.slane %v534_v31, 4  ;;  %v539_v44 = vrot.slane %v537_v29, 5 }
  0x3d   : > { %v568_v45 = vrot.slane %v566_v32, 4  ;;  %v571_v46 = vrot.slane %v569_v33, 5  ;;  %v525_v48 = vrot.slane %v524_v36, 4  ;;  %v557_v50 = vrot.slane %v555_v34, 4 }
  0x3e   : > { %v554_v51 = vsel %vm4547_vm2, %v549_v37, %v553_v38  ;;  %v582_v52 = vor.u32 %v581_v40, %v4627_v39  ;;  %v585_v53 = vshll.u32 %v327_v41, 16  ;;  %v614_v55 = vshrl.u32 %v331_v42, 16  ;;  %v336_v37 = vld [vmem:[%s4536_s30 + $0x98] sm:$0x1]  ;;  %v340_v40 = vld [vmem:[%s4536_s30 + $0xa8] sm:$0xf] }
  0x3f   : > { %v617_v56 = vshll.u32 %v331_v42, 16  ;;  %v599_v57 = vshll.u32 %v329_v47, 16  ;;  %v603_v58 = vshrl.u32 %v329_v47, 16  ;;  %v540_v59 = vsel %vm4547_vm2, %v535_v43, %v539_v44  ;;  %v338_v42 = vld [vmem:[%s4536_s30 + $0xa0] sm:$0xf] }
  0x40   : > { %v572_v60 = vor.u32 %v571_v46, %v568_v45  ;;  %v561_v61 = vshll.u32 %v324_v49, 16  ;;  %v530_v62 = vsel %vm4547_vm2, %v525_v48, %v4615_v16  ;;  %v558_v63 = vor.u32 %v557_v50, %v553_v38  ;;  %v333_v43 = vld [vmem:[%s4536_s30 + $0x8c] sm:$0x1]  ;;  %v337_v47 = vld [vmem:[%s4536_s30 + $0x9c] sm:$0xf] }
  0x41   : > { %v590_v0 = vshrl.u32 %v328_v54, 16  ;;  %v593_v1 = vshll.u32 %v328_v54, 16  ;;  %v583_v2 = vrot.slane %v582_v52, 4  ;;  %v587_v3 = vrot.slane %v585_v53, 5 }
  0x42   : > { %v616_v5 = vrot.slane %v614_v55, 4  ;;  %v619_v6 = vrot.slane %v617_v56, 5  ;;  %v4647_v7 = vrot.slane %v599_v57, 5  ;;  %v605_v8 = vrot.slane %v603_v58, 4 }
  0x43   : > { %759 = vrot.lane.b32.xlu1 %v516_v28, %s4447_s4  ;;  %v573_v10 = vrot.slane %v572_v60, 4  ;;  %v559_v12 = vrot.slane %v558_v63, 4  ;;  %v563_v13 = vrot.slane %v561_v61, 5  ;;  %v592_v15 = vrot.slane %v590_v0, 4 }
  0x44   : > { %757 = vrot.lane.b32.xlu0 %v506_v30, %s4447_s4  ;;  %755 = vrot.lane.b32.xlu2 %v492_v35, %s4447_s4  ;;  %v595_v16 = vrot.slane %v593_v1, 5  ;;  %v623_v17 = vshll.u32 %v332_v4, 16  ;;  %v647_v18 = vshll.u32 %v335_v9, 16  ;;  %v651_v19 = vshrl.u32 %v335_v9, 16  ;;  %v339_v1 = vld [vmem:[%s4536_s30 + $0xa4] sm:$0x1] }
  0x45   : > { %v588_v20 = vsel %vm4547_vm2, %v583_v2, %v587_v3  ;;  %v620_v21 = vor.u32 %v619_v6, %v616_v5  ;;  %v606_v22 = vor.u32 %v605_v8, %v4647_v7  ;;  %v609_v23 = vshll.u32 %v330_v11, 16  ;;  %v344_v5 = vld [vmem:[%s4536_s30 + $0xb8] sm:$0xf]  ;;  %v343_v8 = vld [vmem:[%s4536_s30 + $0xb4] sm:$0xf] }
  0x46   : > { %v578_v24 = vsel %vm4547_vm2, %v573_v10, %v4627_v39  ;;  %v638_v26 = vshrl.u32 %v334_v14, 16  ;;  %v641_v27 = vshll.u32 %v334_v14, 16  ;;  %v627_v28 = vshrl.u32 %v332_v4, 16 }
  0x47   : > { %v564_v29 = vsel %vm4547_vm2, %v559_v12, %v563_v13  ;;  %v596_v30 = vor.u32 %v595_v16, %v592_v15  ;;  %v4662_v31 = vrot.slane %v647_v18, 5  ;;  %v653_v32 = vrot.slane %v651_v19, 4 }
  0x48   : > { %v621_v33 = vrot.slane %v620_v21, 4  ;;  %v625_v34 = vrot.slane %v623_v17, 5  ;;  %v607_v35 = vrot.slane %v606_v22, 4  ;;  %v611_v36 = vrot.slane %v609_v23, 5 }
  0x49   : > { %v640_v38 = vrot.slane %v638_v26, 4  ;;  %v643_v39 = vrot.slane %v641_v27, 5  ;;  %v597_v41 = vrot.slane %v596_v30, 4  ;;  %v629_v44 = vrot.slane %v627_v28, 4 }
  0x4a   : > { %v654_v45 = vor.u32 %v653_v32, %v4662_v31  ;;  %v657_v46 = vshll.u32 %v336_v37, 16  ;;  %v626_v48 = vsel %vm4547_vm2, %v621_v33, %v625_v34  ;;  %v612_v49 = vsel %vm4547_vm2, %v607_v35, %v611_v36  ;;  %v342_v36 = vld [vmem:[%s4536_s30 + $0xb0] sm:$0x1] }
  0x4b   : > { %765 = vrot.lane.b32.xlu1 %v554_v51, %s4447_s4  ;;  %v686_v50 = vshrl.u32 %v340_v40, 16  ;;  %v689_v51 = vshll.u32 %v340_v40, 16  ;;  %v644_v52 = vor.u32 %v643_v39, %v640_v38  ;;  %v671_v53 = vshll.u32 %v338_v42, 16 }
  0x4c   : > { %763 = vrot.lane.b32.xlu0 %v540_v59, %s4447_s4  ;;  %761 = vrot.lane.b32.xlu2 %v530_v62, %s4447_s4  ;;  %v675_v54 = vshrl.u32 %v338_v42, 16  ;;  %v633_v55 = vshll.u32 %v333_v43, 16  ;;  %v602_v56 = vsel %vm4547_vm2, %v597_v41, %v4647_v7  ;;  %v630_v57 = vor.u32 %v629_v44, %v625_v34  ;;  %v341_v62 = vld [vmem:[%s4536_s30 + $0xac] sm:$0xf] }
  0x4d   : > { %v662_v58 = vshrl.u32 %v337_v47, 16  ;;  %v665_v59 = vshll.u32 %v337_v47, 16  ;;  %v655_v60 = vrot.slane %v654_v45, 4  ;;  %v659_v61 = vrot.slane %v657_v46, 5 }
  0x4e   : > { %v688_v63 = vrot.slane %v686_v50, 4  ;;  %v691_v0 = vrot.slane %v689_v51, 5  ;;  %v645_v2 = vrot.slane %v644_v52, 4  ;;  %v673_v3 = vrot.slane %v671_v53, 5  ;;  %v865_v51 = vld [vmem:[%s4536_s30 + $0xc] sm:$0xe] }
  0x4f   : > { %v677_v4 = vrot.slane %v675_v54, 4  ;;  %v631_v6 = vrot.slane %v630_v57, 4  ;;  %v635_v7 = vrot.slane %v633_v55, 5  ;;  %v664_v9 = vrot.slane %v662_v58, 4  ;;  %v866_v53 = vld [vmem:[%s4536_s30 + $0x10] sm:$0xf] }
  0x50   : > { %v667_v10 = vrot.slane %v665_v59, 5  ;;  %v660_v11 = vsel %vm4547_vm2, %v655_v60, %v659_v61  ;;  %v695_v12 = vshll.u32 %v341_v62, 16  ;;  %v692_v13 = vor.u32 %v691_v0, %v688_v63  ;;  %v864_v54 = vld [vmem:[%s4536_s30 + $0x8] sm:$0x1]  ;;  %v862_v61 = vld [vmem:[%s4536_s30] sm:$0xe] }
  0x51   : > { %v681_v14 = vshll.u32 %v339_v1, 16  ;;  %v719_v15 = vshll.u32 %v344_v5, 16  ;;  %v723_v16 = vshrl.u32 %v344_v5, 16  ;;  %v650_v17 = vsel %vm4547_vm2, %v645_v2, %v4662_v31  ;;  %v345_v31 = vld [vmem:[%s4536_s30 + $0xbc] sm:$0x1] }
  0x52   : > { %v678_v18 = vor.u32 %v677_v4, %v673_v3  ;;  %v710_v19 = vshrl.u32 %v343_v8, 16  ;;  %v699_v21 = vshrl.u32 %v341_v62, 16  ;;  %v636_v22 = vsel %vm4547_vm2, %v631_v6, %v635_v7  ;;  %v869_v63 = vld [vmem:[%s4536_s30 + $0x1c] sm:$0xf]  ;;  %v237_v0 = vld [vmem:[%s4536_s30 + $0x18] sm:$0xf] }
  0x53   : > { %771 = vrot.lane.b32.xlu1 %v588_v20, %s4447_s4  ;;  %v713_v20 = vshll.u32 %v343_v8, 16  ;;  %v668_v23 = vor.u32 %v667_v10, %v664_v9  ;;  %v697_v26 = vrot.slane %v695_v12, 5  ;;  %v721_v27 = vrot.slane %v719_v15, 5  ;;  %270 = vst.msk [vmem:[#allocation2 + $0x10] sm:$0xf] %vm265_vm5, %v237_v0 }
  0x54   : > { %769 = vrot.lane.b32.xlu0 %v578_v24, %s4447_s4  ;;  %767 = vrot.lane.b32.xlu2 %v564_v29, %s4447_s4  ;;  %v693_v24 = vrot.slane %v692_v13, 4  ;;  %v725_v28 = vrot.slane %v723_v16, 4  ;;  %v679_v29 = vrot.slane %v678_v18, 4  ;;  %v683_v30 = vrot.slane %v681_v14, 5  ;;  %v235_v2 = vld [vmem:[%s4536_s30 + $0xc] sm:$0xf] }
  0x55   : > { %v712_v32 = vrot.slane %v710_v19, 4  ;;  %v715_v33 = vrot.slane %v713_v20, 5  ;;  %v669_v34 = vrot.slane %v668_v23, 4  ;;  %v701_v35 = vrot.slane %v699_v21, 4  ;;  %268 = vst.msk [vmem:[#allocation2 + $0x8] sm:$0xf] %vm265_vm5, %v235_v2 }
  0x56   : > { %v698_v37 = vsel %vm4547_vm2, %v693_v24, %v697_v26  ;;  %v726_v38 = vor.u32 %v725_v28, %v721_v27  ;;  %v729_v39 = vshll.u32 %v345_v31, 16  ;;  %v684_v40 = vsel %vm4547_vm2, %v679_v29, %v683_v30  ;;  %v870_v6 = vld [vmem:[%s4536_s30 + $0x20] sm:$0x1]  ;;  %v868_v9 = vld [vmem:[%s4536_s30 + $0x18] sm:$0xe] }
  0x57   : > { %v716_v41 = vor.u32 %v715_v33, %v712_v32  ;;  %v674_v42 = vsel %vm4547_vm2, %v669_v34, %v673_v3  ;;  %v702_v43 = vor.u32 %v701_v35, %v697_v26  ;;  %v705_v44 = vshll.u32 %v342_v36, 16  ;;  %v233_v3 = vld [vmem:[%s4536_s30] sm:$0xf]  ;;  %v867_v12 = vld [vmem:[%s4536_s30 + $0x14] sm:$0x1] }
  0x58   : > { %v727_v45 = vrot.slane %v726_v38, 4  ;;  %v731_v46 = vrot.slane %v729_v39, 5  ;;  %v3877_v58 = vrot.slane %v865_v51, 9  ;;  %v970_v59 = vrot.slane %v866_v53, 5  ;;  %266 = vst.msk [vmem:[#allocation2] sm:$0xf] %vm265_vm5, %v233_v3 }
  0x59   : > { %v717_v47 = vrot.slane %v716_v41, 4  ;;  %v707_v50 = vrot.slane %v705_v44, 5  ;;  %v966_v60 = vrot.slane %v864_v54, 5  ;;  %v3876_v4 = vrot.slane %v862_v61, 9  ;;  %v872_v15 = vld [vmem:[%s4536_s30 + $0x28] sm:$0xf] }
  0x5a   : > { %v732_v52 = vsel %vm4547_vm2, %v727_v45, %v731_v46  ;;  %v971_v5 = vsel %vm4722_vm6, %v3877_v58, %v970_v59  ;;  %v977_v7 = vrot.slane %v869_v63, 5  ;;  %v3878_v14 = vrot.slane %v868_v9, 9  ;;  %v238_v16 = vld [vmem:[%s4536_s30 + $0x1c] sm:$0xf]  ;;  %v234_v18 = vld [vmem:[%s4536_s30 + $0x4] sm:$0xf] }
  0x5b   : > { %777 = vrot.lane.b32.xlu1 %v626_v48, %s4447_s4  ;;  %v863_v48 = vld [vmem:[%s4536_s30 + $0x4] sm:$0xf]  ;;  %271 = vst.msk [vmem:[#allocation2 + $0x14] sm:$0xf] %vm265_vm5, %v238_v16  ;;  %v972_v19 = vrot.slane %v970_v59, 4  ;;  %v973_v20 = vrot.slane %v867_v12, 5 }
  0x5c   : > { %775 = vrot.lane.b32.xlu0 %v612_v49, %s4447_s4  ;;  %773 = vrot.lane.b32.xlu2 %v602_v56, %s4447_s4  ;;  %v703_v49 = vrot.slane %v702_v43, 4  ;;  %v963_v55 = vrot.slane %v863_v48, 5  ;;  %v722_v56 = vsel %vm4547_vm2, %v717_v47, %v721_v27  ;;  %v979_v13 = vrot.slane %v977_v7, 4  ;;  %267 = vst.msk [vmem:[#allocation2 + $0x4] sm:$0xf] %vm265_vm5, %v234_v18 }
  0x5d   : > { %v875_v23 = vld [vmem:[%s4536_s30 + $0x34] sm:$0xf]  ;;  %v984_v24 = vrot.slane %v872_v15, 5  ;;  %v978_v26 = vsel %vm4722_vm6, %v3878_v14, %v977_v7  ;;  %v873_v27 = vld [vmem:[%s4536_s30 + $0x2c] sm:$0x1]  ;;  %v974_v28 = vsel %vm4722_vm6, %v972_v19, %v973_v20 }
  0x5e   : > { %v708_v57 = vsel %vm4547_vm2, %v703_v49, %v707_v50  ;;  %v965_v62 = vrot.slane %v963_v55, 4  ;;  %v964_v10 = vsel %vm4722_vm6, %v3876_v4, %v963_v55  ;;  %v991_v30 = vrot.slane %v875_v23, 5  ;;  %v871_v31 = vld [vmem:[%s4536_s30 + $0x24] sm:$0xe]  ;;  %v878_v34 = vld [vmem:[%s4536_s30 + $0x40] sm:$0xf] }
  0x5f   : > { %v986_v32 = vrot.slane %v984_v24, 4  ;;  %v987_v33 = vrot.slane %v873_v27, 5  ;;  %v241_v35 = vld [vmem:[%s4536_s30 + $0x30] sm:$0xf]  ;;  %v240_v36 = vld [vmem:[%s4536_s30 + $0x28] sm:$0xf] }
  0x60   : > { %v967_v8 = vsel %vm4722_vm6, %v965_v62, %v966_v60  ;;  %274 = vst.msk [vmem:[#allocation2 + $0x20] sm:$0xf] %vm265_vm5, %v241_v35  ;;  %v3879_v38 = vrot.slane %v871_v31, 9  ;;  %v998_v41 = vrot.slane %v878_v34, 5  ;;  %v879_v43 = vld [vmem:[%s4536_s30 + $0x44] sm:$0x1] }
  0x61   : > { %273 = vst.msk [vmem:[#allocation2 + $0x1c] sm:$0xf] %vm265_vm5, %v240_v36  ;;  %v877_v44 = vld [vmem:[%s4536_s30 + $0x3c] sm:$0xe]  ;;  %v876_v46 = vld [vmem:[%s4536_s30 + $0x38] sm:$0x1] }
  0x62   : > { %v985_v45 = vsel %vm4722_vm6, %v3879_v38, %v984_v24  ;;  %v1000_v47 = vrot.slane %v998_v41, 4  ;;  %v1001_v48 = vrot.slane %v879_v43, 5  ;;  %v3881_v49 = vrot.slane %v877_v44, 9  ;;  %v244_v50 = vld [vmem:[%s4536_s30 + $0x40] sm:$0xf] }
  0x63   : > { %783 = vrot.lane.b32.xlu1 %v660_v11, %s4447_s4  ;;  %v980_v11 = vrot.slane %v870_v6, 5  ;;  %277 = vst.msk [vmem:[#allocation2 + $0x2c] sm:$0xf] %vm265_vm5, %v244_v50  ;;  %v243_v51 = vld [vmem:[%s4536_s30 + $0x3c] sm:$0xf]  ;;  %v993_v54 = vrot.slane %v991_v30, 4 }
  0x64   : > { %781 = vrot.lane.b32.xlu0 %v650_v17, %s4447_s4  ;;  %779 = vrot.lane.b32.xlu2 %v636_v22, %s4447_s4  ;;  %v236_v17 = vld [vmem:[%s4536_s30 + $0x10] sm:$0xf]  ;;  %v881_v53 = vld [vmem:[%s4536_s30 + $0x4c] sm:$0xf]  ;;  %v994_v55 = vrot.slane %v876_v46, 5  ;;  %v999_v58 = vsel %vm4722_vm6, %v3881_v49, %v998_v41 }
  0x65   : > { %269 = vst.msk [vmem:[#allocation2 + $0xc] sm:$0xf] %vm265_vm5, %v236_v17  ;;  %v981_v21 = vsel %vm4722_vm6, %v979_v13, %v980_v11  ;;  %v874_v22 = vld [vmem:[%s4536_s30 + $0x30] sm:$0xe]  ;;  %v883_v59 = vld [vmem:[%s4536_s30 + $0x54] sm:$0xe] }
  0x66   : > { %v3880_v29 = vrot.slane %v874_v22, 9  ;;  %276 = vst.msk [vmem:[#allocation2 + $0x28] sm:$0xf] %vm265_vm5, %v243_v51  ;;  %v884_v60 = vld [vmem:[%s4536_s30 + $0x58] sm:$0xf]  ;;  %v1005_v61 = vrot.slane %v881_v53, 5  ;;  %v995_v63 = vsel %vm4722_vm6, %v993_v54, %v994_v55 }
  0x67   : > { %v882_v62 = vld [vmem:[%s4536_s30 + $0x50] sm:$0x1]  ;;  %v880_v0 = vld [vmem:[%s4536_s30 + $0x48] sm:$0xe]  ;;  %v3883_v2 = vrot.slane %v883_v59, 9  ;;  %v1012_v3 = vrot.slane %v884_v60, 5 }
  0x68   : > { %v247_v4 = vld [vmem:[%s4536_s30 + $0x54] sm:$0xf]  ;;  %v1007_v6 = vrot.slane %v1005_v61, 4  ;;  %v1008_v7 = vrot.slane %v882_v62, 5  ;;  %v246_v11 = vld [vmem:[%s4536_s30 + $0x4c] sm:$0xf] }
  0x69   : > { %280 = vst.msk [vmem:[#allocation2 + $0x38] sm:$0xf] %vm265_vm5, %v247_v4  ;;  %v245_v13 = vld [vmem:[%s4536_s30 + $0x48] sm:$0xf]  ;;  %v1013_v14 = vsel %vm4722_vm6, %v3883_v2, %v1012_v3  ;;  %v886_v18 = vld [vmem:[%s4536_s30 + $0x60] sm:$0xe] }
  0x6a   : > { %v1009_v16 = vsel %vm4722_vm6, %v1007_v6, %v1008_v7  ;;  %v888_v17 = vld [vmem:[%s4536_s30 + $0x68] sm:$0x1]  ;;  %279 = vst.msk [vmem:[#allocation2 + $0x34] sm:$0xf] %vm265_vm5, %v246_v11  ;;  %v885_v20 = vld [vmem:[%s4536_s30 + $0x5c] sm:$0x1] }
  0x6b   : > { %789 = vrot.lane.b32.xlu1 %v698_v37, %s4447_s4  ;;  %v239_v37 = vld [vmem:[%s4536_s30 + $0x24] sm:$0xf]  ;;  %278 = vst.msk [vmem:[#allocation2 + $0x30] sm:$0xf] %vm265_vm5, %v245_v13  ;;  %v1022_v22 = vrot.slane %v888_v17, 5 }
  0x6c   : > { %787 = vrot.lane.b32.xlu0 %v684_v40, %s4447_s4  ;;  %785 = vrot.lane.b32.xlu2 %v674_v42, %s4447_s4  ;;  %272 = vst.msk [vmem:[#allocation2 + $0x18] sm:$0xf] %vm265_vm5, %v239_v37  ;;  %v992_v40 = vsel %vm4722_vm6, %v3880_v29, %v991_v30  ;;  %v988_v42 = vsel %vm4722_vm6, %v986_v32, %v987_v33  ;;  %v250_v23 = vld [vmem:[%s4536_s30 + $0x64] sm:$0xf]  ;;  %v890_v27 = vld [vmem:[%s4536_s30 + $0x70] sm:$0xf] }
  0x6d   : > { %283 = vst.msk [vmem:[#allocation2 + $0x44] sm:$0xf] %vm265_vm5, %v250_v23  ;;  %v1014_v29 = vrot.slane %v1012_v3, 4  ;;  %v1015_v30 = vrot.slane %v885_v20, 5  ;;  %v249_v31 = vld [vmem:[%s4536_s30 + $0x60] sm:$0xf] }
  0x6e   : > { %v248_v33 = vld [vmem:[%s4536_s30 + $0x58] sm:$0xf]  ;;  %v893_v37 = vld [vmem:[%s4536_s30 + $0x7c] sm:$0xf]  ;;  %v1026_v38 = vrot.slane %v890_v27, 5 }
  0x6f   : > { %v892_v35 = vld [vmem:[%s4536_s30 + $0x78] sm:$0xe]  ;;  %282 = vst.msk [vmem:[#allocation2 + $0x40] sm:$0xf] %vm265_vm5, %v249_v31  ;;  %v889_v41 = vld [vmem:[%s4536_s30 + $0x6c] sm:$0xe] }
  0x70   : > { %281 = vst.msk [vmem:[#allocation2 + $0x3c] sm:$0xf] %vm265_vm5, %v248_v33  ;;  %v1033_v43 = vrot.slane %v893_v37, 5  ;;  %v253_v44 = vld [vmem:[%s4536_s30 + $0x78] sm:$0xf]  ;;  %v1028_v46 = vrot.slane %v1026_v38, 4 }
  0x71   : > { %286 = vst.msk [vmem:[#allocation2 + $0x50] sm:$0xf] %vm265_vm5, %v253_v44  ;;  %v3885_v50 = vrot.slane %v889_v41, 9  ;;  %v252_v51 = vld [vmem:[%s4536_s30 + $0x70] sm:$0xf] }
  0x72   : > { %v251_v53 = vld [vmem:[%s4536_s30 + $0x6c] sm:$0xf]  ;;  %285 = vst.msk [vmem:[#allocation2 + $0x4c] sm:$0xf] %vm265_vm5, %v252_v51  ;;  %v894_v60 = vld [vmem:[%s4536_s30 + $0x80] sm:$0x1] }
  0x73   : > { %795 = vrot.lane.b32.xlu1 %v732_v52, %s4447_s4  ;;  %v242_v52 = vld [vmem:[%s4536_s30 + $0x34] sm:$0xf]  ;;  %v1027_v59 = vsel %vm4722_vm6, %v3885_v50, %v1026_v38  ;;  %284 = vst.msk [vmem:[#allocation2 + $0x48] sm:$0xf] %vm265_vm5, %v251_v53  ;;  %v1036_v6 = vrot.slane %v894_v60, 5 }
  0x74   : > { %793 = vrot.lane.b32.xlu0 %v722_v56, %s4447_s4  ;;  %791 = vrot.lane.b32.xlu2 %v708_v57, %s4447_s4  ;;  %275 = vst.msk [vmem:[#allocation2 + $0x24] sm:$0xf] %vm265_vm5, %v242_v52  ;;  %v1002_v57 = vsel %vm4722_vm6, %v1000_v47, %v1001_v48  ;;  %v896_v48 = vld [vmem:[%s4536_s30 + $0x88] sm:$0xf]  ;;  %v899_v3 = vld [vmem:[%s4536_s30 + $0x94] sm:$0xf] }
  0x75   : > { %v1040_v55 = vrot.slane %v896_v48, 5  ;;  %v255_v7 = vld [vmem:[%s4536_s30 + $0x84] sm:$0xf]  ;;  %v901_v11 = vld [vmem:[%s4536_s30 + $0x9c] sm:$0xe]  ;;  %s3874_s4 = sshll.u32 %s208_s28, 8 }
  0x76   : > { %v902_v13 = vld [vmem:[%s4536_s30 + $0xa0] sm:$0xf]  ;;  %288 = vst.msk [vmem:[#allocation2 + $0x58] sm:$0xf] %vm265_vm5, %v255_v7  ;;  %v898_v17 = vld [vmem:[%s4536_s30 + $0x90] sm:$0xe] }
  0x77   : > { %v259_v20 = vld [vmem:[%s4536_s30 + $0x9c] sm:$0xf]  ;;  %v3888_v27 = vrot.slane %v898_v17, 9  ;;  %v903_v37 = vld [vmem:[%s4536_s30 + $0xa4] sm:$0x1] }
  0x78   : > { %292 = vst.msk [vmem:[#allocation2 + $0x68] sm:$0xf] %vm265_vm5, %v259_v20  ;;  %v909_v53 = vld [vmem:[%s4536_s30 + $0xbc] sm:$0x1] }
  0x79   : > { %v3895_v7 = vld [vmem:[%s4536_s30 + $0x1c] sm:$0xf] }
  0x7a   : > { %v3900_v20 = vld [vmem:[%s4536_s30 + $0x3c] sm:$0xf] }
  0x7b   : > { %1077 = vrot.lane.b32.xlu1 %v971_v5, %s4448_s5 }
  0x7c   : > { %1075 = vrot.lane.b32.xlu0 %v967_v8, %s4448_s5  ;;  %1073 = vrot.lane.b32.xlu2 %v964_v10, %s4448_s5  ;;  %v887_v8 = vld [vmem:[%s4536_s30 + $0x64] sm:$0xf]  ;;  %v3882_v10 = vrot.slane %v880_v0, 9 }
  0x7d   : > { %v1019_v15 = vrot.slane %v887_v8, 5 }
  0x7e   : > { %v1006_v19 = vsel %vm4722_vm6, %v3882_v10, %v1005_v61  ;;  %v1042_v61 = vrot.slane %v1040_v55, 4 }
  0x83   : > { %1083 = vrot.lane.b32.xlu1 %v981_v21, %s4448_s5  ;;  %v1021_v21 = vrot.slane %v1019_v15, 4 }
  0x84   : > { %1081 = vrot.lane.b32.xlu0 %v978_v26, %s4448_s5  ;;  %1079 = vrot.lane.b32.xlu2 %v974_v28, %s4448_s5  ;;  %v3884_v26 = vrot.slane %v886_v18, 9  ;;  %v3889_v18 = vrot.slane %v901_v11, 9 }
  0x85   : > { %v1023_v34 = vsel %vm4722_vm6, %v1021_v21, %v1022_v22 }
  0x86   : > { %v742_v39 = vpop.permute.xlu2 %741  ;;  %v1020_v36 = vsel %vm4722_vm6, %v3884_v26, %v1019_v15  ;;  %v900_v15 = vld [vmem:[%s4536_s30 + $0x98] sm:$0x1] }
  0x87   : > { %834 = vst.msk [vmem:[#allocation2 + $0x10] sm:$0xf] %vm829_vm7, %v742_v39  ;;  %v891_v39 = vld [vmem:[%s4536_s30 + $0x74] sm:$0x1]  ;;  %v1050_v23 = vrot.slane %v900_v15, 5 }
  0x88   : > { %v1029_v47 = vrot.slane %v891_v39, 5  ;;  %v3896_v15 = vld [vmem:[%s4536_s30 + $0x24] sm:$0xf] }
  0x8b   : > { %1089 = vrot.lane.b32.xlu1 %v992_v40, %s4448_s5  ;;  %v1016_v40 = vsel %vm4722_vm6, %v1014_v29, %v1015_v30  ;;  %v257_v30 = vld [vmem:[%s4536_s30 + $0x90] sm:$0xf] }
  0x8c   : > { %1087 = vrot.lane.b32.xlu0 %v988_v42, %s4448_s5  ;;  %1085 = vrot.lane.b32.xlu2 %v985_v45, %s4448_s5  ;;  %v3886_v42 = vrot.slane %v892_v35, 9  ;;  %v904_v35 = vld [vmem:[%s4536_s30 + $0xa8] sm:$0xe]  ;;  %290 = vst.msk [vmem:[#allocation2 + $0x60] sm:$0xf] %vm265_vm5, %v257_v30 }
  0x8e   : > { %v744_v56 = vpop.permute.xlu2 %743  ;;  %v1034_v54 = vsel %vm4722_vm6, %v3886_v42, %v1033_v43  ;;  %v3890_v42 = vrot.slane %v904_v35, 9 }
  0x8f   : > { %835 = vst.msk [vmem:[#allocation2 + $0x14] sm:$0xf] %vm829_vm7, %v744_v56  ;;  %v1030_v56 = vsel %vm4722_vm6, %v1028_v46, %v1029_v47  ;;  %v1057_v46 = vrot.slane %v903_v37, 5  ;;  %v261_v47 = vld [vmem:[%s4536_s30 + $0xa8] sm:$0xf] }
  0x90   : > { %294 = vst.msk [vmem:[#allocation2 + $0x70] sm:$0xf] %vm265_vm5, %v261_v47 }
  0x93   : > { %1095 = vrot.lane.b32.xlu1 %v1002_v57, %s4448_s5  ;;  %v897_v57 = vld [vmem:[%s4536_s30 + $0x8c] sm:$0x1] }
  0x94   : > { %1093 = vrot.lane.b32.xlu0 %v999_v58, %s4448_s5  ;;  %1091 = vrot.lane.b32.xlu2 %v995_v63, %s4448_s5  ;;  %v895_v58 = vld [vmem:[%s4536_s30 + $0x84] sm:$0xe]  ;;  %v1043_v62 = vrot.slane %v897_v57, 5  ;;  %v256_v63 = vld [vmem:[%s4536_s30 + $0x88] sm:$0xf] }
  0x95   : > { %v738_v5 = vpop.permute.xlu1 %737  ;;  %v3887_v2 = vrot.slane %v895_v58, 9  ;;  %289 = vst.msk [vmem:[#allocation2 + $0x5c] sm:$0xf] %vm265_vm5, %v256_v63  ;;  %v1071_v58 = vrot.slane %v909_v53, 5  ;;  %v263_v63 = vld [vmem:[%s4536_s30 + $0xb4] sm:$0xf] }
  0x96   : > { %832 = vst.msk [vmem:[#allocation2 + $0x8] sm:$0xf] %vm829_vm7, %v738_v5  ;;  %v734_v9 = vpop.permute.xlu0 %733  ;;  %v750_v12 = vpop.permute.xlu2 %749  ;;  %v1035_v5 = vrot.slane %v1033_v43, 4  ;;  %v1044_v10 = vsel %vm4722_vm6, %v1042_v61, %v1043_v62  ;;  %v908_v43 = vld [vmem:[%s4536_s30 + $0xb8] sm:$0xf] }
  0x97   : > { %830 = vst.msk [vmem:[#allocation2] sm:$0xf] %vm829_vm7, %v734_v9  ;;  %v254_v9 = vld [vmem:[%s4536_s30 + $0x7c] sm:$0xf]  ;;  %v264_v61 = vld [vmem:[%s4536_s30 + $0xb8] sm:$0xf] }
  0x98   : > { %838 = vst.msk [vmem:[#allocation2 + $0x20] sm:$0xf] %vm829_vm7, %v750_v12  ;;  %v1041_v12 = vsel %vm4722_vm6, %v3887_v2, %v1040_v55  ;;  %v907_v55 = vld [vmem:[%s4536_s30 + $0xb4] sm:$0xe]  ;;  %v3925_v53 = vld [vmem:[%s4536_s30 + $0x10] sm:$0xf] }
  0x99   : > { %287 = vst.msk [vmem:[#allocation2 + $0x54] sm:$0xf] %vm265_vm5, %v254_v9  ;;  %v3891_v60 = vrot.slane %v907_v55, 9  ;;  %v3893_v9 = vld [vmem:[%s4536_s30 + $0x10] sm:$0xf] }
  0x9a   : > { %297 = vst.msk [vmem:[#allocation2 + $0x7c] sm:$0xf] %vm265_vm5, %v264_v61  ;;  %v3918_v61 = vld [vmem:[%s4536_s30 + $0xa8] sm:$0xf] }
  0x9b   : > { %1101 = vrot.lane.b32.xlu1 %v1013_v14, %s4448_s5  ;;  %v1047_v14 = vrot.slane %v899_v3, 5  ;;  %296 = vst.msk [vmem:[#allocation2 + $0x78] sm:$0xf] %vm265_vm5, %v263_v63 }
  0x9c   : > { %1099 = vrot.lane.b32.xlu0 %v1009_v16, %s4448_s5  ;;  %1097 = vrot.lane.b32.xlu2 %v1006_v19, %s4448_s5  ;;  %v1037_v16 = vsel %vm4722_vm6, %v1035_v5, %v1036_v6  ;;  %v1054_v19 = vrot.slane %v902_v13, 5  ;;  %v3898_v13 = vld [vmem:[%s4536_s30 + $0x30] sm:$0xf] }
  0x9d   : > { %v740_v24 = vpop.permute.xlu1 %739  ;;  %v1049_v22 = vrot.slane %v1047_v14, 4 }
  0x9e   : > { %833 = vst.msk [vmem:[#allocation2 + $0xc] sm:$0xf] %vm829_vm7, %v740_v24  ;;  %v736_v28 = vpop.permute.xlu0 %735  ;;  %v756_v32 = vpop.permute.xlu2 %755  ;;  %v905_v24 = vld [vmem:[%s4536_s30 + $0xac] sm:$0xf]  ;;  %v1055_v31 = vsel %vm4722_vm6, %v3889_v18, %v1054_v19 }
  0x9f   : > { %831 = vst.msk [vmem:[#allocation2 + $0x4] sm:$0xf] %vm829_vm7, %v736_v28  ;;  %v258_v28 = vld [vmem:[%s4536_s30 + $0x94] sm:$0xf]  ;;  %v1051_v33 = vsel %vm4722_vm6, %v1049_v22, %v1050_v23 }
  0xa0   : > { %841 = vst.msk [vmem:[#allocation2 + $0x2c] sm:$0xf] %vm829_vm7, %v756_v32  ;;  %v1061_v32 = vrot.slane %v905_v24, 5 }
  0xa1   : > { %291 = vst.msk [vmem:[#allocation2 + $0x64] sm:$0xf] %vm265_vm5, %v258_v28  ;;  %v3902_v28 = vld [vmem:[%s4536_s30 + $0x48] sm:$0xf] }
  0xa2   : > { %v1063_v38 = vrot.slane %v1061_v32, 4  ;;  %v1062_v51 = vsel %vm4722_vm6, %v3890_v42, %v1061_v32  ;;  %v3907_v32 = vld [vmem:[%s4536_s30 + $0x64] sm:$0xf] }
  0xa3   : > { %1107 = vrot.lane.b32.xlu1 %v1023_v34, %s4448_s5  ;;  %v906_v34 = vld [vmem:[%s4536_s30 + $0xb0] sm:$0x1] }
  0xa4   : > { %1105 = vrot.lane.b32.xlu0 %v1020_v36, %s4448_s5  ;;  %1103 = vrot.lane.b32.xlu2 %v1016_v40, %s4448_s5  ;;  %v1048_v36 = vsel %vm4722_vm6, %v3888_v27, %v1047_v14  ;;  %v1064_v39 = vrot.slane %v906_v34, 5  ;;  %v262_v40 = vld [vmem:[%s4536_s30 + $0xac] sm:$0xf]  ;;  %v3897_v14 = vld [vmem:[%s4536_s30 + $0x28] sm:$0xf] }
  0xa5   : > { %v748_v45 = vpop.permute.xlu1 %747  ;;  %295 = vst.msk [vmem:[#allocation2 + $0x74] sm:$0xf] %vm265_vm5, %v262_v40  ;;  %v3903_v27 = vld [vmem:[%s4536_s30 + $0x4c] sm:$0xf]  ;;  %v3905_v34 = vld [vmem:[%s4536_s30 + $0x58] sm:$0xf] }
  0xa6   : > { %837 = vst.msk [vmem:[#allocation2 + $0x1c] sm:$0xf] %vm829_vm7, %v748_v45  ;;  %v746_v49 = vpop.permute.xlu0 %745  ;;  %v762_v52 = vpop.permute.xlu2 %761  ;;  %v1056_v45 = vrot.slane %v1054_v19, 4  ;;  %v1065_v50 = vsel %vm4722_vm6, %v1063_v38, %v1064_v39  ;;  %v3901_v19 = vld [vmem:[%s4536_s30 + $0x40] sm:$0xf] }
  0xa7   : > { %836 = vst.msk [vmem:[#allocation2 + $0x18] sm:$0xf] %vm829_vm7, %v746_v49  ;;  %v260_v49 = vld [vmem:[%s4536_s30 + $0xa0] sm:$0xf]  ;;  %v3910_v38 = vld [vmem:[%s4536_s30 + $0x78] sm:$0xf] }
  0xa8   : > { %844 = vst.msk [vmem:[#allocation2 + $0x38] sm:$0xf] %vm829_vm7, %v762_v52  ;;  %v1068_v52 = vrot.slane %v908_v43, 5  ;;  %v3909_v39 = vld [vmem:[%s4536_s30 + $0x70] sm:$0xf] }
  0xa9   : > { %293 = vst.msk [vmem:[#allocation2 + $0x6c] sm:$0xf] %vm265_vm5, %v260_v49  ;;  %v3908_v40 = vld [vmem:[%s4536_s30 + $0x6c] sm:$0xf] }
  0xaa   : > { %v1070_v57 = vrot.slane %v1068_v52, 4  ;;  %v1069_v3 = vsel %vm4722_vm6, %v3891_v60, %v1068_v52  ;;  %v3914_v52 = vld [vmem:[%s4536_s30 + $0x90] sm:$0xf]  ;;  %v3919_v60 = vld [vmem:[%s4536_s30 + $0xac] sm:$0xf] }
  0xab   : > { %1113 = vrot.lane.b32.xlu1 %v1034_v54, %s4448_s5  ;;  %v1058_v54 = vsel %vm4722_vm6, %v1056_v45, %v1057_v46  ;;  %v3912_v45 = vld [vmem:[%s4536_s30 + $0x84] sm:$0xf]  ;;  %v3911_v46 = vld [vmem:[%s4536_s30 + $0x7c] sm:$0xf] }
  0xac   : > { %1111 = vrot.lane.b32.xlu0 %v1030_v56, %s4448_s5  ;;  %1109 = vrot.lane.b32.xlu2 %v1027_v59, %s4448_s5  ;;  %v1072_v2 = vsel %vm4722_vm6, %v1070_v57, %v1071_v58  ;;  %v1457_v58 = vshll.u32 %v3925_v53, 16 }
  0xad   : > { %v754_v0 = vpop.permute.xlu1 %753 }
  0xae   : > { %840 = vst.msk [vmem:[#allocation2 + $0x28] sm:$0xf] %vm829_vm7, %v754_v0  ;;  %v752_v4 = vpop.permute.xlu0 %751  ;;  %v768_v8 = vpop.permute.xlu2 %767  ;;  %v3892_v0 = vld [vmem:[%s4536_s30 + $0xc] sm:$0xf] }
  0xaf   : > { %839 = vst.msk [vmem:[#allocation2 + $0x24] sm:$0xf] %vm829_vm7, %v752_v4 }
  0xb0   : > { %847 = vst.msk [vmem:[#allocation2 + $0x44] sm:$0xf] %vm829_vm7, %v768_v8  ;;  %v3894_v8 = vld [vmem:[%s4536_s30 + $0x18] sm:$0xf] }
  0xb3   : > { %1119 = vrot.lane.b32.xlu1 %v1044_v10, %s4448_s5 }
  0xb4   : > { %1117 = vrot.lane.b32.xlu0 %v1041_v12, %s4448_s5  ;;  %1115 = vrot.lane.b32.xlu2 %v1037_v16, %s4448_s5 }
  0xb5   : > { %v760_v21 = vpop.permute.xlu1 %759 }
  0xb6   : > { %843 = vst.msk [vmem:[#allocation2 + $0x34] sm:$0xf] %vm829_vm7, %v760_v21  ;;  %v758_v26 = vpop.permute.xlu0 %757  ;;  %v774_v29 = vpop.permute.xlu2 %773  ;;  %v3899_v21 = vld [vmem:[%s4536_s30 + $0x34] sm:$0xf] }
  0xb7   : > { %842 = vst.msk [vmem:[#allocation2 + $0x30] sm:$0xf] %vm829_vm7, %v758_v26  ;;  %v3904_v26 = vld [vmem:[%s4536_s30 + $0x54] sm:$0xf] }
  0xb8   : > { %850 = vst.msk [vmem:[#allocation2 + $0x50] sm:$0xf] %vm829_vm7, %v774_v29 }
  0xbb   : > { %1125 = vrot.lane.b32.xlu1 %v1055_v31, %s4448_s5 }
  0xbc   : > { %1123 = vrot.lane.b32.xlu0 %v1051_v33, %s4448_s5  ;;  %1121 = vrot.lane.b32.xlu2 %v1048_v36, %s4448_s5  ;;  %v3906_v33 = vld [vmem:[%s4536_s30 + $0x60] sm:$0xf] }
  0xbd   : > { %v766_v41 = vpop.permute.xlu1 %765 }
  0xbe   : > { %846 = vst.msk [vmem:[#allocation2 + $0x40] sm:$0xf] %vm829_vm7, %v766_v41  ;;  %v764_v44 = vpop.permute.xlu0 %763  ;;  %v780_v48 = vpop.permute.xlu2 %779 }
  0xbf   : > { %845 = vst.msk [vmem:[#allocation2 + $0x3c] sm:$0xf] %vm829_vm7, %v764_v44  ;;  %v3913_v44 = vld [vmem:[%s4536_s30 + $0x88] sm:$0xf] }
  0xc0   : > { %853 = vst.msk [vmem:[#allocation2 + $0x5c] sm:$0xf] %vm829_vm7, %v780_v48 }
  0xc3   : > { %1131 = vrot.lane.b32.xlu1 %v1065_v50, %s4448_s5  ;;  %v3916_v50 = vld [vmem:[%s4536_s30 + $0x9c] sm:$0xf] }
  0xc4   : > { %1129 = vrot.lane.b32.xlu0 %v1062_v51, %s4448_s5  ;;  %1127 = vrot.lane.b32.xlu2 %v1058_v54, %s4448_s5  ;;  %v3915_v51 = vld [vmem:[%s4536_s30 + $0x94] sm:$0xf] }
  0xc5   : > { %v772_v56 = vpop.permute.xlu1 %771 }
  0xc6   : > { %849 = vst.msk [vmem:[#allocation2 + $0x4c] sm:$0xf] %vm829_vm7, %v772_v56  ;;  %v770_v59 = vpop.permute.xlu0 %769  ;;  %v786_v62 = vpop.permute.xlu2 %785  ;;  %v3924_v56 = vld [vmem:[%s4536_s30 + $0xc] sm:$0xf] }
  0xc7   : > { %848 = vst.msk [vmem:[#allocation2 + $0x48] sm:$0xf] %vm829_vm7, %v770_v59  ;;  %v1461_v59 = vshrl.u32 %v3925_v53, 16  ;;  %v1451_v63 = vshll.u32 %v3924_v56, 16  ;;  %v3923_v53 = vld [vmem:[%s4536_s30 + $0xc4] sm:$0xf] }
  0xc8   : > { %856 = vst.msk [vmem:[#allocation2 + $0x68] sm:$0xf] %vm829_vm7, %v786_v62  ;;  %v1448_v62 = vshrl.u32 %v3924_v56, 16 }
  0xcb   : > { %1270 = vrot.lane.b32.xlu1 %v3892_v0, %s4449_s6  ;;  %v3917_v0 = vld [vmem:[%s4536_s30 + $0xa0] sm:$0xf] }
  0xcc   : > { %1135 = vrot.lane.b32.xlu0 %v1072_v2, %s4448_s5  ;;  %1133 = vrot.lane.b32.xlu2 %v1069_v3, %s4448_s5  ;;  %v5034_v2 = vrot.slane %v1457_v58, 5  ;;  %v1463_v3 = vrot.slane %v1461_v59, 4 }
  0xcd   : > { %v778_v4 = vpop.permute.xlu1 %777 }
  0xce   : > { %852 = vst.msk [vmem:[#allocation2 + $0x58] sm:$0xf] %vm829_vm7, %v778_v4  ;;  %v776_v5 = vpop.permute.xlu0 %775  ;;  %v792_v6 = vpop.permute.xlu2 %791  ;;  %v3926_v4 = vld [vmem:[%s4536_s30 + $0x14] sm:$0x1] }
  0xcf   : > { %851 = vst.msk [vmem:[#allocation2 + $0x54] sm:$0xf] %vm829_vm7, %v776_v5 }
  0xd0   : > { %859 = vst.msk [vmem:[#allocation2 + $0x74] sm:$0xf] %vm829_vm7, %v792_v6  ;;  %v1450_v6 = vrot.slane %v1448_v62, 4  ;;  %v3939_v62 = vld [vmem:[%s4536_s30 + $0x48] sm:$0xf] }
  0xd3   : > { %1276 = vrot.lane.b32.xlu1 %v3895_v7, %s4449_s6  ;;  %v1453_v7 = vrot.slane %v1451_v63, 5 }
  0xd4   : > { %1274 = vrot.lane.b32.xlu0 %v3894_v8, %s4449_s6  ;;  %1272 = vrot.lane.b32.xlu2 %v3893_v9, %s4449_s6  ;;  %v3930_v8 = vld [vmem:[%s4536_s30 + $0x24] sm:$0xf] }
  0xd5   : > { %v784_v10 = vpop.permute.xlu1 %783 }
  0xd6   : > { %855 = vst.msk [vmem:[#allocation2 + $0x64] sm:$0xf] %vm829_vm7, %v784_v10  ;;  %v782_v11 = vpop.permute.xlu0 %781  ;;  %v1074_v12 = vpop.permute.xlu2 %1073  ;;  %v3928_v10 = vld [vmem:[%s4536_s30 + $0x1c] sm:$0xf] }
  0xd7   : > { %854 = vst.msk [vmem:[#allocation2 + $0x60] sm:$0xf] %vm829_vm7, %v782_v11  ;;  %v1464_v11 = vor.u32 %v1463_v3, %v5034_v2  ;;  %v3937_v3 = vld [vmem:[%s4536_s30 + $0x40] sm:$0xf] }
  0xd8   : > { %1170 = vst.msk [vmem:[#allocation2] sm:$0xf] %vm1169_vm8, %v1074_v12  ;;  %v1467_v12 = vshll.u32 %v3926_v4, 16 }
  0xdb   : > { %1282 = vrot.lane.b32.xlu1 %v3898_v13, %s4449_s6 }
  0xdc   : > { %1280 = vrot.lane.b32.xlu0 %v3897_v14, %s4449_s6  ;;  %1278 = vrot.lane.b32.xlu2 %v3896_v15, %s4449_s6  ;;  %v3927_v14 = vld [vmem:[%s4536_s30 + $0x18] sm:$0xf]  ;;  %v3922_v15 = vld [vmem:[%s4536_s30 + $0xc0] sm:$0xf] }
  0xdd   : > { %v790_v16 = vpop.permute.xlu1 %789 }
  0xde   : > { %858 = vst.msk [vmem:[#allocation2 + $0x70] sm:$0xf] %vm829_vm7, %v790_v16  ;;  %v788_v17 = vpop.permute.xlu0 %787  ;;  %v1080_v18 = vpop.permute.xlu2 %1079  ;;  %v1496_v16 = vshrl.u32 %v3930_v8, 16 }
  0xdf   : > { %857 = vst.msk [vmem:[#allocation2 + $0x6c] sm:$0xf] %vm829_vm7, %v788_v17  ;;  %v1499_v17 = vshll.u32 %v3930_v8, 16 }
  0xe0   : > { %1173 = vst.msk [vmem:[#allocation2 + $0xc] sm:$0xf] %vm1169_vm8, %v1080_v18  ;;  %v3921_v18 = vld [vmem:[%s4536_s30 + $0xb8] sm:$0xf] }
  0xe3   : > { %1288 = vrot.lane.b32.xlu1 %v3901_v19, %s4449_s6  ;;  %v1454_v19 = vor.u32 %v1453_v7, %v1450_v6  ;;  %v3936_v7 = vld [vmem:[%s4536_s30 + $0x3c] sm:$0xf] }
  0xe4   : > { %1286 = vrot.lane.b32.xlu0 %v3900_v20, %s4449_s6  ;;  %1284 = vrot.lane.b32.xlu2 %v3899_v21, %s4449_s6  ;;  %v1481_v20 = vshll.u32 %v3928_v10, 16  ;;  %v1485_v21 = vshrl.u32 %v3928_v10, 16 }
  0xe5   : > { %v796_v22 = vpop.permute.xlu1 %795 }
  0xe6   : > { %861 = vst.msk [vmem:[#allocation2 + $0x7c] sm:$0xf] %vm829_vm7, %v796_v22  ;;  %v794_v23 = vpop.permute.xlu0 %793  ;;  %v1086_v24 = vpop.permute.xlu2 %1085  ;;  %v3920_v22 = vld [vmem:[%s4536_s30 + $0xb4] sm:$0xf] }
  0xe7   : > { %860 = vst.msk [vmem:[#allocation2 + $0x78] sm:$0xf] %vm829_vm7, %v794_v23  ;;  %v1472_v23 = vshrl.u32 %v3927_v14, 16 }
  0xe8   : > { %1176 = vst.msk [vmem:[#allocation2 + $0x18] sm:$0xf] %vm1169_vm8, %v1086_v24  ;;  %v1475_v24 = vshll.u32 %v3927_v14, 16 }
  0xeb   : > { %1294 = vrot.lane.b32.xlu1 %v3904_v26, %s4449_s6  ;;  %v1465_v26 = vrot.slane %v1464_v11, 4 }
  0xec   : > { %1292 = vrot.lane.b32.xlu0 %v3903_v27, %s4449_s6  ;;  %1290 = vrot.lane.b32.xlu2 %v3902_v28, %s4449_s6  ;;  %v1469_v27 = vrot.slane %v1467_v12, 5  ;;  %v1498_v28 = vrot.slane %v1496_v16, 4  ;;  %v1568_v12 = vshrl.u32 %v3939_v62, 16  ;;  %v1553_v16 = vshll.u32 %v3937_v3, 16 }
  0xed   : > { %v1078_v29 = vpop.permute.xlu1 %1077 }
  0xee   : > { %1172 = vst.msk [vmem:[#allocation2 + $0x8] sm:$0xf] %vm1169_vm8, %v1078_v29  ;;  %v1076_v30 = vpop.permute.xlu0 %1075  ;;  %v1092_v31 = vpop.permute.xlu2 %1091  ;;  %v1501_v29 = vrot.slane %v1499_v17, 5  ;;  %v1557_v17 = vshrl.u32 %v3937_v3, 16 }
  0xef   : > { %1171 = vst.msk [vmem:[#allocation2 + $0x4] sm:$0xf] %vm1169_vm8, %v1076_v30  ;;  %v3934_v30 = vld [vmem:[%s4536_s30 + $0x34] sm:$0xf] }
  0xf0   : > { %1179 = vst.msk [vmem:[#allocation2 + $0x24] sm:$0xf] %vm1169_vm8, %v1092_v31  ;;  %v3933_v31 = vld [vmem:[%s4536_s30 + $0x30] sm:$0xf] }
  0xf3   : > { %1300 = vrot.lane.b32.xlu1 %v3907_v32, %s4449_s6 }
  0xf4   : > { %1298 = vrot.lane.b32.xlu0 %v3906_v33, %s4449_s6  ;;  %1296 = vrot.lane.b32.xlu2 %v3905_v34, %s4449_s6  ;;  %v1455_v33 = vrot.slane %v1454_v19, 4  ;;  %v3931_v34 = vld [vmem:[%s4536_s30 + $0x28] sm:$0xf]  ;;  %v3943_v19 = vld [vmem:[%s4536_s30 + $0x58] sm:$0xf] }
  0xf5   : > { %v1084_v35 = vpop.permute.xlu1 %1083 }
  0xf6   : > { %1175 = vst.msk [vmem:[#allocation2 + $0x14] sm:$0xf] %vm1169_vm8, %v1084_v35  ;;  %v1082_v36 = vpop.permute.xlu0 %1081  ;;  %v1098_v37 = vpop.permute.xlu2 %1097  ;;  %v5055_v35 = vrot.slane %v1481_v20, 5  ;;  %v1544_v20 = vshrl.u32 %v3936_v7, 16 }
  0xf7   : > { %1174 = vst.msk [vmem:[#allocation2 + $0x10] sm:$0xf] %vm1169_vm8, %v1082_v36  ;;  %v1487_v36 = vrot.slane %v1485_v21, 4  ;;  %v1547_v21 = vshll.u32 %v3936_v7, 16  ;;  %v3946_v7 = vld [vmem:[%s4536_s30 + $0x64] sm:$0xf] }
  0xf8   : > { %1182 = vst.msk [vmem:[#allocation2 + $0x30] sm:$0xf] %vm1169_vm8, %v1098_v37 }
  0xfb   : > { %1306 = vrot.lane.b32.xlu1 %v3910_v38, %s4449_s6  ;;  %v3929_v38 = vld [vmem:[%s4536_s30 + $0x20] sm:$0x1] }
  0xfc   : > { %1304 = vrot.lane.b32.xlu0 %v3909_v39, %s4449_s6  ;;  %1302 = vrot.lane.b32.xlu2 %v3908_v40, %s4449_s6  ;;  %v1474_v39 = vrot.slane %v1472_v23, 4  ;;  %v1477_v40 = vrot.slane %v1475_v24, 5 }
  0xfd   : > { %v1090_v41 = vpop.permute.xlu1 %1089 }
  0xfe   : > { %1178 = vst.msk [vmem:[#allocation2 + $0x20] sm:$0xf] %vm1169_vm8, %v1090_v41  ;;  %v1088_v42 = vpop.permute.xlu0 %1087  ;;  %v1104_v43 = vpop.permute.xlu2 %1103 }
  0xff   : > { %1177 = vst.msk [vmem:[#allocation2 + $0x1c] sm:$0xf] %vm1169_vm8, %v1088_v42  ;;  %v1529_v42 = vshll.u32 %v3934_v30, 16 }
 0x100   : > { %1185 = vst.msk [vmem:[#allocation2 + $0x3c] sm:$0xf] %vm1169_vm8, %v1104_v43  ;;  %v1533_v43 = vshrl.u32 %v3934_v30, 16  ;;  %v1570_v30 = vrot.slane %v1568_v12, 4 }
 0x102   : > { %v1535_v56 = vrot.slane %v1533_v43, 4 }
 0x103   : > { %1312 = vrot.lane.b32.xlu1 %v3913_v44, %s4449_s6  ;;  %v1520_v44 = vshrl.u32 %v3933_v31, 16 }
 0x104   : > { %1310 = vrot.lane.b32.xlu0 %v3912_v45, %s4449_s6  ;;  %1308 = vrot.lane.b32.xlu2 %v3911_v46, %s4449_s6  ;;  %v1523_v45 = vshll.u32 %v3933_v31, 16  ;;  %v1470_v46 = vsel %vm4547_vm2, %v1465_v26, %v1469_v27 }
 0x105   : > { %v1096_v47 = vpop.permute.xlu1 %1095 }
 0x106   : > { %1181 = vst.msk [vmem:[#allocation2 + $0x2c] sm:$0xf] %vm1169_vm8, %v1096_v47  ;;  %v1094_v48 = vpop.permute.xlu0 %1093  ;;  %v1110_v49 = vpop.permute.xlu2 %1109  ;;  %v1502_v47 = vor.u32 %v1501_v29, %v1498_v28  ;;  %v1525_v58 = vrot.slane %v1523_v45, 5  ;;  %v3940_v29 = vld [vmem:[%s4536_s30 + $0x4c] sm:$0xf] }
 0x107   : > { %1180 = vst.msk [vmem:[#allocation2 + $0x28] sm:$0xf] %vm1169_vm8, %v1094_v48  ;;  %v1505_v48 = vshll.u32 %v3931_v34, 16 }
 0x108   : > { %1188 = vst.msk [vmem:[#allocation2 + $0x48] sm:$0xf] %vm1169_vm8, %v1110_v49  ;;  %v1460_v49 = vsel %vm4547_vm2, %v1455_v33, %v5034_v2  ;;  %v1503_v59 = vrot.slane %v1502_v47, 4  ;;  %v5094_v33 = vrot.slane %v1553_v16, 5 }
 0x10b   : > { %1318 = vrot.lane.b32.xlu1 %v3916_v50, %s4449_s6  ;;  %v1488_v50 = vor.u32 %v1487_v36, %v5055_v35  ;;  %v1601_v36 = vshll.u32 %v3943_v19, 16 }
 0x10c   : > { %1316 = vrot.lane.b32.xlu0 %v3915_v51, %s4449_s6  ;;  %1314 = vrot.lane.b32.xlu2 %v3914_v52, %s4449_s6  ;;  %v1491_v51 = vshll.u32 %v3929_v38, 16  ;;  %v1509_v52 = vshrl.u32 %v3931_v34, 16  ;;  %v1559_v34 = vrot.slane %v1557_v17, 4  ;;  %v3942_v38 = vld [vmem:[%s4536_s30 + $0x54] sm:$0xf]  ;;  %v1625_v17 = vshll.u32 %v3946_v7, 16 }
 0x10d   : > { %v1102_v54 = vpop.permute.xlu1 %1101 }
 0x10e   : > { %1184 = vst.msk [vmem:[#allocation2 + $0x38] sm:$0xf] %vm1169_vm8, %v1102_v54  ;;  %v1100_v55 = vpop.permute.xlu0 %1099  ;;  %v1116_v57 = vpop.permute.xlu2 %1115  ;;  %v1478_v54 = vor.u32 %v1477_v40, %v1474_v39  ;;  %v1493_v2 = vrot.slane %v1491_v51, 5  ;;  %v1511_v6 = vrot.slane %v1509_v52, 4  ;;  %v1546_v39 = vrot.slane %v1544_v20, 4 }
 0x10f   : > { %1183 = vst.msk [vmem:[#allocation2 + $0x34] sm:$0xf] %vm1169_vm8, %v1100_v55  ;;  %v5069_v55 = vrot.slane %v1529_v42, 5  ;;  %v1549_v40 = vrot.slane %v1547_v21, 5  ;;  %v1592_v51 = vshrl.u32 %v3942_v38, 16  ;;  %v5107_v52 = vrot.slane %v1601_v36, 5 }
 0x110   : > { %1191 = vst.msk [vmem:[#allocation2 + $0x54] sm:$0xf] %vm1169_vm8, %v1116_v57  ;;  %v1522_v57 = vrot.slane %v1520_v44, 4 }
 0x111   : > { %v1536_v8 = vor.u32 %v1535_v56, %v5069_v55  ;;  %v1550_v56 = vor.u32 %v1549_v40, %v1546_v39 }
 0x112   : > { %v1526_v10 = vor.u32 %v1525_v58, %v1522_v57  ;;  %v1581_v57 = vshrl.u32 %v3940_v29, 16 }
 0x113   : > { %1324 = vrot.lane.b32.xlu1 %v3919_v60, %s4449_s6  ;;  %v1507_v60 = vrot.slane %v1505_v48, 5  ;;  %v1537_v26 = vrot.slane %v1536_v8, 4 }
 0x114   : > { %1322 = vrot.lane.b32.xlu0 %v3918_v61, %s4449_s6  ;;  %1320 = vrot.lane.b32.xlu2 %v3917_v0, %s4449_s6  ;;  %v3935_v61 = vld [vmem:[%s4536_s30 + $0x38] sm:$0x1]  ;;  %v1489_v0 = vrot.slane %v1488_v50, 4  ;;  %v1527_v28 = vrot.slane %v1526_v10, 4 }
 0x115   : > { %v1108_v5 = vpop.permute.xlu1 %1107  ;;  %v1508_v14 = vsel %vm4547_vm2, %v1503_v59, %v1507_v60  ;;  %v1512_v23 = vor.u32 %v1511_v6, %v1507_v60  ;;  %v3948_v60 = vld [vmem:[%s4536_s30 + $0x6c] sm:$0xf]  ;;  %v1551_v6 = vrot.slane %v1550_v56, 4 }
 0x116   : > { %1187 = vst.msk [vmem:[#allocation2 + $0x44] sm:$0xf] %vm1169_vm8, %v1108_v5  ;;  %v1106_v9 = vpop.permute.xlu0 %1105  ;;  %v1122_v13 = vpop.permute.xlu2 %1121  ;;  %v1479_v5 = vrot.slane %v1478_v54, 4  ;;  %v1532_v45 = vsel %vm4547_vm2, %v1527_v28, %v5069_v55  ;;  %v1595_v54 = vshll.u32 %v3942_v38, 16  ;;  %v3944_v55 = vld [vmem:[%s4536_s30 + $0x5c] sm:$0x1] }
 0x117   : > { %1186 = vst.msk [vmem:[#allocation2 + $0x40] sm:$0xf] %vm1169_vm8, %v1106_v9  ;;  %v1539_v9 = vshll.u32 %v3935_v61, 16  ;;  %v1513_v42 = vrot.slane %v1512_v23, 4  ;;  %v1643_v10 = vshll.u32 %v3948_v60, 16 }
 0x118   : > { %1194 = vst.msk [vmem:[#allocation2 + $0x60] sm:$0xf] %vm1169_vm8, %v1122_v13  ;;  %v3932_v13 = vld [vmem:[%s4536_s30 + $0x2c] sm:$0x1]  ;;  %v3947_v38 = vld [vmem:[%s4536_s30 + $0x68] sm:$0x1] }
 0x119   : > { %v1515_v24 = vshll.u32 %v3932_v13, 16  ;;  %v1541_v27 = vrot.slane %v1539_v9, 5  ;;  %v1640_v9 = vshrl.u32 %v3948_v60, 16  ;;  %v3941_v13 = vld [vmem:[%s4536_s30 + $0x50] sm:$0x1] }
 0x11b   : > { %1330 = vrot.lane.b32.xlu1 %v3922_v15, %s4449_s6  ;;  %v1571_v15 = vshll.u32 %v3939_v62, 16  ;;  %v1517_v43 = vrot.slane %v1515_v24, 5  ;;  %v1542_v44 = vsel %vm4547_vm2, %v1537_v26, %v1541_v27  ;;  %v1587_v24 = vshll.u32 %v3941_v13, 16 }
 0x11c   : > { %1328 = vrot.lane.b32.xlu0 %v3921_v18, %s4449_s6  ;;  %1326 = vrot.lane.b32.xlu2 %v3920_v22, %s4449_s6  ;;  %v1494_v18 = vsel %vm4547_vm2, %v1489_v0, %v1493_v2  ;;  %v1484_v22 = vsel %vm4547_vm2, %v1479_v5, %v5055_v35  ;;  %v1605_v35 = vshrl.u32 %v3943_v19, 16  ;;  %v1594_v0 = vrot.slane %v1592_v51, 4 }
 0x11d   : > { %v1114_v32 = vpop.permute.xlu1 %1113  ;;  %v1573_v31 = vrot.slane %v1571_v15, 5  ;;  %v1518_v58 = vsel %vm4547_vm2, %v1513_v42, %v1517_v43  ;;  %v1597_v5 = vrot.slane %v1595_v54, 5  ;;  %v1642_v28 = vrot.slane %v1640_v9, 4  ;;  %v3954_v9 = vld [vmem:[%s4536_s30 + $0x84] sm:$0xf] }
 0x11e   : > { %1190 = vst.msk [vmem:[#allocation2 + $0x50] sm:$0xf] %vm1169_vm8, %v1114_v32  ;;  %v1112_v37 = vpop.permute.xlu0 %1111  ;;  %v1128_v41 = vpop.permute.xlu2 %1127  ;;  %v3938_v32 = vld [vmem:[%s4536_s30 + $0x44] sm:$0x1] }
 0x11f   : > { %1189 = vst.msk [vmem:[#allocation2 + $0x4c] sm:$0xf] %vm1169_vm8, %v1112_v37  ;;  %v1574_v48 = vor.u32 %v1573_v31, %v1570_v30  ;;  %v1563_v50 = vshll.u32 %v3938_v32, 16  ;;  %v1598_v21 = vor.u32 %v1597_v5, %v1594_v0  ;;  %v5132_v30 = vrot.slane %v1625_v17, 5  ;;  %v3952_v32 = vld [vmem:[%s4536_s30 + $0x7c] sm:$0xf] }
 0x120   : > { %1197 = vst.msk [vmem:[#allocation2 + $0x6c] sm:$0xf] %vm1169_vm8, %v1128_v41  ;;  %v3955_v5 = vld [vmem:[%s4536_s30 + $0x88] sm:$0xf] }
 0x121   : > { %v1575_v61 = vrot.slane %v1574_v48, 4 }
 0x123   : > { %1833 = vrot.lane.b32.xlu1 %v1470_v46, %s4450_s7  ;;  %v1577_v46 = vshll.u32 %v3940_v29, 16  ;;  %v1645_v29 = vrot.slane %v1643_v10, 5 }
 0x124   : > { %1831 = vrot.lane.b32.xlu0 %v1460_v49, %s4450_s7  ;;  %1332 = vrot.lane.b32.xlu2 %v3923_v53, %s4449_s6  ;;  %v1560_v49 = vor.u32 %v1559_v34, %v5094_v33  ;;  %v1607_v53 = vrot.slane %v1605_v35, 4  ;;  %v3951_v34 = vld [vmem:[%s4536_s30 + $0x78] sm:$0xf]  ;;  %v3949_v35 = vld [vmem:[%s4536_s30 + $0x70] sm:$0xf]  ;;  %s5945_s6 = scalar_lea.vmem [#allocation3], %s3874_s4 }
 0x125   : > { %v1120_v63 = vpop.permute.xlu1 %1119  ;;  %v1579_v59 = vrot.slane %v1577_v46, 5  ;;  %v1677_v46 = vshrl.u32 %v3952_v32, 16  ;;  %v1667_v48 = vshll.u32 %v3951_v34, 16  ;;  %v1653_v56 = vshrl.u32 %v3949_v35, 16 }
 0x126   : > { %1193 = vst.msk [vmem:[#allocation2 + $0x5c] sm:$0xf] %vm1169_vm8, %v1120_v63  ;;  %v1118_v4 = vpop.permute.xlu0 %1117  ;;  %v1134_v11 = vpop.permute.xlu2 %1133  ;;  %v1561_v62 = vrot.slane %v1560_v49, 4  ;;  %v1565_v63 = vrot.slane %v1563_v50, 5  ;;  %v1608_v3 = vor.u32 %v1607_v53, %v5107_v52  ;;  %v1646_v49 = vor.u32 %v1645_v29, %v1642_v28 }
 0x127   : > { %1192 = vst.msk [vmem:[#allocation2 + $0x58] sm:$0xf] %vm1169_vm8, %v1118_v4  ;;  %v1611_v4 = vshll.u32 %v3944_v55, 16  ;;  %v1580_v15 = vsel %vm4547_vm2, %v1575_v61, %v1579_v59  ;;  %v1649_v50 = vshll.u32 %v3949_v35, 16  ;;  %v1635_v53 = vshll.u32 %v3947_v38, 16 }
 0x128   : > { %1200 = vst.msk [vmem:[#allocation2 + $0x78] sm:$0xf] %vm1169_vm8, %v1134_v11  ;;  %v1583_v11 = vrot.slane %v1581_v57, 4  ;;  %v1566_v16 = vsel %vm4547_vm2, %v1561_v62, %v1565_v63  ;;  %v1609_v19 = vrot.slane %v1608_v3, 4  ;;  %v1669_v61 = vrot.slane %v1667_v48, 5 }
 0x129   : > { %v1613_v20 = vrot.slane %v1611_v4, 5  ;;  %v1647_v62 = vrot.slane %v1646_v49, 4  ;;  %v1651_v63 = vrot.slane %v1649_v50, 5  ;;  %v1637_v0 = vrot.slane %v1635_v53, 5  ;;  %v3957_v4 = vld [vmem:[%s4536_s30 + $0x90] sm:$0xf] }
 0x12a   : > { %v1584_v23 = vor.u32 %v1583_v11, %v1579_v59  ;;  %v1679_v59 = vrot.slane %v1677_v46, 4  ;;  %v1712_v17 = vshrl.u32 %v3957_v4, 16 }
 0x12b   : > { %1839 = vrot.lane.b32.xlu1 %v1508_v14, %s4450_s7  ;;  %v3945_v14 = vld [vmem:[%s4536_s30 + $0x60] sm:$0xf] }
 0x12c   : > { %1837 = vrot.lane.b32.xlu0 %v1494_v18, %s4450_s7  ;;  %1835 = vrot.lane.b32.xlu2 %v1484_v22, %s4450_s7  ;;  %v1629_v18 = vshrl.u32 %v3946_v7, 16  ;;  %v1556_v22 = vsel %vm4547_vm2, %v1551_v6, %v5094_v33  ;;  %v1616_v26 = vshrl.u32 %v3945_v14, 16  ;;  %v1619_v27 = vshll.u32 %v3945_v14, 16  ;;  %v3950_v14 = vld [vmem:[%s4536_s30 + $0x74] sm:$0x1] }
 0x12d   : > { %v1126_v37 = vpop.permute.xlu1 %1125  ;;  %v1614_v33 = vsel %vm4547_vm2, %v1609_v19, %v1613_v20  ;;  %v1585_v40 = vrot.slane %v1584_v23, 4  ;;  %v1697_v19 = vshll.u32 %v3955_v5, 16  ;;  %v1701_v20 = vshrl.u32 %v3955_v5, 16 }
 0x12e   : > { %1196 = vst.msk [vmem:[#allocation2 + $0x68] sm:$0xf] %vm1169_vm8, %v1126_v37  ;;  %v1124_v41 = vpop.permute.xlu0 %1123  ;;  %v1273_v47 = vpop.permute.xlu2 %1272  ;;  %v1631_v31 = vrot.slane %v1629_v18, 4  ;;  %v1599_v37 = vrot.slane %v1598_v21, 4  ;;  %v1618_v42 = vrot.slane %v1616_v26, 4  ;;  %v1621_v43 = vrot.slane %v1619_v27, 5 }
 0x12f   : > { %1195 = vst.msk [vmem:[#allocation2 + $0x64] sm:$0xf] %vm1169_vm8, %v1124_v41  ;;  %v1589_v41 = vrot.slane %v1587_v24, 5  ;;  %v1715_v18 = vshll.u32 %v3957_v4, 16  ;;  %v1688_v21 = vshrl.u32 %v3954_v9, 16  ;;  %v1659_v26 = vshll.u32 %v3950_v14, 16 }
 0x130   : > { %1368 = vst.msk [vmem:[#allocation2 + $0x4] sm:$0xf] %vm1366_vm9, %v1273_v47  ;;  %v1664_v47 = vshrl.u32 %v3951_v34, 16  ;;  %v1632_v51 = vor.u32 %v1631_v31, %v5132_v30  ;;  %v1604_v54 = vsel %vm4547_vm2, %v1599_v37, %v5107_v52  ;;  %v1714_v31 = vrot.slane %v1712_v17, 4  ;;  %v3961_v34 = vld [vmem:[%s4536_s30 + $0xa0] sm:$0xf] }
 0x131   : > { %v1590_v57 = vsel %vm4547_vm2, %v1585_v40, %v1589_v41  ;;  %v3958_v37 = vld [vmem:[%s4536_s30 + $0x94] sm:$0xf]  ;;  %v5177_v35 = vrot.slane %v1697_v19, 5  ;;  %v1690_v38 = vrot.slane %v1688_v21, 4  ;;  %v3956_v41 = vld [vmem:[%s4536_s30 + $0x8c] sm:$0x1] }
 0x132   : > { %v1666_v60 = vrot.slane %v1664_v47, 4  ;;  %v1633_v52 = vrot.slane %v1632_v51, 4  ;;  %v1749_v46 = vshrl.u32 %v3961_v34, 16  ;;  %v1721_v51 = vshll.u32 %v3958_v37, 16  ;;  %v3959_v14 = vld [vmem:[%s4536_s30 + $0x98] sm:$0x1] }
 0x133   : > { %1845 = vrot.lane.b32.xlu1 %v1542_v44, %s4450_s7 }
 0x134   : > { %1843 = vrot.lane.b32.xlu0 %v1532_v45, %s4450_s7  ;;  %1841 = vrot.lane.b32.xlu2 %v1518_v58, %s4450_s7  ;;  %v1673_v45 = vshll.u32 %v3952_v32, 16  ;;  %v1622_v58 = vor.u32 %v1621_v43, %v1618_v42  ;;  %v1717_v32 = vrot.slane %v1715_v18, 5  ;;  %v1661_v43 = vrot.slane %v1659_v26, 5 }
 0x135   : > { %v1132_v2 = vpop.permute.xlu1 %1131 }
 0x136   : > { %1199 = vst.msk [vmem:[#allocation2 + $0x74] sm:$0xf] %vm1169_vm8, %v1132_v2  ;;  %v1130_v8 = vpop.permute.xlu0 %1129  ;;  %v1279_v12 = vpop.permute.xlu2 %1278  ;;  %v5151_v55 = vrot.slane %v1673_v45, 5  ;;  %v3953_v2 = vld [vmem:[%s4536_s30 + $0x80] sm:$0x1]  ;;  %v1623_v7 = vrot.slane %v1622_v58, 4  ;;  %v1718_v50 = vor.u32 %v1717_v32, %v1714_v31 }
 0x137   : > { %1198 = vst.msk [vmem:[#allocation2 + $0x70] sm:$0xf] %vm1169_vm8, %v1130_v8  ;;  %v1655_v8 = vrot.slane %v1653_v56, 4  ;;  %v1683_v11 = vshll.u32 %v3953_v2, 16  ;;  %v1745_v45 = vshll.u32 %v3961_v34, 16  ;;  %v1707_v56 = vshll.u32 %v3956_v41, 16 }
 0x138   : > { %1371 = vst.msk [vmem:[#allocation2 + $0x10] sm:$0xf] %vm1366_vm9, %v1279_v12  ;;  %v1680_v10 = vor.u32 %v1679_v59, %v5151_v55  ;;  %v1670_v12 = vor.u32 %v1669_v61, %v1666_v60  ;;  %v1628_v23 = vsel %vm4547_vm2, %v1623_v7, %v5132_v30  ;;  %v1703_v30 = vrot.slane %v1701_v20, 4  ;;  %v3962_v60 = vld [vmem:[%s4536_s30 + $0xa4] sm:$0x1] }
 0x139   : > { %v1656_v24 = vor.u32 %v1655_v8, %v1651_v63  ;;  %v1685_v28 = vrot.slane %v1683_v11, 5  ;;  %v1725_v58 = vshrl.u32 %v3958_v37, 16  ;;  %v5193_v61 = vrot.slane %v1745_v45, 5  ;;  %v3967_v32 = vld [vmem:[%s4536_s30 + $0xb8] sm:$0xf] }
 0x13a   : > { %v1681_v27 = vrot.slane %v1680_v10, 4  ;;  %v1671_v29 = vrot.slane %v1670_v12, 4  ;;  %v1709_v4 = vrot.slane %v1707_v56, 5  ;;  %v1755_v8 = vshll.u32 %v3962_v60, 16 }
 0x13b   : > { %1851 = vrot.lane.b32.xlu1 %v1580_v15, %s4450_s7  ;;  %v1652_v15 = vsel %vm4547_vm2, %v1647_v62, %v1651_v63  ;;  %v1657_v42 = vrot.slane %v1656_v24, 4  ;;  %v1751_v62 = vrot.slane %v1749_v46, 4  ;;  %v1727_v10 = vrot.slane %v1725_v58, 4 }
 0x13c   : > { %1849 = vrot.lane.b32.xlu0 %v1566_v16, %s4450_s7  ;;  %1847 = vrot.lane.b32.xlu2 %v1556_v22, %s4450_s7  ;;  %v1638_v16 = vsel %vm4547_vm2, %v1633_v52, %v1637_v0  ;;  %v1691_v22 = vshll.u32 %v3954_v9, 16  ;;  %v1686_v49 = vsel %vm4547_vm2, %v1681_v27, %v1685_v28  ;;  %v1676_v53 = vsel %vm4547_vm2, %v1671_v29, %v5151_v55  ;;  %v3964_v9 = vld [vmem:[%s4536_s30 + $0xac] sm:$0xf] }
 0x13d   : > { %v1271_v36 = vpop.permute.xlu1 %1270  ;;  %v1662_v59 = vsel %vm4547_vm2, %v1657_v42, %v1661_v43  ;;  %v1719_v55 = vrot.slane %v1718_v50, 4  ;;  %v1723_v0 = vrot.slane %v1721_v51, 5  ;;  %v1752_v11 = vor.u32 %v1751_v62, %v5193_v61 }
 0x13e   : > { %1367 = vst.msk [vmem:[#allocation2] sm:$0xf] %vm1366_vm9, %v1271_v36  ;;  %v1136_v39 = vpop.permute.xlu0 %1135  ;;  %v1285_v44 = vpop.permute.xlu2 %1284  ;;  %v3960_v36 = vld [vmem:[%s4536_s30 + $0x9c] sm:$0xf]  ;;  %v1769_v21 = vshll.u32 %v3964_v9, 16  ;;  %v1731_v24 = vshll.u32 %v3959_v14, 16 }
 0x13f   : > { %1201 = vst.msk [vmem:[#allocation2 + $0x7c] sm:$0xf] %vm1169_vm8, %v1136_v39  ;;  %v1693_v39 = vrot.slane %v1691_v22, 5  ;;  %v1736_v47 = vshrl.u32 %v3960_v36, 16  ;;  %v1739_v48 = vshll.u32 %v3960_v36, 16  ;;  %v1773_v22 = vshrl.u32 %v3964_v9, 16 }
 0x140   : > { %1374 = vst.msk [vmem:[#allocation2 + $0x1c] sm:$0xf] %vm1366_vm9, %v1285_v44  ;;  %v1753_v28 = vrot.slane %v1752_v11, 4  ;;  %v1757_v29 = vrot.slane %v1755_v8, 5  ;;  %v1733_v42 = vrot.slane %v1731_v24, 5  ;;  %v1797_v58 = vshrl.u32 %v3967_v32, 16 }
 0x141   : > { %v1738_v63 = vrot.slane %v1736_v47, 4  ;;  %v1741_v52 = vrot.slane %v1739_v48, 5  ;;  %v3973_v24 = vld [vmem:[%s4536_s30 + $0x10] sm:$0xf] }
 0x142   : > { %v1758_v45 = vsel %vm4547_vm2, %v1753_v28, %v1757_v29  ;;  %v1799_v8 = vrot.slane %v1797_v58, 4 }
 0x143   : > { %1857 = vrot.lane.b32.xlu1 %v1614_v33, %s4450_s7  ;;  %v1742_v12 = vor.u32 %v1741_v52, %v1738_v63 }
 0x144   : > { %1855 = vrot.lane.b32.xlu0 %v1604_v54, %s4450_s7  ;;  %1853 = vrot.lane.b32.xlu2 %v1590_v57, %s4450_s7  ;;  %v1704_v54 = vor.u32 %v1703_v30, %v5177_v35  ;;  %v1694_v57 = vor.u32 %v1693_v39, %v1690_v38  ;;  %v1775_v30 = vrot.slane %v1773_v22, 4  ;;  %v3970_v38 = vld [vmem:[%s4536_s30 + $0xc4] sm:$0xf]  ;;  %v3969_v39 = vld [vmem:[%s4536_s30 + $0xc0] sm:$0xf] }
 0x145   : > { %v1277_v3 = vpop.permute.xlu1 %1276  ;;  %v1743_v31 = vrot.slane %v1742_v12, 4  ;;  %v1817_v50 = vshll.u32 %v3970_v38, 16  ;;  %v1821_v51 = vshrl.u32 %v3970_v38, 16  ;;  %v1808_v56 = vshrl.u32 %v3969_v39, 16 }
 0x146   : > { %1370 = vst.msk [vmem:[#allocation2 + $0xc] sm:$0xf] %vm1366_vm9, %v1277_v3  ;;  %v1275_v6 = vpop.permute.xlu0 %1274  ;;  %v1291_v13 = vpop.permute.xlu2 %1290  ;;  %v1705_v3 = vrot.slane %v1704_v54, 4  ;;  %v1695_v5 = vrot.slane %v1694_v57, 4  ;;  %v1811_v57 = vshll.u32 %v3969_v39, 16 }
 0x147   : > { %1369 = vst.msk [vmem:[#allocation2 + $0x8] sm:$0xf] %vm1366_vm9, %v1275_v6  ;;  %v3966_v6 = vld [vmem:[%s4536_s30 + $0xb4] sm:$0xf]  ;;  %v1748_v46 = vsel %vm4547_vm2, %v1743_v31, %v5193_v61  ;;  %v1819_v63 = vrot.slane %v1817_v50, 5  ;;  %v1823_v52 = vrot.slane %v1821_v51, 4 }
 0x148   : > { %1377 = vst.msk [vmem:[#allocation2 + $0x28] sm:$0xf] %vm1366_vm9, %v1291_v13  ;;  %v1784_v17 = vshrl.u32 %v3966_v6, 16  ;;  %v1787_v18 = vshll.u32 %v3966_v6, 16  ;;  %v1710_v19 = vsel %vm4547_vm2, %v1705_v3, %v1709_v4  ;;  %v1700_v20 = vsel %vm4547_vm2, %v1695_v5, %v5177_v35  ;;  %v3971_v3 = vld [vmem:[%s4536_s30 + $0xc8] sm:$0x1] }
 0x149   : > { %v1771_v35 = vrot.slane %v1769_v21, 5  ;;  %v1810_v4 = vrot.slane %v1808_v56, 4  ;;  %v1813_v5 = vrot.slane %v1811_v57, 5  ;;  %v1824_v12 = vor.u32 %v1823_v52, %v1819_v63  ;;  %v3978_v50 = vld [vmem:[%s4536_s30 + $0x24] sm:$0xe] }
 0x14a   : > { %v1786_v34 = vrot.slane %v1784_v17, 4  ;;  %v1789_v36 = vrot.slane %v1787_v18, 5  ;;  %v4022_v58 = vrot.slane %v3978_v50, 9 }
 0x14b   : > { %1863 = vrot.lane.b32.xlu1 %v1652_v15, %s4450_s7  ;;  %v3963_v15 = vld [vmem:[%s4536_s30 + $0xa8] sm:$0xf] }
 0x14c   : > { %1861 = vrot.lane.b32.xlu0 %v1638_v16, %s4450_s7  ;;  %1859 = vrot.lane.b32.xlu2 %v1628_v23, %s4450_s7  ;;  %v1724_v16 = vsel %vm4547_vm2, %v1719_v55, %v1723_v0  ;;  %v1728_v23 = vor.u32 %v1727_v10, %v1723_v0  ;;  %v1760_v26 = vshrl.u32 %v3963_v15, 16  ;;  %v1763_v27 = vshll.u32 %v3963_v15, 16  ;;  %v3968_v10 = vld [vmem:[%s4536_s30 + $0xbc] sm:$0x1] }
 0x14d   : > { %v1283_v33 = vpop.permute.xlu1 %1282  ;;  %v1790_v48 = vor.u32 %v1789_v36, %v1786_v34  ;;  %v1814_v15 = vor.u32 %v1813_v5, %v1810_v4  ;;  %v1803_v18 = vshll.u32 %v3968_v10, 16  ;;  %v3976_v34 = vld [vmem:[%s4536_s30 + $0x1c] sm:$0xf]  ;;  %v2058_v36 = vrot.slane %v3973_v24, 5  ;;  %v3983_v4 = vld [vmem:[%s4536_s30 + $0x38] sm:$0x1] }
 0x14e   : > { %1373 = vst.msk [vmem:[#allocation2 + $0x18] sm:$0xf] %vm1366_vm9, %v1283_v33  ;;  %v1281_v40 = vpop.permute.xlu0 %1280  ;;  %v1297_v44 = vpop.permute.xlu2 %1296  ;;  %v3965_v33 = vld [vmem:[%s4536_s30 + $0xb0] sm:$0x1]  ;;  %v1729_v41 = vrot.slane %v1728_v23, 4  ;;  %v1762_v43 = vrot.slane %v1760_v26, 4 }
 0x14f   : > { %1372 = vst.msk [vmem:[#allocation2 + $0x14] sm:$0xf] %vm1366_vm9, %v1281_v40  ;;  %v1779_v54 = vshll.u32 %v3965_v33, 16  ;;  %v1791_v61 = vrot.slane %v1790_v48, 4  ;;  %v1815_v22 = vrot.slane %v1814_v15, 4  ;;  %v2065_v38 = vrot.slane %v3976_v34, 5 }
 0x150   : > { %1380 = vst.msk [vmem:[#allocation2 + $0x34] sm:$0xf] %vm1366_vm9, %v1297_v44  ;;  %v1765_v44 = vrot.slane %v1763_v27, 5  ;;  %v1805_v27 = vrot.slane %v1803_v18, 5  ;;  %v3974_v33 = vld [vmem:[%s4536_s30 + $0x14] sm:$0x1] }
 0x151   : > { %v1820_v31 = vsel %vm4547_vm2, %v1815_v22, %v1819_v63  ;;  %v3986_v22 = vld [vmem:[%s4536_s30 + $0x44] sm:$0x1] }
 0x152   : > { %v1766_v60 = vor.u32 %v1765_v44, %v1762_v43 }
 0x153   : > { %1869 = vrot.lane.b32.xlu1 %v1686_v49, %s4450_s7  ;;  %v1793_v49 = vshll.u32 %v3967_v32, 16  ;;  %v3975_v32 = vld [vmem:[%s4536_s30 + $0x18] sm:$0xe] }
 0x154   : > { %1867 = vrot.lane.b32.xlu0 %v1676_v53, %s4450_s7  ;;  %1865 = vrot.lane.b32.xlu2 %v1662_v59, %s4450_s7  ;;  %v1776_v53 = vor.u32 %v1775_v30, %v1771_v35  ;;  %v1734_v59 = vsel %vm4547_vm2, %v1729_v41, %v1733_v42  ;;  %v4021_v30 = vrot.slane %v3975_v32, 9  ;;  %v2061_v41 = vrot.slane %v3974_v33, 5  ;;  %v3979_v42 = vld [vmem:[%s4536_s30 + $0x28] sm:$0xf] }
 0x155   : > { %v1289_v2 = vpop.permute.xlu1 %1288  ;;  %v1795_v62 = vrot.slane %v1793_v49, 5  ;;  %v3980_v49 = vld [vmem:[%s4536_s30 + $0x2c] sm:$0x1]  ;;  %v2089_v32 = vrot.slane %v3986_v22, 5 }
 0x156   : > { %1376 = vst.msk [vmem:[#allocation2 + $0x24] sm:$0xf] %vm1366_vm9, %v1289_v2  ;;  %v1287_v7 = vpop.permute.xlu0 %1286  ;;  %v1303_v13 = vpop.permute.xlu2 %1302  ;;  %v1777_v0 = vrot.slane %v1776_v53, 4  ;;  %v1781_v2 = vrot.slane %v1779_v54, 5  ;;  %v3977_v53 = vld [vmem:[%s4536_s30 + $0x20] sm:$0x1] }
 0x157   : > { %1375 = vst.msk [vmem:[#allocation2 + $0x20] sm:$0xf] %vm1366_vm9, %v1287_v7  ;;  %v1767_v7 = vrot.slane %v1766_v60, 4  ;;  %v1796_v11 = vsel %vm4547_vm2, %v1791_v61, %v1795_v62  ;;  %v1800_v17 = vor.u32 %v1799_v8, %v1795_v62  ;;  %v2075_v56 = vrot.slane %v3980_v49, 5  ;;  %v3982_v60 = vld [vmem:[%s4536_s30 + $0x34] sm:$0xf] }
 0x158   : > { %1383 = vst.msk [vmem:[#allocation2 + $0x40] sm:$0xf] %vm1366_vm9, %v1303_v13  ;;  %v1827_v13 = vshll.u32 %v3971_v3, 16  ;;  %v1782_v14 = vsel %vm4547_vm2, %v1777_v0, %v1781_v2  ;;  %v2067_v61 = vrot.slane %v2065_v38, 4  ;;  %v2068_v62 = vrot.slane %v3977_v53, 5 }
 0x159   : > { %v1801_v26 = vrot.slane %v1800_v17, 4  ;;  %v3984_v0 = vld [vmem:[%s4536_s30 + $0x3c] sm:$0xe]  ;;  %v3985_v2 = vld [vmem:[%s4536_s30 + $0x40] sm:$0xf]  ;;  %v2079_v3 = vrot.slane %v3982_v60, 5 }
 0x15a   : > { %v2069_v5 = vsel %vm4722_vm6, %v2067_v61, %v2068_v62  ;;  %v2086_v8 = vrot.slane %v3985_v2, 5 }
 0x15b   : > { %1875 = vrot.lane.b32.xlu1 %v1724_v16, %s4450_s7  ;;  %v1772_v16 = vsel %vm4547_vm2, %v1767_v7, %v1771_v35  ;;  %v3972_v35 = vld [vmem:[%s4536_s30 + $0xc] sm:$0xe]  ;;  %v4024_v7 = vrot.slane %v3984_v0, 9  ;;  %v2081_v10 = vrot.slane %v2079_v3, 4 }
 0x15c   : > { %1873 = vrot.lane.b32.xlu0 %v1710_v19, %s4450_s7  ;;  %1871 = vrot.lane.b32.xlu2 %v1700_v20, %s4450_s7  ;;  %v1825_v19 = vrot.slane %v1824_v12, 4  ;;  %v1829_v20 = vrot.slane %v1827_v13, 5  ;;  %v4020_v44 = vrot.slane %v3972_v35, 9  ;;  %v3988_v12 = vld [vmem:[%s4536_s30 + $0x4c] sm:$0xf] }
 0x15d   : > { %v1295_v37 = vpop.permute.xlu1 %1294  ;;  %v2093_v17 = vrot.slane %v3988_v12, 5  ;;  %v3994_v35 = vld [vmem:[%s4536_s30 + $0x64] sm:$0xf] }
 0x15e   : > { %1379 = vst.msk [vmem:[#allocation2 + $0x30] sm:$0xf] %vm1366_vm9, %v1295_v37  ;;  %v1293_v40 = vpop.permute.xlu0 %1292  ;;  %v1309_v47 = vpop.permute.xlu2 %1308  ;;  %v1830_v29 = vsel %vm4547_vm2, %v1825_v19, %v1829_v20  ;;  %v1806_v37 = vsel %vm4547_vm2, %v1801_v26, %v1805_v27  ;;  %v2059_v51 = vsel %vm4722_vm6, %v4020_v44, %v2058_v36  ;;  %v3989_v19 = vld [vmem:[%s4536_s30 + $0x50] sm:$0x1]  ;;  %v3987_v20 = vld [vmem:[%s4536_s30 + $0x48] sm:$0xe] }
 0x15f   : > { %1378 = vst.msk [vmem:[#allocation2 + $0x2c] sm:$0xf] %vm1366_vm9, %v1293_v40  ;;  %v2060_v40 = vrot.slane %v2058_v36, 4  ;;  %v2096_v24 = vrot.slane %v3989_v19, 5  ;;  %v4025_v27 = vrot.slane %v3987_v20, 9 }
 0x160   : > { %1386 = vst.msk [vmem:[#allocation2 + $0x4c] sm:$0xf] %vm1366_vm9, %v1309_v47  ;;  %v2072_v47 = vrot.slane %v3979_v42, 5  ;;  %v2107_v42 = vrot.slane %v3994_v35, 5 }
 0x161   : > { %v2062_v48 = vsel %vm4722_vm6, %v2060_v40, %v2061_v41  ;;  %v2094_v33 = vsel %vm4722_vm6, %v4025_v27, %v2093_v17  ;;  %v3990_v40 = vld [vmem:[%s4536_s30 + $0x54] sm:$0xe]  ;;  %v4004_v27 = vld [vmem:[%s4536_s30 + $0x8c] sm:$0x1] }
 0x162   : > { %v2074_v54 = vrot.slane %v2072_v47, 4 }
 0x163   : > { %1881 = vrot.lane.b32.xlu1 %v1758_v45, %s4450_s7 }
 0x164   : > { %1879 = vrot.lane.b32.xlu0 %v1748_v46, %s4450_s7  ;;  %1877 = vrot.lane.b32.xlu2 %v1734_v59, %s4450_s7  ;;  %v2066_v46 = vsel %vm4722_vm6, %v4021_v30, %v2065_v38  ;;  %v2076_v52 = vsel %vm4722_vm6, %v2074_v54, %v2075_v56  ;;  %v3992_v38 = vld [vmem:[%s4536_s30 + $0x5c] sm:$0x1]  ;;  %v3998_v54 = vld [vmem:[%s4536_s30 + $0x74] sm:$0x1] }
 0x165   : > { %v1301_v55 = vpop.permute.xlu1 %1300  ;;  %v3996_v56 = vld [vmem:[%s4536_s30 + $0x6c] sm:$0xe]  ;;  %v2117_v60 = vrot.slane %v3998_v54, 5 }
 0x166   : > { %1382 = vst.msk [vmem:[#allocation2 + $0x3c] sm:$0xf] %vm1366_vm9, %v1301_v55  ;;  %v1299_v6 = vpop.permute.xlu0 %1298  ;;  %v1315_v9 = vpop.permute.xlu2 %1314  ;;  %v2073_v55 = vsel %vm4722_vm6, %v4022_v58, %v2072_v47  ;;  %v3995_v58 = vld [vmem:[%s4536_s30 + $0x68] sm:$0x1]  ;;  %v4028_v62 = vrot.slane %v3996_v56, 9 }
 0x167   : > { %1381 = vst.msk [vmem:[#allocation2 + $0x38] sm:$0xf] %vm1366_vm9, %v1299_v6  ;;  %v3981_v6 = vld [vmem:[%s4536_s30 + $0x30] sm:$0xe]  ;;  %v2110_v0 = vrot.slane %v3995_v58, 5 }
 0x168   : > { %1389 = vst.msk [vmem:[#allocation2 + $0x58] sm:$0xf] %vm1366_vm9, %v1315_v9 }
 0x16b   : > { %1887 = vrot.lane.b32.xlu1 %v1796_v11, %s4450_s7  ;;  %v2082_v11 = vrot.slane %v3983_v4, 5 }
 0x16c   : > { %1885 = vrot.lane.b32.xlu0 %v1782_v14, %s4450_s7  ;;  %1883 = vrot.lane.b32.xlu2 %v1772_v16, %s4450_s7  ;;  %v4023_v14 = vrot.slane %v3981_v6, 9  ;;  %v2087_v16 = vsel %vm4722_vm6, %v4024_v7, %v2086_v8  ;;  %v4003_v6 = vld [vmem:[%s4536_s30 + $0x88] sm:$0xf] }
 0x16d   : > { %v1307_v21 = vpop.permute.xlu1 %1306  ;;  %v2083_v18 = vsel %vm4722_vm6, %v2081_v10, %v2082_v11  ;;  %v3999_v10 = vld [vmem:[%s4536_s30 + $0x78] sm:$0xe]  ;;  %v2128_v12 = vrot.slane %v4003_v6, 5 }
 0x16e   : > { %1385 = vst.msk [vmem:[#allocation2 + $0x48] sm:$0xf] %vm1366_vm9, %v1307_v21  ;;  %v1305_v23 = vpop.permute.xlu0 %1304  ;;  %v1321_v28 = vpop.permute.xlu2 %1320  ;;  %v2080_v21 = vsel %vm4722_vm6, %v4023_v14, %v2079_v3 }
 0x16f   : > { %1384 = vst.msk [vmem:[#allocation2 + $0x44] sm:$0xf] %vm1366_vm9, %v1305_v23  ;;  %v2095_v23 = vrot.slane %v2093_v17, 4 }
 0x170   : > { %1392 = vst.msk [vmem:[#allocation2 + $0x64] sm:$0xf] %vm1366_vm9, %v1321_v28 }
 0x171   : > { %v2097_v36 = vsel %vm4722_vm6, %v2095_v23, %v2096_v24  ;;  %v4007_v23 = vld [vmem:[%s4536_s30 + $0x98] sm:$0x1]  ;;  %v4005_v24 = vld [vmem:[%s4536_s30 + $0x90] sm:$0xe] }
 0x173   : > { %1893 = vrot.lane.b32.xlu1 %v1830_v29, %s4450_s7  ;;  %v3991_v29 = vld [vmem:[%s4536_s30 + $0x58] sm:$0xf] }
 0x174   : > { %1891 = vrot.lane.b32.xlu0 %v1820_v31, %s4450_s7  ;;  %1889 = vrot.lane.b32.xlu2 %v1806_v37, %s4450_s7  ;;  %v2088_v31 = vrot.slane %v2086_v8, 4  ;;  %v3993_v37 = vld [vmem:[%s4536_s30 + $0x60] sm:$0xe]  ;;  %v2100_v30 = vrot.slane %v3991_v29, 5  ;;  %v4001_v8 = vld [vmem:[%s4536_s30 + $0x80] sm:$0x1] }
 0x175   : > { %v1313_v39 = vpop.permute.xlu1 %1312  ;;  %v4027_v41 = vrot.slane %v3993_v37, 9  ;;  %v2138_v29 = vrot.slane %v4007_v23, 5  ;;  %v2131_v37 = vrot.slane %v4004_v27, 5  ;;  %v4038_v27 = vld [vmem:[%s4536_s30 + $0x24] sm:$0xf]  ;;  %s4291_s7 = sshll.u32 %s4437_s15, 8 }
 0x176   : > { %1388 = vst.msk [vmem:[#allocation2 + $0x54] sm:$0xf] %vm1366_vm9, %v1313_v39  ;;  %v1311_v43 = vpop.permute.xlu0 %1310  ;;  %v1327_v45 = vpop.permute.xlu2 %1326  ;;  %v2090_v39 = vsel %vm4722_vm6, %v2088_v31, %v2089_v32  ;;  %v2102_v44 = vrot.slane %v2100_v30, 4  ;;  %v4031_v32 = vrot.slane %v4005_v24, 9  ;;  %s3735_s15 = scalar_lea.sflag [#allocation4], %s208_s28 }
 0x177   : > { %1387 = vst.msk [vmem:[#allocation2 + $0x50] sm:$0xf] %vm1366_vm9, %v1311_v43  ;;  %v2108_v50 = vsel %vm4722_vm6, %v4027_v41, %v2107_v42 }
 0x178   : > { %1395 = vst.msk [vmem:[#allocation2 + $0x70] sm:$0xf] %vm1366_vm9, %v1327_v45  ;;  %v2103_v45 = vrot.slane %v3992_v38, 5 }
 0x17a   : > { %v2104_v53 = vsel %vm4722_vm6, %v2102_v44, %v2103_v45  ;;  %v4008_v44 = vld [vmem:[%s4536_s30 + $0x9c] sm:$0xe] }
 0x17b   : > { %2172 = vrot.lane.b32.xlu1 %v2066_v46, %s4451_s8  ;;  %v3997_v46 = vld [vmem:[%s4536_s30 + $0x70] sm:$0xf] }
 0x17c   : > { %2170 = vrot.lane.b32.xlu0 %v2062_v48, %s4451_s8  ;;  %2168 = vrot.lane.b32.xlu2 %v2059_v51, %s4451_s8  ;;  %v4026_v48 = vrot.slane %v3990_v40, 9  ;;  %v2114_v51 = vrot.slane %v3997_v46, 5  ;;  %v4012_v40 = vld [vmem:[%s4536_s30 + $0xac] sm:$0xf] }
 0x17d   : > { %v1319_v57 = vpop.permute.xlu1 %1318  ;;  %v2149_v46 = vrot.slane %v4012_v40, 5  ;;  %v4043_v40 = vld [vmem:[%s4536_s30 + $0x40] sm:$0xf] }
 0x17e   : > { %1391 = vst.msk [vmem:[#allocation2 + $0x60] sm:$0xf] %vm1366_vm9, %v1319_v57  ;;  %v1317_v59 = vpop.permute.xlu0 %1316  ;;  %v1333_v63 = vpop.permute.xlu2 %1332  ;;  %v2101_v57 = vsel %vm4722_vm6, %v4026_v48, %v2100_v30  ;;  %v2115_v4 = vsel %vm4722_vm6, %v4028_v62, %v2114_v51  ;;  %v4013_v62 = vld [vmem:[%s4536_s30 + $0xb0] sm:$0x1] }
 0x17f   : > { %1390 = vst.msk [vmem:[#allocation2 + $0x5c] sm:$0xf] %vm1366_vm9, %v1317_v59  ;;  %v2116_v59 = vrot.slane %v2114_v51, 4 }
 0x180   : > { %1398 = vst.msk [vmem:[#allocation2 + $0x7c] sm:$0xf] %vm1366_vm9, %v1333_v63 }
 0x181   : > { %v2118_v3 = vsel %vm4722_vm6, %v2116_v59, %v2117_v60  ;;  %v4016_v59 = vld [vmem:[%s4536_s30 + $0xbc] sm:$0x1]  ;;  %v4014_v60 = vld [vmem:[%s4536_s30 + $0xb4] sm:$0xe] }
 0x183   : > { %2178 = vrot.lane.b32.xlu1 %v2076_v52, %s4451_s8  ;;  %v4000_v52 = vld [vmem:[%s4536_s30 + $0x7c] sm:$0xf] }
 0x184   : > { %2176 = vrot.lane.b32.xlu0 %v2073_v55, %s4451_s8  ;;  %2174 = vrot.lane.b32.xlu2 %v2069_v5, %s4451_s8  ;;  %v2109_v55 = vrot.slane %v2107_v42, 4  ;;  %v4002_v5 = vld [vmem:[%s4536_s30 + $0x84] sm:$0xe]  ;;  %v2121_v7 = vrot.slane %v4000_v52, 5  ;;  %v4010_v42 = vld [vmem:[%s4536_s30 + $0xa4] sm:$0x1] }
 0x185   : > { %v1325_v9 = vpop.permute.xlu1 %1324  ;;  %v4030_v11 = vrot.slane %v4002_v5, 9  ;;  %v2159_v52 = vrot.slane %v4016_v59, 5  ;;  %v2152_v5 = vrot.slane %v4013_v62, 5 }
 0x186   : > { %1394 = vst.msk [vmem:[#allocation2 + $0x6c] sm:$0xf] %vm1366_vm9, %v1325_v9  ;;  %v1323_v13 = vpop.permute.xlu0 %1322  ;;  %v1836_v15 = vpop.permute.xlu2 %1835  ;;  %v2111_v9 = vsel %vm4722_vm6, %v2109_v55, %v2110_v0  ;;  %v2123_v14 = vrot.slane %v2121_v7, 4  ;;  %v4034_v0 = vrot.slane %v4014_v60, 9 }
 0x187   : > { %1393 = vst.msk [vmem:[#allocation2 + $0x68] sm:$0xf] %vm1366_vm9, %v1323_v13  ;;  %v2129_v20 = vsel %vm4722_vm6, %v4030_v11, %v2128_v12 }
 0x188   : > { %1930 = vst.msk [vmem:[#allocation2 + $0x8] sm:$0xf] %vm1927_vm10, %v1836_v15  ;;  %v2124_v15 = vrot.slane %v4001_v8, 5 }
 0x18a   : > { %v2125_v22 = vsel %vm4722_vm6, %v2123_v14, %v2124_v15 }
 0x18b   : > { %2184 = vrot.lane.b32.xlu1 %v2087_v16, %s4451_s8  ;;  %v4006_v16 = vld [vmem:[%s4536_s30 + $0x94] sm:$0xf] }
 0x18c   : > { %2182 = vrot.lane.b32.xlu0 %v2083_v18, %s4451_s8  ;;  %2180 = vrot.lane.b32.xlu2 %v2080_v21, %s4451_s8  ;;  %v4029_v18 = vrot.slane %v3999_v10, 9  ;;  %v2135_v21 = vrot.slane %v4006_v16, 5  ;;  %v4019_v10 = vld [vmem:[%s4536_s30 + $0xc8] sm:$0x1] }
 0x18d   : > { %v1331_v26 = vpop.permute.xlu1 %1330  ;;  %v2166_v15 = vrot.slane %v4019_v10, 5  ;;  %v4061_v10 = vld [vmem:[%s4536_s30 + $0xac] sm:$0xf] }
 0x18e   : > { %1397 = vst.msk [vmem:[#allocation2 + $0x78] sm:$0xf] %vm1366_vm9, %v1331_v26  ;;  %v1329_v28 = vpop.permute.xlu0 %1328  ;;  %v1842_v34 = vpop.permute.xlu2 %1841  ;;  %v2122_v26 = vsel %vm4722_vm6, %v4029_v18, %v2121_v7  ;;  %v2136_v38 = vsel %vm4722_vm6, %v4031_v32, %v2135_v21 }
 0x18f   : > { %1396 = vst.msk [vmem:[#allocation2 + $0x74] sm:$0xf] %vm1366_vm9, %v1329_v28  ;;  %v2137_v28 = vrot.slane %v2135_v21, 4 }
 0x190   : > { %1933 = vst.msk [vmem:[#allocation2 + $0x14] sm:$0xf] %vm1927_vm10, %v1842_v34 }
 0x191   : > { %v2139_v30 = vsel %vm4722_vm6, %v2137_v28, %v2138_v29  ;;  %v4037_v28 = vld [vmem:[%s4536_s30 + $0x1c] sm:$0xf] }
 0x193   : > { %2190 = vrot.lane.b32.xlu1 %v2097_v36, %s4451_s8  ;;  %v4009_v36 = vld [vmem:[%s4536_s30 + $0xa0] sm:$0xf] }
 0x194   : > { %2188 = vrot.lane.b32.xlu0 %v2094_v33, %s4451_s8  ;;  %2186 = vrot.lane.b32.xlu2 %v2090_v39, %s4451_s8  ;;  %v2130_v33 = vrot.slane %v2128_v12, 4  ;;  %v4011_v39 = vld [vmem:[%s4536_s30 + $0xa8] sm:$0xe]  ;;  %v2142_v41 = vrot.slane %v4009_v36, 5  ;;  %v4017_v12 = vld [vmem:[%s4536_s30 + $0xc0] sm:$0xe] }
 0x195   : > { %v1834_v43 = vpop.permute.xlu1 %1833  ;;  %v4033_v45 = vrot.slane %v4011_v39, 9  ;;  %v4041_v36 = vld [vmem:[%s4536_s30 + $0x34] sm:$0xf]  ;;  %v4044_v39 = vld [vmem:[%s4536_s30 + $0x48] sm:$0xf] }
 0x196   : > { %1929 = vst.msk [vmem:[#allocation2 + $0x4] sm:$0xf] %vm1927_vm10, %v1834_v43  ;;  %v1832_v47 = vpop.permute.xlu0 %1831  ;;  %v1848_v49 = vpop.permute.xlu2 %1847  ;;  %v2132_v43 = vsel %vm4722_vm6, %v2130_v33, %v2131_v37  ;;  %v2144_v48 = vrot.slane %v2142_v41, 4  ;;  %v4040_v33 = vld [vmem:[%s4536_s30 + $0x30] sm:$0xf] }
 0x197   : > { %1928 = vst.msk [vmem:[#allocation2] sm:$0xf] %vm1927_vm10, %v1832_v47  ;;  %v2150_v56 = vsel %vm4722_vm6, %v4033_v45, %v2149_v46  ;;  %v4047_v45 = vld [vmem:[%s4536_s30 + $0x58] sm:$0xf] }
 0x198   : > { %1936 = vst.msk [vmem:[#allocation2 + $0x20] sm:$0xf] %vm1927_vm10, %v1848_v49  ;;  %v2145_v49 = vrot.slane %v4010_v42, 5 }
 0x19a   : > { %v2146_v58 = vsel %vm4722_vm6, %v2144_v48, %v2145_v49  ;;  %v4104_v48 = vld [vmem:[%s4536_s30 + $0xa8] sm:$0xf] }
 0x19b   : > { %2196 = vrot.lane.b32.xlu1 %v2108_v50, %s4451_s8  ;;  %v4015_v50 = vld [vmem:[%s4536_s30 + $0xb8] sm:$0xf] }
 0x19c   : > { %2194 = vrot.lane.b32.xlu0 %v2104_v53, %s4451_s8  ;;  %2192 = vrot.lane.b32.xlu2 %v2101_v57, %s4451_s8  ;;  %v4032_v53 = vrot.slane %v4008_v44, 9  ;;  %v2156_v57 = vrot.slane %v4015_v50, 5  ;;  %v4048_v44 = vld [vmem:[%s4536_s30 + $0x60] sm:$0xf]  ;;  %v4093_v50 = vld [vmem:[%s4536_s30 + $0x7c] sm:$0xf] }
 0x19d   : > { %v1840_v61 = vpop.permute.xlu1 %1839  ;;  %v2744_v59 = vshll.u32 %v4093_v50, 16  ;;  %v2748_v60 = vshrl.u32 %v4093_v50, 16  ;;  %v4081_v50 = vld [vmem:[%s4536_s30 + $0x4c] sm:$0xf] }
 0x19e   : > { %1932 = vst.msk [vmem:[#allocation2 + $0x10] sm:$0xf] %vm1927_vm10, %v1840_v61  ;;  %v1838_v63 = vpop.permute.xlu0 %1837  ;;  %v1854_v2 = vpop.permute.xlu2 %1853  ;;  %v2143_v61 = vsel %vm4722_vm6, %v4032_v53, %v2142_v41  ;;  %v2157_v8 = vsel %vm4722_vm6, %v4034_v0, %v2156_v57  ;;  %v4092_v53 = vld [vmem:[%s4536_s30 + $0x78] sm:$0xf] }
 0x19f   : > { %1931 = vst.msk [vmem:[#allocation2 + $0xc] sm:$0xf] %vm1927_vm10, %v1838_v63  ;;  %v2158_v63 = vrot.slane %v2156_v57, 4  ;;  %v2834_v57 = vshll.u32 %v4104_v48, 16  ;;  %v2735_v62 = vshrl.u32 %v4092_v53, 16 }
 0x1a0   : > { %1939 = vst.msk [vmem:[#allocation2 + $0x2c] sm:$0xf] %vm1927_vm10, %v1854_v2 }
 0x1a1   : > { %v2160_v7 = vsel %vm4722_vm6, %v2158_v63, %v2159_v52  ;;  %v2738_v63 = vshll.u32 %v4092_v53, 16 }
 0x1a3   : > { %2202 = vrot.lane.b32.xlu1 %v2118_v3, %s4451_s8  ;;  %v4018_v3 = vld [vmem:[%s4536_s30 + $0xc4] sm:$0xf] }
 0x1a4   : > { %2200 = vrot.lane.b32.xlu0 %v2115_v4, %s4451_s8  ;;  %2198 = vrot.lane.b32.xlu2 %v2111_v9, %s4451_s8  ;;  %v2151_v4 = vrot.slane %v2149_v46, 4  ;;  %v2163_v9 = vrot.slane %v4018_v3, 5  ;;  %v4046_v46 = vld [vmem:[%s4536_s30 + $0x54] sm:$0xf]  ;;  %v2746_v3 = vrot.slane %v2744_v59, 5 }
 0x1a5   : > { %v1846_v13 = vpop.permute.xlu1 %1845 }
 0x1a6   : > { %1935 = vst.msk [vmem:[#allocation2 + $0x1c] sm:$0xf] %vm1927_vm10, %v1846_v13  ;;  %v1844_v17 = vpop.permute.xlu0 %1843  ;;  %v1860_v19 = vpop.permute.xlu2 %1859  ;;  %v2153_v11 = vsel %vm4722_vm6, %v2151_v4, %v2152_v5  ;;  %v2165_v14 = vrot.slane %v2163_v9, 4  ;;  %v2750_v4 = vrot.slane %v2748_v60, 4 }
 0x1a7   : > { %1934 = vst.msk [vmem:[#allocation2 + $0x18] sm:$0xf] %vm1927_vm10, %v1844_v17  ;;  %v4035_v17 = vrot.slane %v4017_v12, 9 }
 0x1a8   : > { %1942 = vst.msk [vmem:[#allocation2 + $0x38] sm:$0xf] %vm1927_vm10, %v1860_v19  ;;  %v4036_v19 = vld [vmem:[%s4536_s30 + $0x18] sm:$0xf] }
 0x1a9   : > { %v2164_v21 = vsel %vm4722_vm6, %v4035_v17, %v2163_v9  ;;  %v4053_v17 = vld [vmem:[%s4536_s30 + $0x7c] sm:$0xf] }
 0x1ab   : > { %2208 = vrot.lane.b32.xlu1 %v2129_v20, %s4451_s8  ;;  %v2167_v20 = vsel %vm4722_vm6, %v2165_v14, %v2166_v15  ;;  %v2751_v14 = vor.u32 %v2750_v4, %v2746_v3 }
 0x1ac   : > { %2206 = vrot.lane.b32.xlu0 %v2125_v22, %s4451_s8  ;;  %2204 = vrot.lane.b32.xlu2 %v2122_v26, %s4451_s8  ;;  %v4039_v26 = vld [vmem:[%s4536_s30 + $0x28] sm:$0xf] }
 0x1ad   : > { %v1852_v31 = vpop.permute.xlu1 %1851 }
 0x1ae   : > { %1938 = vst.msk [vmem:[#allocation2 + $0x28] sm:$0xf] %vm1927_vm10, %v1852_v31  ;;  %v1850_v34 = vpop.permute.xlu0 %1849  ;;  %v1866_v35 = vpop.permute.xlu2 %1865 }
 0x1af   : > { %1937 = vst.msk [vmem:[#allocation2 + $0x24] sm:$0xf] %vm1927_vm10, %v1850_v34  ;;  %v4042_v34 = vld [vmem:[%s4536_s30 + $0x3c] sm:$0xf] }
 0x1b0   : > { %1945 = vst.msk [vmem:[#allocation2 + $0x44] sm:$0xf] %vm1927_vm10, %v1866_v35 }
 0x1b3   : > { %2214 = vrot.lane.b32.xlu1 %v2139_v30, %s4451_s8 }
 0x1b4   : > { %2212 = vrot.lane.b32.xlu0 %v2136_v38, %s4451_s8  ;;  %2210 = vrot.lane.b32.xlu2 %v2132_v43, %s4451_s8  ;;  %v4045_v38 = vld [vmem:[%s4536_s30 + $0x4c] sm:$0xf] }
 0x1b5   : > { %v1858_v47 = vpop.permute.xlu1 %1857 }
 0x1b6   : > { %1941 = vst.msk [vmem:[#allocation2 + $0x34] sm:$0xf] %vm1927_vm10, %v1858_v47  ;;  %v1856_v51 = vpop.permute.xlu0 %1855  ;;  %v1872_v54 = vpop.permute.xlu2 %1871 }
 0x1b7   : > { %1940 = vst.msk [vmem:[#allocation2 + $0x30] sm:$0xf] %vm1927_vm10, %v1856_v51 }
 0x1b8   : > { %1948 = vst.msk [vmem:[#allocation2 + $0x50] sm:$0xf] %vm1927_vm10, %v1872_v54  ;;  %v4052_v54 = vld [vmem:[%s4536_s30 + $0x78] sm:$0xf] }
 0x1bb   : > { %2220 = vrot.lane.b32.xlu1 %v2150_v56, %s4451_s8  ;;  %v2831_v56 = vshrl.u32 %v4104_v48, 16  ;;  %v4069_v48 = vld [vmem:[%s4536_s30 + $0x1c] sm:$0xf] }
 0x1bc   : > { %2218 = vrot.lane.b32.xlu0 %v2146_v58, %s4451_s8  ;;  %2216 = vrot.lane.b32.xlu2 %v2143_v61, %s4451_s8  ;;  %v4050_v58 = vld [vmem:[%s4536_s30 + $0x6c] sm:$0xf]  ;;  %v4049_v61 = vld [vmem:[%s4536_s30 + $0x64] sm:$0xf]  ;;  %v2552_v60 = vshll.u32 %v4069_v48, 16 }
 0x1bd   : > { %v1864_v55 = vpop.permute.xlu1 %1863  ;;  %v2833_v52 = vrot.slane %v2831_v56, 4  ;;  %v4080_v56 = vld [vmem:[%s4536_s30 + $0x48] sm:$0xf] }
 0x1be   : > { %1944 = vst.msk [vmem:[#allocation2 + $0x40] sm:$0xf] %vm1927_vm10, %v1864_v55  ;;  %v1862_v2 = vpop.permute.xlu0 %1861  ;;  %v1878_v6 = vpop.permute.xlu2 %1877  ;;  %v2836_v55 = vrot.slane %v2834_v57, 5 }
 0x1bf   : > { %1943 = vst.msk [vmem:[#allocation2 + $0x3c] sm:$0xf] %vm1927_vm10, %v1862_v2  ;;  %v4105_v2 = vld [vmem:[%s4536_s30 + $0xac] sm:$0xf] }
 0x1c0   : > { %1951 = vst.msk [vmem:[#allocation2 + $0x5c] sm:$0xf] %vm1927_vm10, %v1878_v6  ;;  %v4094_v6 = vld [vmem:[%s4536_s30 + $0x80] sm:$0x1]  ;;  %v2840_v12 = vshll.u32 %v4105_v2, 16 }
 0x1c1   : > { %v2754_v15 = vshll.u32 %v4094_v6, 16 }
 0x1c3   : > { %2226 = vrot.lane.b32.xlu1 %v2160_v7, %s4451_s8  ;;  %v2737_v7 = vrot.slane %v2735_v62, 4  ;;  %v2652_v62 = vshrl.u32 %v4081_v50, 16 }
 0x1c4   : > { %2224 = vrot.lane.b32.xlu0 %v2157_v8, %s4451_s8  ;;  %2222 = vrot.lane.b32.xlu2 %v2153_v11, %s4451_s8  ;;  %v2740_v8 = vrot.slane %v2738_v63, 5  ;;  %v2837_v11 = vor.u32 %v2836_v55, %v2833_v52  ;;  %v2639_v55 = vshrl.u32 %v4080_v56, 16 }
 0x1c5   : > { %v1870_v13 = vpop.permute.xlu1 %1869 }
 0x1c6   : > { %1947 = vst.msk [vmem:[#allocation2 + $0x4c] sm:$0xf] %vm1927_vm10, %v1870_v13  ;;  %v1868_v16 = vpop.permute.xlu0 %1867  ;;  %v1884_v18 = vpop.permute.xlu2 %1883  ;;  %v4060_v13 = vld [vmem:[%s4536_s30 + $0xa8] sm:$0xf] }
 0x1c7   : > { %1946 = vst.msk [vmem:[#allocation2 + $0x48] sm:$0xf] %vm1927_vm10, %v1868_v16  ;;  %v2844_v16 = vshrl.u32 %v4105_v2, 16  ;;  %v2556_v2 = vshrl.u32 %v4069_v48, 16 }
 0x1c8   : > { %1954 = vst.msk [vmem:[#allocation2 + $0x68] sm:$0xf] %vm1927_vm10, %v1884_v18  ;;  %v2741_v18 = vor.u32 %v2740_v8, %v2737_v7  ;;  %v2554_v7 = vrot.slane %v2552_v60, 5 }
 0x1cb   : > { %2365 = vrot.lane.b32.xlu1 %v4036_v19, %s4452_s9  ;;  %v2838_v19 = vrot.slane %v2837_v11, 4 }
 0x1cc   : > { %2230 = vrot.lane.b32.xlu0 %v2167_v20, %s4451_s8  ;;  %2228 = vrot.lane.b32.xlu2 %v2164_v21, %s4451_s8  ;;  %v2842_v20 = vrot.slane %v2840_v12, 5  ;;  %v4141_v21 = vld [vmem:[%s4536_s30 + $0x7c] sm:$0xf] }
 0x1cd   : > { %v1876_v22 = vpop.permute.xlu1 %1875 }
 0x1ce   : > { %1950 = vst.msk [vmem:[#allocation2 + $0x58] sm:$0xf] %vm1927_vm10, %v1876_v22  ;;  %v1874_v23 = vpop.permute.xlu0 %1873  ;;  %v1890_v24 = vpop.permute.xlu2 %1889 }
 0x1cf   : > { %1949 = vst.msk [vmem:[#allocation2 + $0x54] sm:$0xf] %vm1927_vm10, %v1874_v23  ;;  %v2752_v23 = vrot.slane %v2751_v14, 4  ;;  %v2641_v14 = vrot.slane %v2639_v55, 4 }
 0x1d0   : > { %1957 = vst.msk [vmem:[#allocation2 + $0x74] sm:$0xf] %vm1927_vm10, %v1890_v24  ;;  %v2756_v24 = vrot.slane %v2754_v15, 5 }
 0x1d3   : > { %2371 = vrot.lane.b32.xlu1 %v4039_v26, %s4452_s9  ;;  %v4068_v26 = vld [vmem:[%s4536_s30 + $0x18] sm:$0xf] }
 0x1d4   : > { %2369 = vrot.lane.b32.xlu0 %v4038_v27, %s4452_s9  ;;  %2367 = vrot.lane.b32.xlu2 %v4037_v28, %s4452_s9  ;;  %v2742_v28 = vrot.slane %v2741_v18, 4  ;;  %v2558_v18 = vrot.slane %v2556_v2, 4  ;;  %v4096_v2 = vld [vmem:[%s4536_s30 + $0x88] sm:$0xf] }
 0x1d5   : > { %v1882_v29 = vpop.permute.xlu1 %1881 }
 0x1d6   : > { %1953 = vst.msk [vmem:[#allocation2 + $0x64] sm:$0xf] %vm1927_vm10, %v1882_v29  ;;  %v1880_v31 = vpop.permute.xlu0 %1879  ;;  %v2169_v32 = vpop.permute.xlu2 %2168  ;;  %v2846_v29 = vrot.slane %v2844_v16, 4 }
 0x1d7   : > { %1952 = vst.msk [vmem:[#allocation2 + $0x60] sm:$0xf] %vm1927_vm10, %v1880_v31  ;;  %v3209_v31 = vrot.slane %v4141_v21, 5 }
 0x1d8   : > { %2265 = vst.msk [vmem:[#allocation2] sm:$0xf] %vm2264_vm11, %v2169_v32 }
 0x1db   : > { %2377 = vrot.lane.b32.xlu1 %v4042_v34, %s4452_s9  ;;  %v4106_v34 = vld [vmem:[%s4536_s30 + $0xb0] sm:$0x1] }
 0x1dc   : > { %2375 = vrot.lane.b32.xlu0 %v4041_v36, %s4452_s9  ;;  %2373 = vrot.lane.b32.xlu2 %v4040_v33, %s4452_s9  ;;  %v2843_v36 = vsel %vm4547_vm2, %v2838_v19, %v2842_v20  ;;  %v4142_v33 = vld [vmem:[%s4536_s30 + $0x80] sm:$0x1] }
 0x1dd   : > { %v1888_v37 = vpop.permute.xlu1 %1887 }
 0x1de   : > { %1956 = vst.msk [vmem:[#allocation2 + $0x70] sm:$0xf] %vm1927_vm10, %v1888_v37  ;;  %v1886_v35 = vpop.permute.xlu0 %1885  ;;  %v2175_v30 = vpop.permute.xlu2 %2174  ;;  %v2543_v37 = vshrl.u32 %v4068_v26, 16 }
 0x1df   : > { %1955 = vst.msk [vmem:[#allocation2 + $0x6c] sm:$0xf] %vm1927_vm10, %v1886_v35  ;;  %v2546_v35 = vshll.u32 %v4068_v26, 16 }
 0x1e0   : > { %2268 = vst.msk [vmem:[#allocation2 + $0xc] sm:$0xf] %vm2264_vm11, %v2175_v30  ;;  %v2757_v30 = vsel %vm4547_vm2, %v2752_v23, %v2756_v24 }
 0x1e3   : > { %2383 = vrot.lane.b32.xlu1 %v4045_v38, %s4452_s9  ;;  %v4140_v38 = vld [vmem:[%s4536_s30 + $0x78] sm:$0xe] }
 0x1e4   : > { %2381 = vrot.lane.b32.xlu0 %v4044_v39, %s4452_s9  ;;  %2379 = vrot.lane.b32.xlu2 %v4043_v40, %s4452_s9  ;;  %v2747_v39 = vsel %vm4547_vm2, %v2742_v28, %v2746_v3  ;;  %v2847_v40 = vor.u32 %v2846_v29, %v2842_v20  ;;  %v4154_v3 = vld [vmem:[%s4536_s30 + $0xb0] sm:$0x1]  ;;  %v4070_v20 = vld [vmem:[%s4536_s30 + $0x20] sm:$0x1]  ;;  %v2559_v28 = vor.u32 %v2558_v18, %v2554_v7 }
 0x1e5   : > { %v1894_v41 = vpop.permute.xlu1 %1893  ;;  %v3240_v12 = vrot.slane %v4154_v3, 5  ;;  %v2562_v29 = vshll.u32 %v4070_v20, 16  ;;  %v4108_v3 = vld [vmem:[%s4536_s30 + $0xb8] sm:$0xf] }
 0x1e6   : > { %1959 = vst.msk [vmem:[#allocation2 + $0x7c] sm:$0xf] %vm1927_vm10, %v1894_v41  ;;  %v1892_v42 = vpop.permute.xlu0 %1891  ;;  %v2181_v43 = vpop.permute.xlu2 %2180  ;;  %v2850_v41 = vshll.u32 %v4106_v34, 16  ;;  %v2848_v53 = vrot.slane %v2847_v40, 4 }
 0x1e7   : > { %1958 = vst.msk [vmem:[#allocation2 + $0x78] sm:$0xf] %vm1927_vm10, %v1892_v42  ;;  %v3211_v42 = vrot.slane %v3209_v31, 4 }
 0x1e8   : > { %2271 = vst.msk [vmem:[#allocation2 + $0x18] sm:$0xf] %vm2264_vm11, %v2181_v43  ;;  %v3212_v43 = vrot.slane %v4142_v33, 5 }
 0x1ea   : > { %v3213_v57 = vsel %vm4722_vm6, %v3211_v42, %v3212_v43  ;;  %v4129_v42 = vld [vmem:[%s4536_s30 + $0x4c] sm:$0xf] }
 0x1eb   : > { %2389 = vrot.lane.b32.xlu1 %v4048_v44, %s4452_s9  ;;  %v4172_v44 = vrot.slane %v4140_v38, 9  ;;  %v3181_v48 = vrot.slane %v4129_v42, 5 }
 0x1ec   : > { %2387 = vrot.lane.b32.xlu0 %v4047_v45, %s4452_s9  ;;  %2385 = vrot.lane.b32.xlu2 %v4046_v46, %s4452_s9  ;;  %v2545_v45 = vrot.slane %v2543_v37, 4  ;;  %v2548_v46 = vrot.slane %v2546_v35, 5  ;;  %v4117_v37 = vld [vmem:[%s4536_s30 + $0x1c] sm:$0xf]  ;;  %v2560_v35 = vrot.slane %v2559_v28, 4 }
 0x1ed   : > { %v2173_v47 = vpop.permute.xlu1 %2172  ;;  %v3210_v63 = vsel %vm4722_vm6, %v4172_v44, %v3209_v31  ;;  %v3153_v43 = vrot.slane %v4117_v37, 5  ;;  %v4118_v44 = vld [vmem:[%s4536_s30 + $0x20] sm:$0x1]  ;;  %v4063_v37 = vld [vmem:[%s4536_s30 + $0xb8] sm:$0xf] }
 0x1ee   : > { %2267 = vst.msk [vmem:[#allocation2 + $0x8] sm:$0xf] %vm2264_vm11, %v2173_v47  ;;  %v2171_v49 = vpop.permute.xlu0 %2170  ;;  %v2187_v51 = vpop.permute.xlu2 %2186  ;;  %v2549_v59 = vor.u32 %v2548_v46, %v2545_v45  ;;  %v4116_v46 = vld [vmem:[%s4536_s30 + $0x18] sm:$0xe] }
 0x1ef   : > { %2266 = vst.msk [vmem:[#allocation2 + $0x4] sm:$0xf] %vm2264_vm11, %v2171_v49  ;;  %v4153_v49 = vld [vmem:[%s4536_s30 + $0xac] sm:$0xf] }
 0x1f0   : > { %2274 = vst.msk [vmem:[#allocation2 + $0x24] sm:$0xf] %vm2264_vm11, %v2187_v51  ;;  %v3237_v52 = vrot.slane %v4153_v49, 5  ;;  %v2550_v6 = vrot.slane %v2549_v59, 4 }
 0x1f2   : > { %v3239_v11 = vrot.slane %v3237_v52, 4  ;;  %v2555_v21 = vsel %vm4547_vm2, %v2550_v6, %v2554_v7  ;;  %v4107_v7 = vld [vmem:[%s4536_s30 + $0xb4] sm:$0xf] }
 0x1f3   : > { %2397 = vrot.lane.b32.xlu1 %v4052_v54, %s4452_s9  ;;  %v2852_v54 = vrot.slane %v2850_v41, 5  ;;  %v4128_v41 = vld [vmem:[%s4536_s30 + $0x48] sm:$0xe] }
 0x1f4   : > { %2393 = vrot.lane.b32.xlu0 %v4050_v58, %s4452_s9  ;;  %2391 = vrot.lane.b32.xlu2 %v4049_v61, %s4452_s9  ;;  %v2648_v61 = vshll.u32 %v4081_v50, 16  ;;  %v3241_v24 = vsel %vm4722_vm6, %v3239_v11, %v3240_v12  ;;  %v3155_v50 = vrot.slane %v3153_v43, 4  ;;  %v2768_v11 = vshll.u32 %v4096_v2, 16 }
 0x1f5   : > { %v2179_v0 = vpop.permute.xlu1 %2178  ;;  %v2853_v4 = vsel %vm4547_vm2, %v2848_v53, %v2852_v54  ;;  %v4095_v53 = vld [vmem:[%s4536_s30 + $0x84] sm:$0xf]  ;;  %v2864_v12 = vshll.u32 %v4108_v3, 16 }
 0x1f6   : > { %2270 = vst.msk [vmem:[#allocation2 + $0x14] sm:$0xf] %vm2264_vm11, %v2179_v0  ;;  %v2177_v5 = vpop.permute.xlu0 %2176  ;;  %v2193_v9 = vpop.permute.xlu2 %2192  ;;  %v2642_v0 = vshll.u32 %v4080_v56, 16  ;;  %v2650_v8 = vrot.slane %v2648_v61, 5  ;;  %v4164_v56 = vrot.slane %v4116_v46, 9  ;;  %v2759_v59 = vshrl.u32 %v4095_v53, 16 }
 0x1f7   : > { %2269 = vst.msk [vmem:[#allocation2 + $0x10] sm:$0xf] %vm2264_vm11, %v2177_v5  ;;  %v4152_v5 = vld [vmem:[%s4536_s30 + $0xa8] sm:$0xe]  ;;  %v2762_v60 = vshll.u32 %v4095_v53, 16  ;;  %v2770_v20 = vrot.slane %v2768_v11, 5 }
 0x1f8   : > { %2277 = vst.msk [vmem:[#allocation2 + $0x30] sm:$0xf] %vm2264_vm11, %v2193_v9  ;;  %v2654_v9 = vrot.slane %v2652_v62, 4  ;;  %v2644_v15 = vrot.slane %v2642_v0, 5  ;;  %v3154_v62 = vsel %vm4722_vm6, %v4164_v56, %v3153_v43  ;;  %v4155_v53 = vld [vmem:[%s4536_s30 + $0xb4] sm:$0xe] }
 0x1f9   : > { %v2764_v55 = vrot.slane %v2762_v60, 5 }
 0x1fa   : > { %v2645_v26 = vor.u32 %v2644_v15, %v2641_v14  ;;  %v4054_v14 = vld [vmem:[%s4536_s30 + $0x84] sm:$0xf]  ;;  %v2855_v15 = vshrl.u32 %v4107_v7, 16 }
 0x1fb   : > { %2415 = vrot.lane.b32.xlu1 %v4061_v10, %s4452_s9 }
 0x1fc   : > { %2413 = vrot.lane.b32.xlu0 %v4060_v13, %s4452_s9  ;;  %2399 = vrot.lane.b32.xlu2 %v4053_v17, %s4452_s9  ;;  %v4082_v13 = vld [vmem:[%s4536_s30 + $0x50] sm:$0x1]  ;;  %v4176_v17 = vrot.slane %v4152_v5, 9  ;;  %v3183_v5 = vrot.slane %v3181_v48, 4 }
 0x1fd   : > { %v2185_v22 = vpop.permute.xlu1 %2184  ;;  %v2658_v23 = vshll.u32 %v4082_v13, 16  ;;  %v2868_v13 = vshrl.u32 %v4108_v3, 16 }
 0x1fe   : > { %2273 = vst.msk [vmem:[#allocation2 + $0x20] sm:$0xf] %vm2264_vm11, %v2185_v22  ;;  %v2183_v27 = vpop.permute.xlu0 %2182  ;;  %v2199_v32 = vpop.permute.xlu2 %2198  ;;  %v2655_v22 = vor.u32 %v2654_v9, %v2650_v8 }
 0x1ff   : > { %2272 = vst.msk [vmem:[#allocation2 + $0x1c] sm:$0xf] %vm2264_vm11, %v2183_v27  ;;  %v3238_v27 = vsel %vm4722_vm6, %v4176_v17, %v3237_v52  ;;  %v2761_v52 = vrot.slane %v2759_v59, 4  ;;  %v2772_v17 = vshrl.u32 %v4096_v2, 16 }
 0x200   : > { %2280 = vst.msk [vmem:[#allocation2 + $0x3c] sm:$0xf] %vm2264_vm11, %v2199_v32  ;;  %v2656_v31 = vrot.slane %v2655_v22, 4  ;;  %v2660_v32 = vrot.slane %v2658_v23, 5  ;;  %v2870_v22 = vrot.slane %v2868_v13, 4 }
 0x203   : > { %2974 = vrot.lane.b32.xlu1 %v2843_v36, %s4453_s10  ;;  %v2646_v36 = vrot.slane %v2645_v26, 4  ;;  %v2857_v26 = vrot.slane %v2855_v15, 4 }
 0x204   : > { %2960 = vrot.lane.b32.xlu0 %v2757_v30, %s4453_s10  ;;  %2958 = vrot.lane.b32.xlu2 %v2747_v39, %s4453_s10  ;;  %v2564_v30 = vrot.slane %v2562_v29, 5  ;;  %v2661_v39 = vsel %vm4547_vm2, %v2656_v31, %v2660_v32  ;;  %v2774_v29 = vrot.slane %v2772_v17, 4  ;;  %v4097_v32 = vld [vmem:[%s4536_s30 + $0x8c] sm:$0x1] }
 0x205   : > { %v2191_v47 = vpop.permute.xlu1 %2190  ;;  %v2651_v40 = vsel %vm4547_vm2, %v2646_v36, %v2650_v8  ;;  %v4055_v8 = vld [vmem:[%s4536_s30 + $0x88] sm:$0xf] }
 0x206   : > { %2276 = vst.msk [vmem:[#allocation2 + $0x2c] sm:$0xf] %vm2264_vm11, %v2191_v47  ;;  %v2189_v51 = vpop.permute.xlu0 %2188  ;;  %v2205_v58 = vpop.permute.xlu2 %2204  ;;  %v2565_v45 = vsel %vm4547_vm2, %v2560_v35, %v2564_v30  ;;  %v4168_v47 = vrot.slane %v4128_v41, 9  ;;  %v4062_v30 = vld [vmem:[%s4536_s30 + $0xb4] sm:$0xf] }
 0x207   : > { %2275 = vst.msk [vmem:[#allocation2 + $0x28] sm:$0xf] %vm2264_vm11, %v2189_v51  ;;  %v3156_v51 = vrot.slane %v4118_v44, 5  ;;  %v4144_v44 = vld [vmem:[%s4536_s30 + $0x88] sm:$0xf] }
 0x208   : > { %2283 = vst.msk [vmem:[#allocation2 + $0x48] sm:$0xf] %vm2264_vm11, %v2205_v58  ;;  %v3182_v58 = vsel %vm4722_vm6, %v4168_v47, %v3181_v48  ;;  %v3216_v59 = vrot.slane %v4144_v44, 5 }
 0x209   : > { %v3157_v61 = vsel %vm4722_vm6, %v3155_v50, %v3156_v51 }
 0x20b   : > { %3297 = vrot.lane.b32.xlu1 %v3213_v57, %s4454_s11 }
 0x20c   : > { %3295 = vrot.lane.b32.xlu0 %v3210_v63, %s4454_s11  ;;  %2976 = vrot.lane.b32.xlu2 %v2853_v4, %s4453_s10  ;;  %v4130_v63 = vld [vmem:[%s4536_s30 + $0x50] sm:$0x1] }
 0x20d   : > { %v2197_v10 = vpop.permute.xlu1 %2196  ;;  %v3184_v6 = vrot.slane %v4130_v63, 5 }
 0x20e   : > { %2279 = vst.msk [vmem:[#allocation2 + $0x38] sm:$0xf] %vm2264_vm11, %v2197_v10  ;;  %v2195_v16 = vpop.permute.xlu0 %2194  ;;  %v2211_v19 = vpop.permute.xlu2 %2210  ;;  %v2765_v10 = vor.u32 %v2764_v55, %v2761_v52  ;;  %v4143_v52 = vld [vmem:[%s4536_s30 + $0x84] sm:$0xe]  ;;  %v4177_v55 = vrot.slane %v4155_v53, 9 }
 0x20f   : > { %2278 = vst.msk [vmem:[#allocation2 + $0x34] sm:$0xf] %vm2264_vm11, %v2195_v16  ;;  %v2858_v16 = vshll.u32 %v4107_v7, 16  ;;  %v3185_v18 = vsel %vm4722_vm6, %v3183_v5, %v3184_v6  ;;  %v3218_v5 = vrot.slane %v3216_v59, 4  ;;  %v4073_v7 = vld [vmem:[%s4536_s30 + $0x2c] sm:$0x1] }
 0x210   : > { %2286 = vst.msk [vmem:[#allocation2 + $0x54] sm:$0xf] %vm2264_vm11, %v2211_v19  ;;  %v2766_v19 = vrot.slane %v2765_v10, 4  ;;  %v4173_v11 = vrot.slane %v4143_v52, 9  ;;  %v2586_v17 = vshll.u32 %v4073_v7, 16 }
 0x213   : > { %2926 = vrot.lane.b32.xlu1 %v2555_v21, %s4453_s10  ;;  %v2866_v21 = vrot.slane %v2864_v12, 5  ;;  %v4084_v12 = vld [vmem:[%s4536_s30 + $0x58] sm:$0xf] }
 0x214   : > { %3313 = vrot.lane.b32.xlu0 %v3241_v24, %s4454_s11  ;;  %3311 = vrot.lane.b32.xlu2 %v3238_v27, %s4454_s11  ;;  %v4109_v24 = vld [vmem:[%s4536_s30 + $0xbc] sm:$0x1]  ;;  %v2860_v27 = vrot.slane %v2858_v16, 5 }
 0x215   : > { %v2203_v34 = vpop.permute.xlu1 %2202  ;;  %v2871_v36 = vor.u32 %v2870_v22, %v2866_v21  ;;  %v3217_v22 = vsel %vm4722_vm6, %v4173_v11, %v3216_v59 }
 0x216   : > { %2282 = vst.msk [vmem:[#allocation2 + $0x44] sm:$0xf] %vm2264_vm11, %v2203_v34  ;;  %v2201_v33 = vpop.permute.xlu0 %2200  ;;  %v2217_v38 = vpop.permute.xlu2 %2216  ;;  %v2771_v34 = vsel %vm4547_vm2, %v2766_v19, %v2770_v20  ;;  %v2861_v35 = vor.u32 %v2860_v27, %v2857_v26  ;;  %v4157_v26 = vld [vmem:[%s4536_s30 + $0xbc] sm:$0x1] }
 0x217   : > { %2281 = vst.msk [vmem:[#allocation2 + $0x40] sm:$0xf] %vm2264_vm11, %v2201_v33  ;;  %v2874_v33 = vshll.u32 %v4109_v24, 16 }
 0x218   : > { %2289 = vst.msk [vmem:[#allocation2 + $0x60] sm:$0xf] %vm2264_vm11, %v2217_v38  ;;  %v2775_v38 = vor.u32 %v2774_v29, %v2770_v20  ;;  %v2862_v43 = vrot.slane %v2861_v35, 4  ;;  %v2672_v20 = vshll.u32 %v4084_v12, 16  ;;  %v3247_v35 = vrot.slane %v4157_v26, 5 }
 0x219   : > { %v2876_v41 = vrot.slane %v2874_v33, 5 }
 0x21a   : > { %v2776_v47 = vrot.slane %v2775_v38, 4 }
 0x21b   : > { %2944 = vrot.lane.b32.xlu1 %v2661_v39, %s4453_s10  ;;  %v2778_v39 = vshll.u32 %v4097_v32, 16  ;;  %v4085_v32 = vld [vmem:[%s4536_s30 + $0x5c] sm:$0x1] }
 0x21c   : > { %2942 = vrot.lane.b32.xlu0 %v2651_v40, %s4453_s10  ;;  %2928 = vrot.lane.b32.xlu2 %v2565_v45, %s4453_s10  ;;  %v2872_v40 = vrot.slane %v2871_v36, 4  ;;  %v4072_v45 = vld [vmem:[%s4536_s30 + $0x28] sm:$0xf] }
 0x21d   : > { %v2209_v49 = vpop.permute.xlu1 %2208  ;;  %v2780_v48 = vrot.slane %v2778_v39, 5  ;;  %v2580_v56 = vshrl.u32 %v4072_v45, 16 }
 0x21e   : > { %2285 = vst.msk [vmem:[#allocation2 + $0x50] sm:$0xf] %vm2264_vm11, %v2209_v49  ;;  %v2207_v54 = vpop.permute.xlu0 %2206  ;;  %v2223_v57 = vpop.permute.xlu2 %2222  ;;  %v4071_v49 = vld [vmem:[%s4536_s30 + $0x24] sm:$0xf]  ;;  %v2877_v51 = vsel %vm4547_vm2, %v2872_v40, %v2876_v41 }
 0x21f   : > { %2284 = vst.msk [vmem:[#allocation2 + $0x4c] sm:$0xf] %vm2264_vm11, %v2207_v54  ;;  %v2576_v54 = vshll.u32 %v4072_v45, 16  ;;  %v2567_v60 = vshrl.u32 %v4071_v49, 16  ;;  %v2781_v63 = vsel %vm4547_vm2, %v2776_v47, %v2780_v48  ;;  %v2582_v3 = vrot.slane %v2580_v56, 4 }
 0x220   : > { %2292 = vst.msk [vmem:[#allocation2 + $0x6c] sm:$0xf] %vm2264_vm11, %v2223_v57  ;;  %v2867_v57 = vsel %vm4547_vm2, %v2862_v43, %v2866_v21  ;;  %v2676_v21 = vshrl.u32 %v4084_v12, 16  ;;  %v4120_v43 = vld [vmem:[%s4536_s30 + $0x28] sm:$0xf]  ;;  %v2682_v45 = vshll.u32 %v4085_v32, 16 }
 0x221   : > { %v2578_v2 = vrot.slane %v2576_v54, 5  ;;  %v4132_v54 = vld [vmem:[%s4536_s30 + $0x58] sm:$0xf] }
 0x222   : > { %v2678_v36 = vrot.slane %v2676_v21, 4  ;;  %v2684_v53 = vrot.slane %v2682_v45, 5 }
 0x223   : > { %3279 = vrot.lane.b32.xlu1 %v3182_v58, %s4454_s11  ;;  %v4156_v58 = vld [vmem:[%s4536_s30 + $0xb8] sm:$0xf]  ;;  %v2583_v16 = vor.u32 %v2582_v3, %v2578_v2 }
 0x224   : > { %3265 = vrot.lane.b32.xlu0 %v3157_v61, %s4454_s11  ;;  %3263 = vrot.lane.b32.xlu2 %v3154_v62, %s4454_s11  ;;  %v2570_v61 = vshll.u32 %v4071_v49, 16  ;;  %v4145_v62 = vld [vmem:[%s4536_s30 + $0x8c] sm:$0x1]  ;;  %v3160_v49 = vrot.slane %v4120_v43, 5 }
 0x225   : > { %v2215_v0 = vpop.permute.xlu1 %2214  ;;  %v3219_v6 = vrot.slane %v4145_v62, 5  ;;  %v2584_v27 = vrot.slane %v2583_v16, 4  ;;  %v4133_v62 = vld [vmem:[%s4536_s30 + $0x5c] sm:$0x1] }
 0x226   : > { %2288 = vst.msk [vmem:[#allocation2 + $0x5c] sm:$0xf] %vm2264_vm11, %v2215_v0  ;;  %v2213_v4 = vpop.permute.xlu0 %2212  ;;  %v2229_v9 = vpop.permute.xlu2 %2228  ;;  %v3244_v0 = vrot.slane %v4156_v58, 5  ;;  %v3162_v7 = vrot.slane %v3160_v49, 4 }
 0x227   : > { %2287 = vst.msk [vmem:[#allocation2 + $0x58] sm:$0xf] %vm2264_vm11, %v2213_v4 }
 0x228   : > { %2295 = vst.msk [vmem:[#allocation2 + $0x78] sm:$0xf] %vm2264_vm11, %v2229_v9  ;;  %v2572_v9 = vrot.slane %v2570_v61, 5  ;;  %v3245_v15 = vsel %vm4722_vm6, %v4177_v55, %v3244_v0  ;;  %v4121_v55 = vld [vmem:[%s4536_s30 + $0x2c] sm:$0x1] }
 0x22b   : > { %2403 = vrot.lane.b32.xlu1 %v4055_v8, %s4452_s9  ;;  %v2569_v8 = vrot.slane %v2567_v60, 4  ;;  %v3188_v60 = vrot.slane %v4132_v54, 5 }
 0x22c   : > { %2401 = vrot.lane.b32.xlu0 %v4054_v14, %s4452_s9  ;;  %3281 = vrot.lane.b32.xlu2 %v3185_v18, %s4454_s11  ;;  %v4083_v14 = vld [vmem:[%s4536_s30 + $0x54] sm:$0xf]  ;;  %v3220_v18 = vsel %vm4722_vm6, %v3218_v5, %v3219_v6 }
 0x22d   : > { %v2221_v23 = vpop.permute.xlu1 %2220  ;;  %v2573_v19 = vor.u32 %v2572_v9, %v2569_v8  ;;  %v2666_v24 = vshll.u32 %v4083_v14, 16  ;;  %v4099_v5 = vld [vmem:[%s4536_s30 + $0x94] sm:$0xf]  ;;  %v3163_v8 = vrot.slane %v4121_v55, 5  ;;  %v4098_v9 = vld [vmem:[%s4536_s30 + $0x90] sm:$0xf] }
 0x22e   : > { %2291 = vst.msk [vmem:[#allocation2 + $0x68] sm:$0xf] %vm2264_vm11, %v2221_v23  ;;  %v2219_v28 = vpop.permute.xlu0 %2218  ;;  %v2368_v31 = vpop.permute.xlu2 %2367  ;;  %v2663_v23 = vshrl.u32 %v4083_v14, 16  ;;  %v2792_v12 = vshll.u32 %v4099_v5, 16  ;;  %v2786_v16 = vshll.u32 %v4098_v9, 16 }
 0x22f   : > { %2290 = vst.msk [vmem:[#allocation2 + $0x64] sm:$0xf] %vm2264_vm11, %v2219_v28  ;;  %v2588_v28 = vrot.slane %v2586_v17, 5  ;;  %v2668_v38 = vrot.slane %v2666_v24, 5  ;;  %v3428_v17 = vld [vmem:[%s6072_s1 + $0x10] sm:$0x3] }
 0x230   : > { %2463 = vst.msk [vmem:[#allocation2 + $0x4] sm:$0xf] %vm2461_vm12, %v2368_v31  ;;  %v2574_v31 = vrot.slane %v2573_v19, 4  ;;  %v3522_v19 = vunpack.c.l.b16 %v3428_v17  ;;  %v4100_v24 = vld [vmem:[%s4536_s30 + $0x98] sm:$0x1] }
 0x231   : > { %v2589_v40 = vsel %vm4547_vm2, %v2584_v27, %v2588_v28  ;;  %v2788_v27 = vrot.slane %v2786_v16, 5 }
 0x232   : > { %v2579_v41 = vsel %vm4547_vm2, %v2574_v31, %v2578_v2  ;;  %v3191_v2 = vrot.slane %v4133_v62, 5 }
 0x233   : > { %2962 = vrot.lane.b32.xlu1 %v2771_v34, %s4453_s10  ;;  %v2674_v34 = vrot.slane %v2672_v20, 5  ;;  %v5683_v20 = vrot.slane %v2792_v12, 5 }
 0x234   : > { %2419 = vrot.lane.b32.xlu0 %v4063_v37, %s4452_s9  ;;  %2417 = vrot.lane.b32.xlu2 %v4062_v30, %s4452_s9  ;;  %v3246_v37 = vrot.slane %v3244_v0, 4  ;;  %v2665_v30 = vrot.slane %v2663_v23, 4  ;;  %v3190_v0 = vrot.slane %v3188_v60, 4 }
 0x235   : > { %v2227_v42 = vpop.permute.xlu1 %2226  ;;  %v2679_v44 = vor.u32 %v2678_v36, %v2674_v34  ;;  %v4110_v36 = vld [vmem:[%s4536_s30 + $0xc0] sm:$0xf] }
 0x236   : > { %2294 = vst.msk [vmem:[#allocation2 + $0x74] sm:$0xf] %vm2264_vm11, %v2227_v42  ;;  %v2225_v46 = vpop.permute.xlu0 %2224  ;;  %v2374_v50 = vpop.permute.xlu2 %2373  ;;  %v4119_v42 = vld [vmem:[%s4536_s30 + $0x24] sm:$0xe]  ;;  %v2669_v47 = vor.u32 %v2668_v38, %v2665_v30  ;;  %v3192_v11 = vsel %vm4722_vm6, %v3190_v0, %v3191_v2  ;;  %v4057_v30 = vld [vmem:[%s4536_s30 + $0x94] sm:$0xf] }
 0x237   : > { %2293 = vst.msk [vmem:[#allocation2 + $0x70] sm:$0xf] %vm2264_vm11, %v2225_v46  ;;  %v3248_v46 = vsel %vm4722_vm6, %v3246_v37, %v3247_v35  ;;  %v4165_v48 = vrot.slane %v4119_v42, 9  ;;  %v2802_v35 = vshll.u32 %v4100_v24, 16  ;;  %v2879_v42 = vshrl.u32 %v4110_v36, 16 }
 0x238   : > { %2466 = vst.msk [vmem:[#allocation2 + $0x10] sm:$0xf] %vm2461_vm12, %v2374_v50  ;;  %v2882_v43 = vshll.u32 %v4110_v36, 16  ;;  %v4148_v24 = vld [vmem:[%s4536_s30 + $0x98] sm:$0x1] }
 0x239   : > { %v3161_v59 = vsel %vm4722_vm6, %v4165_v48, %v3160_v49  ;;  %v2881_v54 = vrot.slane %v2879_v42, 4  ;;  %v4087_v36 = vld [vmem:[%s4536_s30 + $0x64] sm:$0xf] }
 0x23b   : > { %2980 = vrot.lane.b32.xlu1 %v2877_v51, %s4453_s10  ;;  %v2680_v51 = vrot.slane %v2679_v44, 4  ;;  %v4289_v44 = vld [vmem:[%s6072_s1] sm:$0xff] }
 0x23c   : > { %2978 = vrot.lane.b32.xlu0 %v2867_v57, %s4453_s10  ;;  %2964 = vrot.lane.b32.xlu2 %v2781_v63, %s4453_s10  ;;  %v2670_v57 = vrot.slane %v2669_v47, 4  ;;  %v4131_v63 = vld [vmem:[%s4536_s30 + $0x54] sm:$0xe] }
 0x23d   : > { %v2366_v4 = vpop.permute.xlu1 %2365  ;;  %v2685_v61 = vsel %vm4547_vm2, %v2680_v51, %v2684_v53  ;;  %v4112_v53 = vld [vmem:[%s4536_s30 + $0xc8] sm:$0x1] }
 0x23e   : > { %2462 = vst.msk [vmem:[#allocation2] sm:$0xf] %vm2461_vm12, %v2366_v4  ;;  %v2231_v10 = vpop.permute.xlu0 %2230  ;;  %v2380_v13 = vpop.permute.xlu2 %2379  ;;  %v2675_v52 = vsel %vm4547_vm2, %v2670_v57, %v2674_v34  ;;  %v4169_v4 = vrot.slane %v4131_v63, 9  ;;  %v4290_v34 = vld [vmem:[%s6072_s1 + $0x8] sm:$0xff]  ;;  %v2898_v63 = vshll.u32 %v4112_v53, 16 }
 0x23f   : > { %2296 = vst.msk [vmem:[#allocation2 + $0x7c] sm:$0xf] %vm2264_vm11, %v2231_v10 }
 0x240   : > { %2469 = vst.msk [vmem:[#allocation2 + $0x1c] sm:$0xf] %vm2461_vm12, %v2380_v13  ;;  %v2796_v13 = vshrl.u32 %v4099_v5, 16  ;;  %v3189_v14 = vsel %vm4722_vm6, %v4169_v4, %v3188_v60  ;;  %v4146_v60 = vld [vmem:[%s4536_s30 + $0x90] sm:$0xe]  ;;  %v2900_v5 = vrot.slane %v2898_v63, 5 }
 0x241   : > { %v4174_v0 = vrot.slane %v4146_v60, 9 }
 0x242   : > { %v2798_v21 = vrot.slane %v2796_v13, 4 }
 0x243   : > { %3315 = vrot.lane.b32.xlu1 %v3245_v15, %s4454_s11  ;;  %v2783_v15 = vshrl.u32 %v4098_v9, 16 }
 0x244   : > { %3301 = vrot.lane.b32.xlu0 %v3220_v18, %s4454_s11  ;;  %3299 = vrot.lane.b32.xlu2 %v3217_v22, %s4454_s11  ;;  %v3164_v18 = vsel %vm4722_vm6, %v3162_v7, %v3163_v8  ;;  %v3525_v22 = vpack.c.b16 %v3522_v19, %v3522_v19  ;;  %v2799_v37 = vor.u32 %v2798_v21, %v5683_v20  ;;  %v4086_v7 = vld [vmem:[%s4536_s30 + $0x60] sm:$0xf] }
 0x245   : > { %v2372_v29 = vpop.permute.xlu1 %2371  ;;  %v2785_v26 = vrot.slane %v2783_v15, 4  ;;  %v2687_v15 = vshrl.u32 %v4086_v7, 16  ;;  %v2690_v16 = vshll.u32 %v4086_v7, 16 }
 0x246   : > { %2465 = vst.msk [vmem:[#allocation2 + $0xc] sm:$0xf] %vm2461_vm12, %v2372_v29  ;;  %v2370_v33 = vpop.permute.xlu0 %2369  ;;  %v2386_v39 = vpop.permute.xlu2 %2385  ;;  %v4111_v29 = vld [vmem:[%s4536_s30 + $0xc4] sm:$0xf]  ;;  %v3579_v31 = vsel %vm3577_vm13, %v3525_v22, 0  ;;  %v2800_v45 = vrot.slane %v2799_v37, 4 }
 0x247   : > { %2464 = vst.msk [vmem:[#allocation2 + $0x8] sm:$0xf] %vm2461_vm12, %v2370_v33  ;;  %4293 = vmatpush.bf16.msra.mxu2 %v3579_v31  ;;  %4294 = vmatpush.bf16.msra.mxu3 %v3579_v31  ;;  %v4064_v33 = vld [vmem:[%s4536_s30 + $0xc0] sm:$0xf]  ;;  %v2789_v38 = vor.u32 %v2788_v27, %v2785_v26  ;;  %v4074_v22 = vld [vmem:[%s4536_s30 + $0x30] sm:$0xf] }
 0x248   : > { %2472 = vst.msk [vmem:[#allocation2 + $0x28] sm:$0xf] %vm2461_vm12, %v2386_v39  ;;  %3586 = vmatpush.bf16.msra.mxu0 %v3579_v31  ;;  %4292 = vmatpush.bf16.msra.mxu1 %v3579_v31  ;;  %v2888_v39 = vshll.u32 %v4111_v29, 16  ;;  %v2591_v26 = vshrl.u32 %v4074_v22, 16  ;;  %v2594_v27 = vshll.u32 %v4074_v22, 16  ;;  %v2689_v31 = vrot.slane %v2687_v15, 4 }
 0x249   : > { %v2790_v48 = vrot.slane %v2789_v38, 4 }
 0x24a   : > { %v5704_v49 = vrot.slane %v2888_v39, 5  ;;  %v3226_v39 = vrot.slane %v4148_v24, 5 }
 0x24b   : > { %2932 = vrot.lane.b32.xlu1 %v2589_v40, %s4453_s10  ;;  %v2892_v40 = vshrl.u32 %v4111_v29, 16  ;;  %4296 = vmatpush.bf16.msra.mxu2 %v4290_v34 }
 0x24c   : > { %2930 = vrot.lane.b32.xlu0 %v2579_v41, %s4453_s10  ;;  %3317 = vrot.lane.b32.xlu2 %v3248_v46, %s4454_s11  ;;  %v4056_v41 = vld [vmem:[%s4536_s30 + $0x90] sm:$0xf]  ;;  %v2804_v46 = vrot.slane %v2802_v35, 5 }
 0x24d   : > { %v2378_v50 = vpop.permute.xlu1 %2377  ;;  %4297 = vmatpush.bf16.msra.mxu3 %v4290_v34  ;;  %3587 = vmatpush.bf16.msra.mxu0 %v4290_v34 }
 0x24e   : > { %2468 = vst.msk [vmem:[#allocation2 + $0x18] sm:$0xf] %vm2461_vm12, %v2378_v50  ;;  %v2376_v56 = vpop.permute.xlu0 %2375  ;;  %v2392_v58 = vpop.permute.xlu2 %2391  ;;  %v2894_v50 = vrot.slane %v2892_v40, 4  ;;  %4295 = vmatpush.bf16.msra.mxu1 %v4290_v34  ;;  %v2593_v40 = vrot.slane %v2591_v26, 4 }
 0x24f   : > { %2467 = vst.msk [vmem:[#allocation2 + $0x14] sm:$0xf] %vm2461_vm12, %v2376_v56  ;;  %v2884_v56 = vrot.slane %v2882_v43, 5  ;;  %4299 = vmatpush.bf16.msra.mxu2 %v4289_v44 }
 0x250   : > { %2475 = vst.msk [vmem:[#allocation2 + $0x34] sm:$0xf] %vm2461_vm12, %v2392_v58  ;;  %v2805_v58 = vsel %vm4547_vm2, %v2800_v45, %v2804_v46  ;;  %v2895_v62 = vor.u32 %v2894_v50, %v5704_v49  ;;  %v2696_v45 = vshll.u32 %v4087_v36, 16 }
 0x251   : > { %4300 = vmatpush.bf16.msra.mxu3 %v4289_v44  ;;  %3588 = vmatpush.bf16.msra.mxu0 %v4289_v44  ;;  %v2885_v55 = vor.u32 %v2884_v56, %v2881_v54 }
 0x252   : > { %4298 = vmatpush.bf16.msra.mxu1 %v4289_v44  ;;  %v2896_v4 = vrot.slane %v2895_v62, 4  ;;  %v2698_v54 = vrot.slane %v2696_v45, 5 }
 0x253   : > { %3267 = vrot.lane.b32.xlu1 %v3161_v59, %s4454_s11  ;;  %v2795_v59 = vsel %vm4547_vm2, %v2790_v48, %v5683_v20  ;;  %v2886_v9 = vrot.slane %v2885_v55, 4 }
 0x254   : > { %2948 = vrot.lane.b32.xlu0 %v2685_v61, %s4453_s10  ;;  %2946 = vrot.lane.b32.xlu2 %v2675_v52, %s4453_s10  ;;  %v4147_v61 = vld [vmem:[%s4536_s30 + $0x94] sm:$0xf]  ;;  %v4065_v52 = vld [vmem:[%s4536_s30 + $0xc4] sm:$0xf]  ;;  %v2901_v17 = vsel %vm4547_vm2, %v2896_v4, %v2900_v5 }
 0x255   : > { %v2384_v3 = vpop.permute.xlu1 %2383  ;;  %v3223_v2 = vrot.slane %v4147_v61, 5  ;;  %v2891_v21 = vsel %vm4547_vm2, %v2886_v9, %v5704_v49  ;;  %v2700_v49 = vshrl.u32 %v4087_v36, 16  ;;  %v4122_v4 = vld [vmem:[%s4536_s30 + $0x30] sm:$0xe] }
 0x256   : > { %2471 = vst.msk [vmem:[#allocation2 + $0x24] sm:$0xf] %vm2461_vm12, %v2384_v3  ;;  %v2382_v6 = vpop.permute.xlu0 %2381  ;;  %v2400_v10 = vpop.permute.xlu2 %2399 }
 0x257   : > { %2470 = vst.msk [vmem:[#allocation2 + $0x20] sm:$0xf] %vm2461_vm12, %v2382_v6  ;;  %v4159_v6 = vld [vmem:[%s4536_s30 + $0xc4] sm:$0xf]  ;;  %v3224_v13 = vsel %vm4722_vm6, %v4174_v0, %v3223_v2  ;;  %v3225_v38 = vrot.slane %v3223_v2, 4  ;;  %v2702_v62 = vrot.slane %v2700_v49, 4 }
 0x258   : > { %2479 = vst.msk [vmem:[#allocation2 + $0x44] sm:$0xf] %vm2461_vm12, %v2400_v10  ;;  %v4075_v10 = vld [vmem:[%s4536_s30 + $0x34] sm:$0xf] }
 0x259   : > { %v2600_v19 = vshll.u32 %v4075_v10, 16  ;;  %v2604_v20 = vshrl.u32 %v4075_v10, 16  ;;  %v3227_v50 = vsel %vm4722_vm6, %v3225_v38, %v3226_v39 }
 0x25b   : > { %3285 = vrot.lane.b32.xlu1 %v3192_v11, %s4454_s11  ;;  %v4160_v11 = vld [vmem:[%s4536_s30 + $0xc8] sm:$0x1]  ;;  %v2602_v37 = vrot.slane %v2600_v19, 5  ;;  %v2606_v35 = vrot.slane %v2604_v20, 4 }
 0x25c   : > { %3283 = vrot.lane.b32.xlu0 %v3189_v14, %s4454_s11  ;;  %3269 = vrot.lane.b32.xlu2 %v3164_v18, %s4454_s11  ;;  %v3251_v14 = vrot.slane %v4159_v6, 5  ;;  %v4158_v18 = vld [vmem:[%s4536_s30 + $0xc0] sm:$0xe]  ;;  %v2703_v6 = vor.u32 %v2702_v62, %v2698_v54 }
 0x25d   : > { %v2390_v23 = vpop.permute.xlu1 %2389  ;;  %v4178_v29 = vrot.slane %v4158_v18, 9 }
 0x25e   : > { %2474 = vst.msk [vmem:[#allocation2 + $0x30] sm:$0xf] %vm2461_vm12, %v2390_v23  ;;  %v2388_v28 = vpop.permute.xlu0 %2387  ;;  %v2959_v32 = vpop.permute.xlu2 %2958  ;;  %v3254_v23 = vrot.slane %v4160_v11, 5  ;;  %v4166_v11 = vrot.slane %v4122_v4, 9  ;;  %v2704_v15 = vrot.slane %v2703_v6, 4 }
 0x25f   : > { %2473 = vst.msk [vmem:[#allocation2 + $0x2c] sm:$0xf] %vm2461_vm12, %v2388_v28  ;;  %v3253_v28 = vrot.slane %v3251_v14, 4  ;;  %v3252_v46 = vsel %vm4722_vm6, %v4178_v29, %v3251_v14 }
 0x261   : > { %v3255_v43 = vsel %vm4722_vm6, %v3253_v28, %v3254_v23  ;;  %v4134_v23 = vld [vmem:[%s4536_s30 + $0x60] sm:$0xe]  ;;  %v4113_v28 = vld [vmem:[%s4536_s30 + $0xcc] sm:$0xf] }
 0x263   : > { %2421 = vrot.lane.b32.xlu1 %v4064_v33, %s4452_s9  ;;  %v4076_v33 = vld [vmem:[%s4536_s30 + $0x38] sm:$0x1] }
 0x264   : > { %2407 = vrot.lane.b32.xlu0 %v4057_v30, %s4452_s9  ;;  %2405 = vrot.lane.b32.xlu2 %v4056_v41, %s4452_s9  ;;  %v2596_v41 = vrot.slane %v2594_v27, 5  ;;  %v2610_v48 = vshll.u32 %v4076_v33, 16  ;;  %v4058_v33 = vld [vmem:[%s4536_s30 + $0x9c] sm:$0xf] }
 0x265   : > { %v2398_v47 = vpop.permute.xlu1 %2397 }
 0x266   : > { %2478 = vst.msk [vmem:[#allocation2 + $0x40] sm:$0xf] %vm2461_vm12, %v2398_v47  ;;  %v2394_v51 = vpop.permute.xlu0 %2393  ;;  %v2977_v57 = vpop.permute.xlu2 %2976  ;;  %v2607_v47 = vor.u32 %v2606_v35, %v2602_v37  ;;  %v2906_v35 = vshll.u32 %v4113_v28, 16 }
 0x267   : > { %2476 = vst.msk [vmem:[#allocation2 + $0x38] sm:$0xf] %vm2461_vm12, %v2394_v51  ;;  %v2597_v51 = vor.u32 %v2596_v41, %v2593_v40  ;;  %v4101_v41 = vld [vmem:[%s4536_s30 + $0x9c] sm:$0xf] }
 0x268   : > { %3039 = vst.msk [vmem:[#allocation2 + $0x40] sm:$0xf] %vm3022_vm14, %v2959_v32  ;;  %v2692_v32 = vrot.slane %v2690_v16, 5  ;;  %v2908_v45 = vrot.slane %v2906_v35, 5 }
 0x269   : > { %v2598_v61 = vrot.slane %v2597_v51, 4  ;;  %v4103_v51 = vld [vmem:[%s4536_s30 + $0xa4] sm:$0x1] }
 0x26a   : > { %v2693_v44 = vor.u32 %v2692_v32, %v2689_v31  ;;  %v4102_v32 = vld [vmem:[%s4536_s30 + $0xa0] sm:$0xf]  ;;  %v2826_v62 = vshll.u32 %v4103_v51, 16 }
 0x26b   : > { %2968 = vrot.lane.b32.xlu1 %v2805_v58, %s4453_s10  ;;  %v2612_v58 = vrot.slane %v2610_v48, 5  ;;  %v2603_v5 = vsel %vm4547_vm2, %v2598_v61, %v2602_v37  ;;  %v2903_v37 = vshrl.u32 %v4113_v28, 16  ;;  %v2816_v38 = vshll.u32 %v4102_v32, 16  ;;  %v4089_v28 = vld [vmem:[%s4536_s30 + $0x6c] sm:$0xf] }
 0x26c   : > { %2966 = vrot.lane.b32.xlu0 %v2795_v59, %s4453_s10  ;;  %2423 = vrot.lane.b32.xlu2 %v4065_v52, %s4452_s9  ;;  %v2694_v53 = vrot.slane %v2693_v44, 4  ;;  %v4123_v59 = vld [vmem:[%s4536_s30 + $0x34] sm:$0xf]  ;;  %v4088_v52 = vld [vmem:[%s4536_s30 + $0x68] sm:$0x1]  ;;  %v2820_v39 = vshrl.u32 %v4102_v32, 16 }
 0x26d   : > { %v2416_v3 = vpop.permute.xlu1 %2415  ;;  %v3167_v0 = vrot.slane %v4123_v59, 5  ;;  %v2706_v7 = vshll.u32 %v4088_v52, 16  ;;  %v2905_v44 = vrot.slane %v2903_v37, 4  ;;  %v2818_v48 = vrot.slane %v2816_v38, 5  ;;  %v4059_v52 = vld [vmem:[%s4536_s30 + $0xa0] sm:$0xf] }
 0x26e   : > { %2487 = vst.msk [vmem:[#allocation2 + $0x64] sm:$0xf] %vm2461_vm12, %v2416_v3  ;;  %v2414_v8 = vpop.permute.xlu0 %2413  ;;  %v3312_v12 = vpop.permute.xlu2 %3311  ;;  %v2699_v55 = vsel %vm4547_vm2, %v2694_v53, %v2698_v54  ;;  %v4124_v3 = vld [vmem:[%s4536_s30 + $0x38] sm:$0x1]  ;;  %v2822_v49 = vrot.slane %v2820_v39, 4  ;;  %v2828_v6 = vrot.slane %v2826_v62, 5 }
 0x26f   : > { %2486 = vst.msk [vmem:[#allocation2 + $0x60] sm:$0xf] %vm2461_vm12, %v2414_v8  ;;  %v3169_v8 = vrot.slane %v3167_v0, 4  ;;  %v3170_v9 = vrot.slane %v4124_v3, 5  ;;  %v2708_v16 = vrot.slane %v2706_v7, 5  ;;  %v3168_v19 = vsel %vm4722_vm6, %v4166_v11, %v3167_v0 }
 0x270   : > { %3048 = vst.msk [vmem:[#allocation2 + $0x64] sm:$0xf] %vm3022_vm14, %v2977_v57  ;;  %v2608_v57 = vrot.slane %v2607_v47, 4  ;;  %v4114_v47 = vld [vmem:[%s4536_s30 + $0xd0] sm:$0xf]  ;;  %v2823_v61 = vor.u32 %v2822_v49, %v2818_v48  ;;  %v2711_v35 = vshrl.u32 %v4089_v28, 16 }
 0x271   : > { %v3171_v18 = vsel %vm4722_vm6, %v3169_v8, %v3170_v9  ;;  %v2709_v22 = vsel %vm4547_vm2, %v2704_v15, %v2708_v16  ;;  %v2912_v59 = vshll.u32 %v4114_v47, 16  ;;  %v4150_v7 = vld [vmem:[%s4536_s30 + $0xa0] sm:$0xf]  ;;  %v4163_v39 = vld [vmem:[%s4536_s30 + $0xd4] sm:$0x1] }
 0x272   : > { %v2613_v2 = vsel %vm4547_vm2, %v2608_v57, %v2612_v58  ;;  %v4067_v57 = vld [vmem:[%s4536_s30 + $0xd0] sm:$0xf]  ;;  %v2909_v58 = vor.u32 %v2908_v45, %v2905_v44  ;;  %v3230_v15 = vrot.slane %v4150_v7, 5  ;;  %v4161_v44 = vld [vmem:[%s4536_s30 + $0xcc] sm:$0xe]  ;;  %v2713_v49 = vrot.slane %v2711_v35, 4 }
 0x273   : > { %3303 = vrot.lane.b32.xlu1 %v3224_v13, %s4454_s11 }
 0x274   : > { %2984 = vrot.lane.b32.xlu0 %v2901_v17, %s4453_s10  ;;  %2982 = vrot.lane.b32.xlu2 %v2891_v21, %s4453_s10  ;;  %v4136_v21 = vld [vmem:[%s4536_s30 + $0x68] sm:$0x1]  ;;  %v2910_v0 = vrot.slane %v2909_v58, 4 }
 0x275   : > { %v2975_v34 = vpop.permute.xlu1 %2974  ;;  %v3198_v27 = vrot.slane %v4136_v21, 5 }
 0x276   : > { %3047 = vst.msk [vmem:[#allocation2 + $0x60] sm:$0xf] %vm3022_vm14, %v2975_v34  ;;  %v2961_v30 = vpop.permute.xlu0 %2960  ;;  %v2929_v42 = vpop.permute.xlu2 %2928  ;;  %v4170_v34 = vrot.slane %v4134_v23, 9 }
 0x277   : > { %3040 = vst.msk [vmem:[#allocation2 + $0x44] sm:$0xf] %vm3022_vm14, %v2961_v30 }
 0x278   : > { %3384 = vst.msk [vmem:[#allocation2 + $0x60] sm:$0xf] %vm3359_vm15, %v3312_v12  ;;  %v4135_v12 = vld [vmem:[%s4536_s30 + $0x64] sm:$0xf] }
 0x279   : > { %3024 = vst.msk [vmem:[#allocation2 + $0x4] sm:$0xf] %vm3022_vm14, %v2929_v42  ;;  %v3195_v20 = vrot.slane %v4135_v12, 5  ;;  %v2807_v42 = vshrl.u32 %v4101_v41, 16 }
 0x27b   : > { %3321 = vrot.lane.b32.xlu1 %v3255_v43, %s4454_s11  ;;  %v3197_v26 = vrot.slane %v3195_v20, 4  ;;  %v3196_v40 = vsel %vm4722_vm6, %v4170_v34, %v3195_v20  ;;  %v2810_v43 = vshll.u32 %v4101_v41, 16  ;;  %v2809_v53 = vrot.slane %v2807_v42, 4 }
 0x27c   : > { %3319 = vrot.lane.b32.xlu0 %v3252_v46, %s4454_s11  ;;  %3305 = vrot.lane.b32.xlu2 %v3227_v50, %s4454_s11 }
 0x27d   : > { %v3298_v56 = vpop.permute.xlu1 %3297  ;;  %v3199_v30 = vsel %vm4722_vm6, %v3197_v26, %v3198_v27  ;;  %v2812_v54 = vrot.slane %v2810_v43, 5  ;;  %v4162_v27 = vld [vmem:[%s4536_s30 + $0xd0] sm:$0xf]  ;;  %v4077_v43 = vld [vmem:[%s4536_s30 + $0x3c] sm:$0xf] }
 0x27e   : > { %3377 = vst.msk [vmem:[#allocation2 + $0x44] sm:$0xf] %vm3359_vm15, %v3298_v56  ;;  %v3296_v60 = vpop.permute.xlu0 %3295  ;;  %v3264_v63 = vpop.permute.xlu2 %3263  ;;  %v3258_v37 = vrot.slane %v4162_v27, 5  ;;  %v2615_v45 = vshrl.u32 %v4077_v43, 16 }
 0x27f   : > { %3376 = vst.msk [vmem:[#allocation2 + $0x40] sm:$0xf] %vm3359_vm15, %v3296_v60  ;;  %v4066_v60 = vld [vmem:[%s4536_s30 + $0xcc] sm:$0xf] }
 0x283   : > { %2950 = vrot.lane.b32.xlu1 %v2699_v55, %s4453_s10  ;;  %v2813_v55 = vor.u32 %v2812_v54, %v2809_v53  ;;  %v4090_v53 = vld [vmem:[%s4536_s30 + $0x70] sm:$0xf]  ;;  %v4079_v54 = vld [vmem:[%s4536_s30 + $0x44] sm:$0x1] }
 0x284   : > { %2936 = vrot.lane.b32.xlu0 %v2613_v2, %s4453_s10  ;;  %2934 = vrot.lane.b32.xlu2 %v2603_v5, %s4453_s10  ;;  %v2914_v2 = vrot.slane %v2912_v59, 5  ;;  %v2824_v5 = vrot.slane %v2823_v61, 4  ;;  %v4179_v59 = vrot.slane %v4161_v44, 9 }
 0x285   : > { %v2927_v10 = vpop.permute.xlu1 %2926 }
 0x286   : > { %3023 = vst.msk [vmem:[#allocation2] sm:$0xf] %vm3022_vm14, %v2927_v10  ;;  %v3314_v13 = vpop.permute.xlu0 %3313  ;;  %v4281_v14 = vld [vmem:[#allocation2 + $0x40] sm:$0xff]  ;;  %v3282_v17 = vpop.permute.xlu2 %3281  ;;  %v2814_v10 = vrot.slane %v2813_v55, 4  ;;  %v2829_v16 = vsel %vm4547_vm2, %v2824_v5, %v2828_v6  ;;  %v2720_v55 = vshll.u32 %v4090_v53, 16  ;;  %v3259_v5 = vsel %vm4722_vm6, %v4179_v59, %v3258_v37 }
 0x287   : > { %3385 = vst.msk [vmem:[#allocation2 + $0x64] sm:$0xf] %vm3359_vm15, %v3314_v13  ;;  %4260 = vmatmul.msk.bf16.vlgmr.msra.gmra.mxu2 %vm3528_vm0, %v4281_v14  ;;  %v4115_v13 = vld [vmem:[%s4536_s30 + $0xd4] sm:$0x1]  ;;  %v2915_v14 = vsel %vm4547_vm2, %v2910_v0, %v2914_v2 }
 0x288   : > { %3360 = vst.msk [vmem:[#allocation2] sm:$0xf] %vm3359_vm15, %v3264_v63  ;;  %v2916_v63 = vshrl.u32 %v4114_v47, 16  ;;  %v2922_v21 = vshll.u32 %v4115_v13, 16  ;;  %v3260_v47 = vrot.slane %v3258_v37, 4 }
 0x28a   : > { %v2918_v11 = vrot.slane %v2916_v63, 4  ;;  %v2924_v34 = vrot.slane %v2922_v21, 5  ;;  %v4051_v63 = vld [vmem:[%s4536_s30 + $0x70] sm:$0xf]  ;;  %v4127_v21 = vld [vmem:[%s4536_s30 + $0x44] sm:$0x1] }
 0x28b   : > { %3273 = vrot.lane.b32.xlu1 %v3171_v18, %s4454_s11  ;;  %v4149_v18 = vld [vmem:[%s4536_s30 + $0x9c] sm:$0xe] }
 0x28c   : > { %3271 = vrot.lane.b32.xlu0 %v3168_v19, %s4454_s11  ;;  %2952 = vrot.lane.b32.xlu2 %v2709_v22, %s4453_s10  ;;  %v2819_v19 = vsel %vm4547_vm2, %v2814_v10, %v2818_v48  ;;  %v2919_v20 = vor.u32 %v2918_v11, %v2914_v2  ;;  %v3232_v22 = vrot.slane %v3230_v15, 4  ;;  %v4175_v26 = vrot.slane %v4149_v18, 9 }
 0x28d   : > { %v2945_v24 = vpop.permute.xlu1 %2944  ;;  %v3261_v48 = vrot.slane %v4163_v39, 5 }
 0x28e   : > { %3032 = vst.msk [vmem:[#allocation2 + $0x24] sm:$0xf] %vm3022_vm14, %v2945_v24  ;;  %v2943_v29 = vpop.permute.xlu0 %2942  ;;  %v4285_v31 = vld [vmem:[#allocation2 + $0x60] sm:$0xff]  ;;  %v2418_v36 = vpop.permute.xlu2 %2417  ;;  %v2920_v32 = vrot.slane %v2919_v20, 4  ;;  %v3231_v38 = vsel %vm4722_vm6, %v4175_v26, %v3230_v15 }
 0x28f   : > { %3031 = vst.msk [vmem:[#allocation2 + $0x20] sm:$0xf] %vm3022_vm14, %v2943_v29  ;;  %4264 = vmatmul.msk.bf16.vlgmr.msra.gmra.mxu3 %vm3528_vm0, %v4285_v31  ;;  %v4078_v31 = vld [vmem:[%s4536_s30 + $0x40] sm:$0xf]  ;;  %v3262_v0 = vsel %vm4722_vm6, %v3260_v47, %v3261_v48 }
 0x290   : > { %3369 = vst.msk [vmem:[#allocation2 + $0x24] sm:$0xf] %vm3359_vm15, %v3282_v17  ;;  %v4151_v17 = vld [vmem:[%s4536_s30 + $0xa4] sm:$0x1]  ;;  %v2628_v41 = vshrl.u32 %v4078_v31, 16  ;;  %v2925_v42 = vsel %vm4547_vm2, %v2920_v32, %v2924_v34 }
 0x291   : > { %2488 = vst.msk [vmem:[#allocation2 + $0x68] sm:$0xf] %vm2461_vm12, %v2418_v36  ;;  %v3233_v23 = vrot.slane %v4151_v17, 5  ;;  %v4091_v17 = vld [vmem:[%s4536_s30 + $0x74] sm:$0x1] }
 0x292   : > { %v2730_v26 = vshll.u32 %v4091_v17, 16  ;;  %v4138_v34 = vld [vmem:[%s4536_s30 + $0x70] sm:$0xf] }
 0x293   : > { %2409 = vrot.lane.b32.xlu1 %v4058_v33, %s4452_s9  ;;  %v3234_v33 = vsel %vm4722_vm6, %v3232_v22, %v3233_v23  ;;  %v4125_v22 = vld [vmem:[%s4536_s30 + $0x3c] sm:$0xe] }
 0x294   : > { %3289 = vrot.lane.b32.xlu0 %v3199_v30, %s4454_s11  ;;  %3287 = vrot.lane.b32.xlu2 %v3196_v40, %s4454_s11  ;;  %v2714_v30 = vshll.u32 %v4089_v28, 16  ;;  %v2624_v40 = vshll.u32 %v4078_v31, 16  ;;  %v3177_v28 = vrot.slane %v4127_v21, 5  ;;  %v4167_v32 = vrot.slane %v4125_v22, 9 }
 0x295   : > { %v3280_v46 = vpop.permute.xlu1 %3279  ;;  %v2732_v35 = vrot.slane %v2730_v26, 5 }
 0x296   : > { %3368 = vst.msk [vmem:[#allocation2 + $0x20] sm:$0xf] %vm3359_vm15, %v3280_v46  ;;  %v3266_v50 = vpop.permute.xlu0 %3265  ;;  %v2965_v56 = vpop.permute.xlu2 %2964  ;;  %v2618_v46 = vshll.u32 %v4077_v43, 16  ;;  %v4137_v43 = vld [vmem:[%s4536_s30 + $0x6c] sm:$0xe] }
 0x297   : > { %3361 = vst.msk [vmem:[#allocation2 + $0x4] sm:$0xf] %vm3359_vm15, %v3266_v50  ;;  %v2716_v50 = vrot.slane %v2714_v30, 5  ;;  %v4171_v48 = vrot.slane %v4137_v43, 9 }
 0x298   : > { %v2620_v61 = vrot.slane %v2618_v46, 5 }
 0x29b   : > { %2427 = vrot.lane.b32.xlu1 %v4067_v57, %s4452_s9  ;;  %v2630_v57 = vrot.slane %v2628_v41, 4  ;;  %v4139_v41 = vld [vmem:[%s4536_s30 + $0x74] sm:$0x1] }
 0x29c   : > { %2425 = vrot.lane.b32.xlu0 %v4066_v60, %s4452_s9  ;;  %2411 = vrot.lane.b32.xlu2 %v4059_v52, %s4452_s9  ;;  %v2617_v60 = vrot.slane %v2615_v45, 4  ;;  %v2717_v52 = vor.u32 %v2716_v50, %v2713_v49  ;;  %v3205_v46 = vrot.slane %v4139_v41, 5 }
 0x29d   : > { %v2404_v3 = vpop.permute.xlu1 %2403  ;;  %v4277_v4 = vld [vmem:[#allocation2 + $0x20] sm:$0xff] }
 0x29e   : > { %2481 = vst.msk [vmem:[#allocation2 + $0x4c] sm:$0xf] %vm2461_vm12, %v2404_v3  ;;  %v2402_v8 = vpop.permute.xlu0 %2401  ;;  %v4273_v9 = vld [vmem:[#allocation2] sm:$0xff]  ;;  %4256 = vmatmul.msk.bf16.vlgmr.msra.gmra.mxu1 %vm3528_vm0, %v4277_v4  ;;  %v3300_v12 = vpop.permute.xlu2 %3299  ;;  %v2634_v3 = vshll.u32 %v4079_v54, 16  ;;  %v2724_v4 = vshrl.u32 %v4090_v53, 16  ;;  %v2621_v6 = vor.u32 %v2620_v61, %v2617_v60  ;;  %v2718_v7 = vrot.slane %v2717_v52, 4 }
 0x29f   : > { %2480 = vst.msk [vmem:[#allocation2 + $0x48] sm:$0xf] %vm2461_vm12, %v2402_v8  ;;  %4252 = vmatmul.msk.bf16.vlgmr.msra.gmra.mxu0 %vm3528_vm0, %v4273_v9  ;;  %v2722_v8 = vrot.slane %v2720_v55, 5 }
 0x2a0   : > { %3042 = vst.msk [vmem:[#allocation2 + $0x4c] sm:$0xf] %vm3022_vm14, %v2965_v56  ;;  %v2626_v56 = vrot.slane %v2624_v40, 5  ;;  %v2636_v11 = vrot.slane %v2634_v3, 5  ;;  %v2726_v15 = vrot.slane %v2724_v4, 4  ;;  %v3202_v40 = vrot.slane %v4138_v34, 5 }
 0x2a1   : > { %v2723_v18 = vsel %vm4547_vm2, %v2718_v7, %v2722_v8 }
 0x2a2   : > { %v2631_v2 = vor.u32 %v2630_v57, %v2626_v56  ;;  %v3204_v45 = vrot.slane %v3202_v40, 4  ;;  %v3203_v50 = vsel %vm4722_vm6, %v4171_v48, %v3202_v40 }
 0x2a3   : > { %2986 = vrot.lane.b32.xlu1 %v2915_v14, %s4453_s10  ;;  %v2622_v14 = vrot.slane %v2621_v6, 4 }
 0x2a4   : > { %2972 = vrot.lane.b32.xlu0 %v2829_v16, %s4453_s10  ;;  %2970 = vrot.lane.b32.xlu2 %v2819_v19, %s4453_s10  ;;  %v2632_v10 = vrot.slane %v2631_v2, 4  ;;  %v3206_v25 = vsel %vm4722_vm6, %v3204_v45, %v3205_v46 }
 0x2a5   : > { %v2963_v24 = vpop.permute.xlu1 %2962  ;;  %v2627_v23 = vsel %vm4547_vm2, %v2622_v14, %v2626_v56 }
 0x2a6   : > { %3041 = vst.msk [vmem:[#allocation2 + $0x48] sm:$0xf] %vm3022_vm14, %v2963_v24  ;;  %v2420_v29 = vpop.permute.xlu0 %2419  ;;  %v3318_v36 = vpop.permute.xlu2 %3317  ;;  %v2637_v20 = vsel %vm4547_vm2, %v2632_v10, %v2636_v11  ;;  %v2727_v24 = vor.u32 %v2726_v15, %v2722_v8 }
 0x2a7   : > { %2489 = vst.msk [vmem:[#allocation2 + $0x6c] sm:$0xf] %vm2461_vm12, %v2420_v29 }
 0x2a8   : > { %3378 = vst.msk [vmem:[#allocation2 + $0x48] sm:$0xf] %vm3359_vm15, %v3300_v12  ;;  %v4126_v12 = vld [vmem:[%s4536_s30 + $0x40] sm:$0xf]  ;;  %v2728_v37 = vrot.slane %v2727_v24, 4 }
 0x2a9   : > { %v3174_v19 = vrot.slane %v4126_v12, 5 }
 0x2ab   : > { %3309 = vrot.lane.b32.xlu1 %v3234_v33, %s4454_s11  ;;  %v3176_v27 = vrot.slane %v3174_v19, 4  ;;  %v3175_v39 = vsel %vm4722_vm6, %v4167_v32, %v3174_v19 }
 0x2ac   : > { %3307 = vrot.lane.b32.xlu0 %v3231_v38, %s4454_s11  ;;  %2988 = vrot.lane.b32.xlu2 %v2925_v42, %s4453_s10  ;;  %v2733_v42 = vsel %vm4547_vm2, %v2728_v37, %v2732_v35 }
 0x2ad   : > { %v2981_v51 = vpop.permute.xlu1 %2980  ;;  %v3178_v38 = vsel %vm4722_vm6, %v3176_v27, %v3177_v28 }
 0x2ae   : > { %3050 = vst.msk [vmem:[#allocation2 + $0x6c] sm:$0xf] %vm3022_vm14, %v2981_v51  ;;  %v2979_v58 = vpop.permute.xlu0 %2978  ;;  %v2947_v62 = vpop.permute.xlu2 %2946 }
 0x2af   : > { %3049 = vst.msk [vmem:[#allocation2 + $0x68] sm:$0xf] %vm3022_vm14, %v2979_v58 }
 0x2b0   : > { %3387 = vst.msk [vmem:[#allocation2 + $0x6c] sm:$0xf] %vm3359_vm15, %v3318_v36 }
 0x2b1   : > { %3033 = vst.msk [vmem:[#allocation2 + $0x28] sm:$0xf] %vm3022_vm14, %v2947_v62 }
 0x2b3   : > { %2395 = vrot.lane.b32.xlu1 %v4051_v63, %s4452_s9 }
 0x2b4   : > { %3325 = vrot.lane.b32.xlu0 %v3262_v0, %s4454_s11  ;;  %3323 = vrot.lane.b32.xlu2 %v3259_v5, %s4454_s11 }
 0x2b5   : > { %v3316_v9 = vpop.permute.xlu1 %3315 }
 0x2b6   : > { %3386 = vst.msk [vmem:[#allocation2 + $0x68] sm:$0xf] %vm3359_vm15, %v3316_v9  ;;  %v3302_v13 = vpop.permute.xlu0 %3301  ;;  %v3270_v16 = vpop.permute.xlu2 %3269 }
 0x2b7   : > { %3379 = vst.msk [vmem:[#allocation2 + $0x4c] sm:$0xf] %vm3359_vm15, %v3302_v13 }
 0x2bb   : > { %2954 = vrot.lane.b32.xlu1 %v2723_v18, %s4453_s10 }
 0x2bc   : > { %2940 = vrot.lane.b32.xlu0 %v2637_v20, %s4453_s10  ;;  %2938 = vrot.lane.b32.xlu2 %v2627_v23, %s4453_s10 }
 0x2bd   : > { %v2933_v29 = vpop.permute.xlu1 %2932  ;;  %v4286_v31 = vld [vmem:[#allocation2 + $0x68] sm:$0xff] }
 0x2be   : > { %3026 = vst.msk [vmem:[#allocation2 + $0xc] sm:$0xf] %vm3022_vm14, %v2933_v29  ;;  %v2931_v36 = vpop.permute.xlu0 %2930  ;;  %v4282_v33 = vld [vmem:[#allocation2 + $0x48] sm:$0xff]  ;;  %4265 = vmatmul.msk.bf16.gmra.mxu3 %vm3528_vm0, %v4286_v31  ;;  %v2406_v30 = vpop.permute.xlu2 %2405 }
 0x2bf   : > { %3025 = vst.msk [vmem:[#allocation2 + $0x8] sm:$0xf] %vm3022_vm14, %v2931_v36  ;;  %4261 = vmatmul.msk.bf16.gmra.mxu2 %vm3528_vm0, %v4282_v33 }
 0x2c0   : > { %3363 = vst.msk [vmem:[#allocation2 + $0xc] sm:$0xf] %vm3359_vm15, %v3270_v16  ;;  %v5937_v16 = vld [vmem:[%s6073_s2] ss:$0 sm:$0xff] }
 0x2c1   : > { %2482 = vst.msk [vmem:[#allocation2 + $0x50] sm:$0xf] %vm2461_vm12, %v2406_v30 }
 0x2c3   : > { %3277 = vrot.lane.b32.xlu1 %v3178_v38, %s4454_s11 }
 0x2c4   : > { %3275 = vrot.lane.b32.xlu0 %v3175_v39, %s4454_s11  ;;  %2956 = vrot.lane.b32.xlu2 %v2733_v42, %s4453_s10  ;;  %s3749_s10 = scalar_lea.hbm %s6074_s3, %s4291_s7 }
 0x2c5   : > { %v3268_v44 = vpop.permute.xlu1 %3267  ;;  %s3752_s18 = sshll.u32 %s3749_s10, 4  ;;  %s3753_s18 = int_to_ptr.hbm [resolvable:$true] %s3752_s18 }
 0x2c6   : > { %3362 = vst.msk [vmem:[#allocation2 + $0x8] sm:$0xf] %vm3359_vm15, %v3268_v44  ;;  %v2949_v47 = vpop.permute.xlu0 %2948  ;;  %v2424_v49 = vpop.permute.xlu2 %2423  ;;  %s4381_s19 = sshra.s32 %s3753_s18, 4  ;;  %s4382_s19 = int_to_ptr.hbm [resolvable:$true] %s4381_s19 }
 0x2c7   : > { %3034 = vst.msk [vmem:[#allocation2 + $0x2c] sm:$0xf] %vm3022_vm14, %v2949_v47  ;;  %s4383_s21 = scalar_lea.hbm %s4382_s19, 256  ;;  %p4388_p1 = scmp.lt.s32.totalorder %s4382_s19, %s6074_s3 }
 0x2c8   : > { %2491 = vst.msk [vmem:[#allocation2 + $0x74] sm:$0xf] %vm2461_vm12, %v2424_v49  ;;  %p4384_p12 = scmp.ne.s32.totalorder %s4382_s19, %s4383_s21  ;;  %p4389_p2 = scmp.lt.s32.totalorder %s4387_s27, %s4383_s21 }
 0x2ca   : > { %p4385_p13 = pnand %p4384_p12, %p4516_p4  ;;  %p4390_p3 = por %p4389_p2, %p4388_p1 }
 0x2cc   : > { %3293 = vrot.lane.b32.xlu0 %v3206_v25, %s4454_s11  ;;  %3291 = vrot.lane.b32.xlu2 %v3203_v50, %s4454_s11  ;;  %s3750_s11 = sshll.u32 %s5945_s6, 4  ;;  %p4386_p0 = pneg %p4385_p13  ;;  %s3751_s11 = int_to_ptr.vmem [resolvable:$true] %s3750_s11 }
 0x2cd   : > { %v3286_v51 = vpop.permute.xlu1 %3285  ;;  %v4274_v53 = vld [vmem:[#allocation2 + $0x8] sm:$0xff] }
 0x2ce   : > { %3371 = vst.msk [vmem:[#allocation2 + $0x2c] sm:$0xf] %vm3359_vm15, %v3286_v51  ;;  %v3284_v54 = vpop.permute.xlu0 %3283  ;;  %4253 = vmatmul.msk.bf16.gmra.mxu0 %vm3528_vm0, %v4274_v53  ;;  %v2983_v56 = vpop.permute.xlu2 %2982  ;;  %p4391_p5 = pnand %p4390_p3, %p4386_p0 }
 0x2cf   : > { %3370 = vst.msk [vmem:[#allocation2 + $0x28] sm:$0xf] %vm3359_vm15, %v3284_v54 }
 0x2d5   : > { %v2422_v57 = vpop.permute.xlu1 %2421 }
 0x2d6   : > { %2490 = vst.msk [vmem:[#allocation2 + $0x70] sm:$0xf] %vm2461_vm12, %v2422_v57  ;;  %v2408_v58 = vpop.permute.xlu0 %2407  ;;  %v4278_v1 = vld [vmem:[#allocation2 + $0x28] sm:$0xff]  ;;  %v3306_v59 = vpop.permute.xlu2 %3305 }
 0x2d7   : > { %2483 = vst.msk [vmem:[#allocation2 + $0x54] sm:$0xf] %vm2461_vm12, %v2408_v58  ;;  %4257 = vmatmul.msk.bf16.gmra.mxu1 %vm3528_vm0, %v4278_v1 }
 0x2d8   : > { %3051 = vst.msk [vmem:[#allocation2 + $0x70] sm:$0xf] %vm3022_vm14, %v2983_v56 }
 0x2dd   : > { %v2969_v60 = vpop.permute.xlu1 %2968 }
 0x2de   : > { %3044 = vst.msk [vmem:[#allocation2 + $0x54] sm:$0xf] %vm3022_vm14, %v2969_v60  ;;  %v2967_v61 = vpop.permute.xlu0 %2966  ;;  %v2935_v62 = vpop.permute.xlu2 %2934 }
 0x2df   : > { %3043 = vst.msk [vmem:[#allocation2 + $0x50] sm:$0xf] %vm3022_vm14, %v2967_v61 }
 0x2e0   : > { %3381 = vst.msk [vmem:[#allocation2 + $0x54] sm:$0xf] %vm3359_vm15, %v3306_v59 }
 0x2e1   : > { %3027 = vst.msk [vmem:[#allocation2 + $0x10] sm:$0xf] %vm3022_vm14, %v2935_v62 }
 0x2e5   : > { %v3304_v63 = vpop.permute.xlu1 %3303 }
 0x2e6   : > { %3380 = vst.msk [vmem:[#allocation2 + $0x50] sm:$0xf] %vm3359_vm15, %v3304_v63  ;;  %v2985_v52 = vpop.permute.xlu0 %2984  ;;  %v2953_v55 = vpop.permute.xlu2 %2952 }
 0x2e7   : > { %3052 = vst.msk [vmem:[#allocation2 + $0x74] sm:$0xf] %vm3022_vm14, %v2985_v52 }
 0x2e8   : > { %3036 = vst.msk [vmem:[#allocation2 + $0x34] sm:$0xf] %vm3022_vm14, %v2953_v55 }
 0x2ed   : > { %v3322_v0 = vpop.permute.xlu1 %3321  ;;  %v4283_v2 = vld [vmem:[#allocation2 + $0x50] sm:$0xff] }
 0x2ee   : > { %3389 = vst.msk [vmem:[#allocation2 + $0x74] sm:$0xf] %vm3359_vm15, %v3322_v0  ;;  %v3320_v3 = vpop.permute.xlu0 %3319  ;;  %4262 = vmatmul.msk.bf16.gmra.mxu2 %vm3528_vm0, %v4283_v2  ;;  %v3288_v4 = vpop.permute.xlu2 %3287 }
 0x2ef   : > { %3388 = vst.msk [vmem:[#allocation2 + $0x70] sm:$0xf] %vm3359_vm15, %v3320_v3 }
 0x2f5   : > { %v2951_v5 = vpop.permute.xlu1 %2950 }
 0x2f6   : > { %3035 = vst.msk [vmem:[#allocation2 + $0x30] sm:$0xf] %vm3022_vm14, %v2951_v5  ;;  %v2937_v6 = vpop.permute.xlu0 %2936  ;;  %v4287_v7 = vld [vmem:[#allocation2 + $0x70] sm:$0xff]  ;;  %v2412_v8 = vpop.permute.xlu2 %2411 }
 0x2f7   : > { %3028 = vst.msk [vmem:[#allocation2 + $0x14] sm:$0xf] %vm3022_vm14, %v2937_v6  ;;  %4266 = vmatmul.msk.bf16.gmra.mxu3 %vm3528_vm0, %v4287_v7 }
 0x2f8   : > { %3372 = vst.msk [vmem:[#allocation2 + $0x30] sm:$0xf] %vm3359_vm15, %v3288_v4 }
 0x2f9   : > { %2485 = vst.msk [vmem:[#allocation2 + $0x5c] sm:$0xf] %vm2461_vm12, %v2412_v8 }
 0x2fd   : > { %v3274_v9 = vpop.permute.xlu1 %3273 }
 0x2fe   : > { %3365 = vst.msk [vmem:[#allocation2 + $0x14] sm:$0xf] %vm3359_vm15, %v3274_v9  ;;  %v3272_v10 = vpop.permute.xlu0 %3271  ;;  %v2971_v11 = vpop.permute.xlu2 %2970 }
 0x2ff   : > { %3364 = vst.msk [vmem:[#allocation2 + $0x10] sm:$0xf] %vm3359_vm15, %v3272_v10 }
 0x305   : > { %v2410_v12 = vpop.permute.xlu1 %2409 }
 0x306   : > { %2484 = vst.msk [vmem:[#allocation2 + $0x58] sm:$0xf] %vm2461_vm12, %v2410_v12  ;;  %v3290_v13 = vpop.permute.xlu0 %3289  ;;  %v4275_v14 = vld [vmem:[#allocation2 + $0x10] sm:$0xff]  ;;  %v2989_v15 = vpop.permute.xlu2 %2988 }
 0x307   : > { %3373 = vst.msk [vmem:[#allocation2 + $0x34] sm:$0xf] %vm3359_vm15, %v3290_v13  ;;  %4254 = vmatmul.msk.bf16.gmra.mxu0 %vm3528_vm0, %v4275_v14 }
 0x308   : > { %3045 = vst.msk [vmem:[#allocation2 + $0x58] sm:$0xf] %vm3022_vm14, %v2971_v11 }
 0x30a   : > { %v3630_v17 = vpop.f32.mrf.mxu2 }
 0x30b   : > { %v3631_v18 = vadd.f32 %v5937_v16, %v3630_v17 }
 0x30d   : > { %v2428_v19 = vpop.permute.xlu1 %2427  ;;  %v3686_v20 = vmax.f32 %v3631_v18, 0.0 }
 0x30e   : > { %2493 = vst.msk [vmem:[#allocation2 + $0x7c] sm:$0xf] %vm2461_vm12, %v2428_v19  ;;  %v2426_v21 = vpop.permute.xlu0 %2425  ;;  %v4279_v22 = vld [vmem:[#allocation2 + $0x30] sm:$0xff]  ;;  %v3324_v23 = vpop.permute.xlu2 %3323 }
 0x30f   : > { %2492 = vst.msk [vmem:[#allocation2 + $0x78] sm:$0xf] %vm2461_vm12, %v2426_v21  ;;  %4258 = vmatmul.msk.bf16.gmra.mxu1 %vm3528_vm0, %v4279_v22 }
 0x310   : > { %3718 = vst [vmem:[%s5945_s6 + $0x80] sm:$0xff] %v3686_v20 }
 0x311   : > { %3054 = vst.msk [vmem:[#allocation2 + $0x7c] sm:$0xf] %vm3022_vm14, %v2989_v15 }
 0x312   : > { %v3632_v24 = vpop.f32.mrf.mxu2  ;;  %v3650_v26 = vpop.f32.mrf.mxu3 }
 0x313   : > { %v3633_v27 = vadd.f32 %v5937_v16, %v3632_v24  ;;  %v3651_v28 = vadd.f32 %v5937_v16, %v3650_v26 }
 0x315   : > { %v2987_v29 = vpop.permute.xlu1 %2986  ;;  %v3687_v31 = vmax.f32 %v3633_v27, 0.0  ;;  %v3694_v32 = vmax.f32 %v3651_v28, 0.0 }
 0x316   : > { %3053 = vst.msk [vmem:[#allocation2 + $0x78] sm:$0xf] %vm3022_vm14, %v2987_v29  ;;  %v2973_v34 = vpop.permute.xlu0 %2972  ;;  %v2939_v36 = vpop.permute.xlu2 %2938 }
 0x317   : > { %3046 = vst.msk [vmem:[#allocation2 + $0x5c] sm:$0xf] %vm3022_vm14, %v2973_v34 }
 0x318   : > { %3719 = vst [vmem:[%s5945_s6 + $0x88] sm:$0xff] %v3687_v31 }
 0x319   : > { %3726 = vst [vmem:[%s5945_s6 + $0xc0] sm:$0xff] %v3694_v32 }
 0x31a   : > { %3390 = vst.msk [vmem:[#allocation2 + $0x78] sm:$0xf] %vm3359_vm15, %v3324_v23  ;;  %v3652_v33 = vpop.f32.mrf.mxu3 }
 0x31b   : > { %3029 = vst.msk [vmem:[#allocation2 + $0x18] sm:$0xf] %vm3022_vm14, %v2939_v36  ;;  %v3653_v37 = vadd.f32 %v5937_v16, %v3652_v33  ;;  %v3610_v35 = vpop.f32.mrf.mxu1 }
 0x31c   : > { %v3590_v38 = vpop.f32.mrf.mxu0  ;;  %v3611_v39 = vadd.f32 %v5937_v16, %v3610_v35 }
 0x31d   : > { %v3310_v30 = vpop.permute.xlu1 %3309  ;;  %v3695_v40 = vmax.f32 %v3653_v37, 0.0  ;;  %v3591_v42 = vadd.f32 %v5937_v16, %v3590_v38 }
 0x31e   : > { %3383 = vst.msk [vmem:[#allocation2 + $0x5c] sm:$0xf] %vm3359_vm15, %v3310_v30  ;;  %v3308_v41 = vpop.permute.xlu0 %3307  ;;  %v3678_v43 = vmax.f32 %v3611_v39, 0.0  ;;  %v2957_v45 = vpop.permute.xlu2 %2956 }
 0x31f   : > { %3382 = vst.msk [vmem:[#allocation2 + $0x58] sm:$0xf] %vm3359_vm15, %v3308_v41  ;;  %v3670_v44 = vmax.f32 %v3591_v42, 0.0 }
 0x320   : > { %3727 = vst [vmem:[%s5945_s6 + $0xc8] sm:$0xff] %v3695_v40 }
 0x321   : > { %3710 = vst [vmem:[%s5945_s6 + $0x40] sm:$0xff] %v3678_v43 }
 0x322   : > { %3702 = vst [vmem:[%s5945_s6] sm:$0xff] %v3670_v44 }
 0x323   : > { %v3612_v46 = vpop.f32.mrf.mxu1 }
 0x324   : > { %v3592_v48 = vpop.f32.mrf.mxu0  ;;  %v3613_v49 = vadd.f32 %v5937_v16, %v3612_v46 }
 0x325   : > { %v2396_v47 = vpop.permute.xlu1 %2395  ;;  %v3593_v50 = vadd.f32 %v5937_v16, %v3592_v48 }
 0x326   : > { %2477 = vst.msk [vmem:[#allocation2 + $0x3c] sm:$0xf] %vm2461_vm12, %v2396_v47  ;;  %v3326_v25 = vpop.permute.xlu0 %3325  ;;  %v4284_v51 = vld [vmem:[#allocation2 + $0x58] sm:$0xff]  ;;  %v3679_v53 = vmax.f32 %v3613_v49, 0.0  ;;  %v3292_v57 = vpop.permute.xlu2 %3291 }
 0x327   : > { %3391 = vst.msk [vmem:[#allocation2 + $0x7c] sm:$0xf] %vm3359_vm15, %v3326_v25  ;;  %v3671_v54 = vmax.f32 %v3593_v50, 0.0  ;;  %4263 = vmatmul.msk.bf16.gmra.mxu2 %vm3528_vm0, %v4284_v51 }
 0x328   : > { %3038 = vst.msk [vmem:[#allocation2 + $0x3c] sm:$0xf] %vm3022_vm14, %v2957_v45 }
 0x329   : > { %3711 = vst [vmem:[%s5945_s6 + $0x48] sm:$0xff] %v3679_v53 }
 0x32a   : > { %3703 = vst [vmem:[%s5945_s6 + $0x8] sm:$0xff] %v3671_v54 }
 0x32d   : > { %v2955_v56 = vpop.permute.xlu1 %2954 }
 0x32e   : > { %3037 = vst.msk [vmem:[#allocation2 + $0x38] sm:$0xf] %vm3022_vm14, %v2955_v56  ;;  %v2941_v58 = vpop.permute.xlu0 %2940  ;;  %v4288_v1 = vld [vmem:[#allocation2 + $0x78] sm:$0xff] }
 0x32f   : > { %3030 = vst.msk [vmem:[#allocation2 + $0x1c] sm:$0xf] %vm3022_vm14, %v2941_v58  ;;  %4267 = vmatmul.msk.bf16.gmra.mxu3 %vm3528_vm0, %v4288_v1 }
 0x330   : > { %3374 = vst.msk [vmem:[#allocation2 + $0x38] sm:$0xf] %vm3359_vm15, %v3292_v57 }
 0x335   : > { %v3278_v59 = vpop.permute.xlu1 %3277 }
 0x336   : > { %3367 = vst.msk [vmem:[#allocation2 + $0x1c] sm:$0xf] %vm3359_vm15, %v3278_v59  ;;  %v3276_v60 = vpop.permute.xlu0 %3275 }
 0x337   : > { %3366 = vst.msk [vmem:[#allocation2 + $0x18] sm:$0xf] %vm3359_vm15, %v3276_v60 }
 0x33e   : > { %v3294_v61 = vpop.permute.xlu0 %3293  ;;  %v4276_v62 = vld [vmem:[#allocation2 + $0x18] sm:$0xff] }
 0x33f   : > { %3375 = vst.msk [vmem:[#allocation2 + $0x3c] sm:$0xf] %vm3359_vm15, %v3294_v61  ;;  %4255 = vmatmul.msk.bf16.gmra.mxu0 %vm3528_vm0, %v4276_v62 }
 0x341   : > { %v3655_v63 = vpop.f32.mrf.mxu3 }
 0x342   : > { %v3635_v52 = vpop.f32.mrf.mxu2  ;;  %v3656_v55 = vadd.f32 %v5937_v16, %v3655_v63 }
 0x343   : > { %v3636_v0 = vadd.f32 %v5937_v16, %v3635_v52 }
 0x344   : > { %v3696_v2 = vmax.f32 %v3656_v55, 0.0 }
 0x345   : > { %v3688_v3 = vmax.f32 %v3636_v0, 0.0 }
 0x346   : > { %v4280_v4 = vld [vmem:[#allocation2 + $0x38] sm:$0xff]  ;;  %3728 = vst [vmem:[%s5945_s6 + $0xd0] sm:$0xff] %v3696_v2 }
 0x347   : > { %3720 = vst [vmem:[%s5945_s6 + $0x90] sm:$0xff] %v3688_v3  ;;  %4259 = vmatmul.msk.bf16.gmra.mxu1 %vm3528_vm0, %v4280_v4 }
 0x349   : > { %v3657_v5 = vpop.f32.mrf.mxu3 }
 0x34a   : > { %v3637_v6 = vpop.f32.mrf.mxu2  ;;  %v3658_v7 = vadd.f32 %v5937_v16, %v3657_v5 }
 0x34b   : > { %v3638_v8 = vadd.f32 %v5937_v16, %v3637_v6  ;;  %v3595_v9 = vpop.f32.mrf.mxu0 }
 0x34c   : > { %v3697_v10 = vmax.f32 %v3658_v7, 0.0  ;;  %v3596_v11 = vadd.f32 %v5937_v16, %v3595_v9 }
 0x34d   : > { %v3689_v12 = vmax.f32 %v3638_v8, 0.0 }
 0x34e   : > { %3729 = vst [vmem:[%s5945_s6 + $0xd8] sm:$0xff] %v3697_v10  ;;  %v3672_v13 = vmax.f32 %v3596_v11, 0.0 }
 0x34f   : > { %3721 = vst [vmem:[%s5945_s6 + $0x98] sm:$0xff] %v3689_v12 }
 0x350   : > { %3704 = vst [vmem:[%s5945_s6 + $0x10] sm:$0xff] %v3672_v13 }
 0x353   : > { %v3597_v14 = vpop.f32.mrf.mxu0 }
 0x354   : > { %v3598_v15 = vadd.f32 %v5937_v16, %v3597_v14  ;;  %v3615_v17 = vpop.f32.mrf.mxu1 }
 0x355   : > { %v3616_v18 = vadd.f32 %v5937_v16, %v3615_v17 }
 0x356   : > { %v3673_v19 = vmax.f32 %v3598_v15, 0.0 }
 0x357   : > { %v3680_v20 = vmax.f32 %v3616_v18, 0.0 }
 0x358   : > { %3705 = vst [vmem:[%s5945_s6 + $0x18] sm:$0xff] %v3673_v19 }
 0x359   : > { %3712 = vst [vmem:[%s5945_s6 + $0x50] sm:$0xff] %v3680_v20 }
 0x35c   : > { %v3617_v21 = vpop.f32.mrf.mxu1 }
 0x35d   : > { %v3618_v22 = vadd.f32 %v5937_v16, %v3617_v21 }
 0x35f   : > { %v3681_v23 = vmax.f32 %v3618_v22, 0.0 }
 0x361   : > { %3713 = vst [vmem:[%s5945_s6 + $0x58] sm:$0xff] %v3681_v23 }
 0x371   : > { %v3640_v24 = vpop.f32.mrf.mxu2 }
 0x372   : > { %v3641_v26 = vadd.f32 %v5937_v16, %v3640_v24 }
 0x374   : > { %v3690_v27 = vmax.f32 %v3641_v26, 0.0 }
 0x376   : > { %3722 = vst [vmem:[%s5945_s6 + $0xa0] sm:$0xff] %v3690_v27 }
 0x379   : > { %v3642_v28 = vpop.f32.mrf.mxu2 }
 0x37a   : > { %v3643_v29 = vadd.f32 %v5937_v16, %v3642_v28  ;;  %v3660_v31 = vpop.f32.mrf.mxu3 }
 0x37b   : > { %v3661_v32 = vadd.f32 %v5937_v16, %v3660_v31 }
 0x37c   : > { %v3691_v34 = vmax.f32 %v3643_v29, 0.0 }
 0x37d   : > { %v3698_v36 = vmax.f32 %v3661_v32, 0.0 }
 0x37e   : > { %3723 = vst [vmem:[%s5945_s6 + $0xa8] sm:$0xff] %v3691_v34 }
 0x37f   : > { %3730 = vst [vmem:[%s5945_s6 + $0xe0] sm:$0xff] %v3698_v36 }
 0x382   : > { %v3662_v33 = vpop.f32.mrf.mxu3 }
 0x383   : > { %v3663_v37 = vadd.f32 %v5937_v16, %v3662_v33 }
 0x384   : > { %v3600_v35 = vpop.f32.mrf.mxu0 }
 0x385   : > { %v3699_v30 = vmax.f32 %v3663_v37, 0.0  ;;  %v3601_v38 = vadd.f32 %v5937_v16, %v3600_v35 }
 0x387   : > { %3731 = vst [vmem:[%s5945_s6 + $0xe8] sm:$0xff] %v3699_v30  ;;  %v3674_v39 = vmax.f32 %v3601_v38, 0.0 }
 0x389   : > { %3706 = vst [vmem:[%s5945_s6 + $0x20] sm:$0xff] %v3674_v39 }
 0x38c   : > { %v3602_v40 = vpop.f32.mrf.mxu0  ;;  %v3620_v41 = vpop.f32.mrf.mxu1 }
 0x38d   : > { %v3603_v42 = vadd.f32 %v5937_v16, %v3602_v40  ;;  %v3621_v43 = vadd.f32 %v5937_v16, %v3620_v41 }
 0x38f   : > { %v3675_v44 = vmax.f32 %v3603_v42, 0.0  ;;  %v3682_v45 = vmax.f32 %v3621_v43, 0.0 }
 0x391   : > { %3707 = vst [vmem:[%s5945_s6 + $0x28] sm:$0xff] %v3675_v44 }
 0x392   : > { %3714 = vst [vmem:[%s5945_s6 + $0x60] sm:$0xff] %v3682_v45 }
 0x394   : > { %v3622_v46 = vpop.f32.mrf.mxu1 }
 0x395   : > { %v3623_v47 = vadd.f32 %v5937_v16, %v3622_v46 }
 0x397   : > { %v3683_v48 = vmax.f32 %v3623_v47, 0.0 }
 0x399   : > { %3715 = vst [vmem:[%s5945_s6 + $0x68] sm:$0xff] %v3683_v48 }
 0x3aa   : > { %v3645_v49 = vpop.f32.mrf.mxu2 }
 0x3ab   : > { %v3646_v25 = vadd.f32 %v5937_v16, %v3645_v49 }
 0x3ad   : > { %v3692_v50 = vmax.f32 %v3646_v25, 0.0 }
 0x3af   : > { %3724 = vst [vmem:[%s5945_s6 + $0xb0] sm:$0xff] %v3692_v50 }
 0x3b2   : > { %v3647_v51 = vpop.f32.mrf.mxu2  ;;  %v3665_v53 = vpop.f32.mrf.mxu3 }
 0x3b3   : > { %v3648_v54 = vadd.f32 %v5937_v16, %v3647_v51  ;;  %v3666_v56 = vadd.f32 %v5937_v16, %v3665_v53 }
 0x3b5   : > { %v3693_v57 = vmax.f32 %v3648_v54, 0.0  ;;  %v3700_v58 = vmax.f32 %v3666_v56, 0.0 }
 0x3b7   : > { %3725 = vst [vmem:[%s5945_s6 + $0xb8] sm:$0xff] %v3693_v57 }
 0x3b8   : > { %3732 = vst [vmem:[%s5945_s6 + $0xf0] sm:$0xff] %v3700_v58 }
 0x3ba   : > { %v3667_v1 = vpop.f32.mrf.mxu3 }
 0x3bb   : > { %v3668_v59 = vadd.f32 %v5937_v16, %v3667_v1 }
 0x3bc   : > { %v3605_v60 = vpop.f32.mrf.mxu0 }
 0x3bd   : > { %v3701_v61 = vmax.f32 %v3668_v59, 0.0  ;;  %v3606_v62 = vadd.f32 %v5937_v16, %v3605_v60 }
 0x3bf   : > { %3733 = vst [vmem:[%s5945_s6 + $0xf8] sm:$0xff] %v3701_v61  ;;  %v3676_v63 = vmax.f32 %v3606_v62, 0.0 }
 0x3c1   : > { %3708 = vst [vmem:[%s5945_s6 + $0x30] sm:$0xff] %v3676_v63 }
 0x3c4   : > { %v3607_v52 = vpop.f32.mrf.mxu0  ;;  %v3625_v55 = vpop.f32.mrf.mxu1 }
 0x3c5   : > { %v3608_v0 = vadd.f32 %v5937_v16, %v3607_v52  ;;  %v3626_v2 = vadd.f32 %v5937_v16, %v3625_v55 }
 0x3c7   : > { %v3677_v3 = vmax.f32 %v3608_v0, 0.0  ;;  %v3684_v4 = vmax.f32 %v3626_v2, 0.0 }
 0x3c9   : > { %3709 = vst [vmem:[%s5945_s6 + $0x38] sm:$0xff] %v3677_v3 }
 0x3ca   : > { %3716 = vst [vmem:[%s5945_s6 + $0x70] sm:$0xff] %v3684_v4 }
 0x3cc   : > { %v3627_v5 = vpop.f32.mrf.mxu1 }
 0x3cd   : > { %v3628_v6 = vadd.f32 %v5937_v16, %v3627_v5 }
 0x3cf   : > { %v3685_v7 = vmax.f32 %v3628_v6, 0.0 }
 0x3d1   : > { %3717 = vst [vmem:[%s5945_s6 + $0x78] sm:$0xff] %v3685_v7 }
 0x3d2   : > { %4394 = shalt.err (!%p4391_p5)
}
 0x3d3   : > { %s4455_s28 = smov 128  }
 0x3d4   : > { %4302 = dma.vmem_to_hbm [thread:$0]  (%p4516_p4), %s3751_s11, 4096, %s3753_s18, %s3735_s15, %s4455_s28, %s4455_s28, %s4448_s5  }
 0x3d5 PF: > { %p4308_p6 = scmp.ge.s32.totalorder %s4445_s17, 2  ;;  %s3767_s4 = sand.u32 1, %s4425_s12  }
 0x3d6   : > { %s3768_s6 = scalar_lea.sflag [#allocation4], %s3767_s4 }
 0x3d7   : > { %p4305_p7 = pnand %p4308_p6, %p4523_p8 }
 0x3d9   : > { %p4306_p9 = pneg %p4305_p7 }
 0x3db   : > { %4420 = dma.done.wait (%p4306_p9), %s3768_s6, 4096  }
 0x3dc   : > { %4422 = vsyncadd (%p4306_p9), %s3768_s6, 4294963200  ;;  %s16_s17 = sadd.s32 1, %s4445_s17   ;;  %s6081_s12 = smov %s4429_s13 }
 0x3dd   : > { %p13_p10 = scmp.ge.s32.totalorder %s16_s17, 4   ;;  %s6082_s13 = smov %s4433_s14 }
 0x3de   : > { %s6083_s14 = smov %s4529_s25  ;;  %s6084_s15 = smov %s4441_s16 }
 0x3df   : > { %s6085_s16 = smov %s6087_s20  ;;  %15 = sbr.rel (!%p13_p10) target bundleno = 4 (0x4), region = 80 }
 0x3e4   :  { %3774 = vsyncpa [#allocation4], 1 }
 0x3e5   :  { %3776 = vsyncpa [#allocation4 + $0x1], 1 }

</bundles_post_ra>
